<compile_context>
chip_gen: v5e
topology: v5e:2x2
jax: 0.10.0
libtpu: 0.0.40
codegen_flags: <defaults>
</compile_context>

<pallas_src>
import functools

import jax
import jax.numpy as jnp
from jax.experimental import pallas as pl
from jax.experimental.pallas import tpu as pltpu


def _round_up(x, m):
    return -(-x // m) * m


# ------------------------------ Pallas kernel ------------------------------

def _conv_block_kernel(x_ref, w_ref, b_ref, o_ref, slab_ref, *,
                       k, stride, ws, ho, wo, cin, chunk_rows,
                       use_instance_norm, use_activation, eps, negative_slope):
    """Fused Conv2d (+bias) (+InstanceNorm2d) (+LeakyReLU) for one image and
    one Cout tile.

    x_ref:    (1, s*s, L, Cin)   bf16  flattened space-to-depth phases
    w_ref:    (k*k*Cin, tn)      bf16  weights, tap-major / channel-minor
    b_ref:    (1, tn)            f32
    o_ref:    (1, Ho, Wo, tn)    out_dtype
    slab_ref: (chunk*ws, k*k*Cin) bf16 VMEM scratch: folded-K patch slab
    """
    tn = o_ref.shape[-1]

    # Static per-tap (phase index, flat row offset) table.
    taps = []
    for ki in range(k):
        for kj in range(k):
            ri, rj = ki % stride, kj % stride
            qi, qj = ki // stride, kj // stride
            taps.append((ri * stride + rj, qi * ws + qj))

    n_chunks = -(-ho // chunk_rows)

    if use_instance_norm:
        s1 = jnp.zeros((1, 1, tn), jnp.float32)
        s2 = jnp.zeros((1, 1, tn), jnp.float32)

    # ---- pass 1: conv (single folded-K matmul per row chunk) -----------------
    for ci in range(n_chunks):
        r0 = ci * chunk_rows
        rc = min(chunk_rows, ho - r0)
        rows = rc * ws
        base = r0 * ws

        # Assemble slab[m, t*Cin:(t+1)*Cin] = phase_t[base + m + d_t, :].
        # Pure bf16, Cin-wide contiguous slices -- no casts, no reshapes.
        for t, (ph, d) in enumerate(taps):
            slab_ref[0:rows, t * cin:(t + 1) * cin] = (
                x_ref[0, ph, d + base:d + base + rows, :])

        # One MXU contraction over K = k*k*Cin (f32 accumulation).
        y = jnp.dot(slab_ref[0:rows, :], w_ref[...],
                    preferred_element_type=jnp.float32)          # (rows, tn)
        # Drop the q padding columns of the Ws-wide row layout (offset-0 slice).
        y = y.reshape(rc, ws, tn)[:, :wo, :]                     # (rc, wo, tn)

        if use_instance_norm:
            # One-pass stats; bias is skipped (mean subtraction cancels it).
            s1 = s1 + jnp.sum(y, axis=(0, 1), keepdims=True)
            s2 = s2 + jnp.sum(y * y, axis=(0, 1), keepdims=True)
        else:
            y = y + b_ref[...].reshape(1, 1, tn)
            if use_activation:
                y = jnp.maximum(y, negative_slope * y)

        o_ref[0, r0:r0 + rc, :, :] = y.astype(o_ref.dtype)

    # ---- pass 2: InstanceNorm + LeakyReLU in place over the output block ----
    if use_instance_norm:
        inv_n = 1.0 / float(ho * wo)
        mean = s1 * inv_n
        var = jnp.maximum(s2 * inv_n - mean * mean, 0.0)         # biased var
        inv = jax.lax.rsqrt(var + eps)
        # Padded Cout channels have zero weights/bias -> y == 0, mean == 0,
        # var == 0 -> output stays exactly 0 (no NaNs).
        for ci in range(n_chunks):
            r0 = ci * chunk_rows
            rc = min(chunk_rows, ho - r0)
            y = o_ref[0, r0:r0 + rc, :, :].astype(jnp.float32)
            y = (y - mean) * inv
            if use_activation:
                y = jnp.maximum(y, negative_slope * y)
            o_ref[0, r0:r0 + rc, :, :] = y.astype(o_ref.dtype)


# ------------------------------ wrapper ------------------------------

def discriminator_conv_block(x_nchw, weight, bias, *, stride, padding,
                             use_activation=True, use_instance_norm=True,
                             eps=1e-5, negative_slope=0.2,
                             out_dtype=jnp.float32):
    """x: (N, Cin, H, W) f32; weight: (Cout, Cin, k, k); bias: (Cout,).
    Returns (N, Cout, Ho, Wo), matching the PyTorch block.
    out_dtype=jnp.bfloat16 halves HBM writeback when the consumer accepts it
    (v5e feedback); default f32 matches the reference exactly."""
    N, Cin, H, W = x_nchw.shape
    Cout, Cin_w, kh, kw = weight.shape
    assert Cin_w == Cin and kh == kw, "square kernels / matching Cin expected"
    k, s, p = int(kh), int(stride), int(padding)

    Ho = (H + 2 * p - k) // s + 1
    Wo = (W + 2 * p - k) // s + 1
    assert Ho > 0 and Wo > 0
    q = (k - 1) // s                  # max intra-phase window shift
    Hs = Ho + q + 1                   # +1 guard row: tap offsets may wrap into it
    Ws = _round_up(Wo + q, 8)         # sublane-friendly padded phase width
    L = Hs * Ws

    # --- input prep: NHWC bf16, reflect pad, zero pad to (s*Hs, s*Ws),
    #     space-to-depth phases, flattened spatial (1x data volume). ---
    x = jnp.transpose(x_nchw, (0, 2, 3, 1)).astype(jnp.bfloat16)
    if p > 0:
        x = jnp.pad(x, ((0, 0), (p, p), (p, p), (0, 0)), mode="reflect")
    Hp, Wp = x.shape[1], x.shape[2]
    th, tw = s * Hs, s * Ws
    if th > Hp or tw > Wp:
        x = jnp.pad(x, ((0, 0), (0, max(0, th - Hp)),
                        (0, max(0, tw - Wp)), (0, 0)))
    x = x[:, :th, :tw, :]             # never crops needed pixels (see bounds)
    if s == 1:
        phases = x.reshape(N, 1, L, Cin)
    else:
        # phases[n, ri*s+rj, y*Ws+x, c] = x_pad[n, s*y+ri, s*x+rj, c]
        phases = x.reshape(N, Hs, s, Ws, s, Cin)
        phases = jnp.transpose(phases, (0, 2, 4, 1, 3, 5))
        phases = phases.reshape(N, s * s, L, Cin)

    # --- weights: (k*k*Cin, Cout) bf16, tap-major/channel-minor to match the
    #     slab column order; bias f32. ---
    w_r = jnp.transpose(weight, (2, 3, 1, 0)).reshape(k * k * Cin, Cout)
    w_r = w_r.astype(jnp.bfloat16)
    b_r = bias.astype(jnp.float32).reshape(1, Cout)

    # Lane-dense Cout tile: multiple of 128, capped at 256.
    cout_p = _round_up(Cout, 128)
    if cout_p <= 256:
        tn = cout_p
    else:
        tn = 256
        cout_p = _round_up(cout_p, 256)
    nc = cout_p // tn
    if cout_p != Cout:
        w_r = jnp.pad(w_r, ((0, 0), (0, cout_p - Cout)))
        b_r = jnp.pad(b_r, ((0, 0), (0, cout_p - Cout)))

    # --- row chunking so the folded-K slab scratch stays ~2 MiB. ---
    slab_row_bytes = Ws * k * k * Cin * 2
    chunk = max(1, min(Ho, (2 * 1024 * 1024) // max(1, slab_row_bytes)))

    kernel = functools.partial(
        _conv_block_kernel, k=k, stride=s, ws=Ws, ho=Ho, wo=Wo, cin=Cin,
        chunk_rows=chunk, use_instance_norm=use_instance_norm,
        use_activation=use_activation, eps=float(eps),
        negative_slope=float(negative_slope))

    # --- grid order: put the larger resident operand on the slow axis so its
    #     block index is constant along the inner axis (DMA skipped). ---
    x_blk = s * s * L * Cin * 2
    w_blk = k * k * Cin * tn * 2
    o_blk = Ho * Wo * tn * 4
    if nc > 1 and w_blk > x_blk:
        grid = (nc, N)
        xm = lambda c, n: (n, 0, 0, 0)
        wm = lambda c, n: (0, c)
        bm = lambda c, n: (0, c)
        om = lambda c, n: (n, 0, 0, c)
    else:
        grid = (N, nc)
        xm = lambda n, c: (n, 0, 0, 0)
        wm = lambda n, c: (0, c)
        bm = lambda n, c: (0, c)
        om = lambda n, c: (n, 0, 0, c)

    cp_kwargs = dict(dimension_semantics=("parallel", "parallel"))
    est_vmem = 2 * (x_blk + w_blk + o_blk) + chunk * slab_row_bytes + (1 << 20)
    if est_vmem > 30 * 1024 * 1024:
        # TODO(synk): replace whole-image blocks with a spatial grid axis +
        # two-pass InstanceNorm for very large feature maps (v7x: 64 MiB VMEM).
        cp_kwargs["vmem_limit_bytes"] = int(min(est_vmem + (8 << 20),
                                                96 * 1024 * 1024))

    out = pl.pallas_call(
        kernel,
        out_shape=jax.ShapeDtypeStruct((N, Ho, Wo, cout_p), out_dtype),
        grid_spec=pltpu.PrefetchScalarGridSpec(
            num_scalar_prefetch=0,
            grid=grid,
            in_specs=[
                pl.BlockSpec((1, s * s, L, Cin), xm),
                pl.BlockSpec((k * k * Cin, tn), wm),
                pl.BlockSpec((1, tn), bm),
            ],
            out_specs=pl.BlockSpec((1, Ho, Wo, tn), om),
            scratch_shapes=[pltpu.VMEM((chunk * Ws, k * k * Cin), jnp.bfloat16)],
        ),
        compiler_params=pltpu.CompilerParams(**cp_kwargs),
    )(phases, w_r, b_r)

    if cout_p != Cout:
        out = out[..., :Cout]
    return jnp.transpose(out, (0, 3, 1, 2))                       # -> NCHW


# ------------------------------ reference (pure JAX, f32) ------------------------------

def _reference_forward(x_nchw, weight, bias, *, stride, padding,
                       use_activation, use_instance_norm,
                       eps=1e-5, negative_slope=0.2):
    x = x_nchw.astype(jnp.float32)
    if padding > 0:
        x = jnp.pad(x, ((0, 0), (0, 0), (padding, padding), (padding, padding)),
                    mode="reflect")
    y = jax.lax.conv_general_dilated(
        x, weight.astype(jnp.float32),
        window_strides=(stride, stride), padding="VALID",
        dimension_numbers=("NCHW", "OIHW", "NCHW"),
        precision=jax.lax.Precision.HIGHEST)
    y = y + bias.reshape(1, -1, 1, 1)
    if use_instance_norm:
        mean = jnp.mean(y, axis=(2, 3), keepdims=True)
        var = jnp.mean(jnp.square(y - mean), axis=(2, 3), keepdims=True)
        y = (y - mean) * jax.lax.rsqrt(var + eps)
    if use_activation:
        y = jnp.where(y >= 0, y, negative_slope * y)
    return y


# ------------------------------ main ------------------------------

if __name__ == "__main__":
    key = jax.random.PRNGKey(0)
    kx1, kw1, kb1, kx2, kw2, kb2 = jax.random.split(key, 6)

    # Config 1: representative mid-discriminator block 64 -> 128, k=4, s=2,
    # p=1 reflect, InstanceNorm + LeakyReLU.
    N, Cin, H, W = 2, 64, 16, 16
    Cout, ksize, stride, pad = 128, 4, 2, 1
    x = jax.random.normal(kx1, (N, Cin, H, W), dtype=jnp.float32)
    w = 0.02 * jax.random.normal(kw1, (Cout, Cin, ksize, ksize), dtype=jnp.float32)
    b = 0.01 * jax.random.normal(kb1, (Cout,), dtype=jnp.float32)

    fwd = jax.jit(functools.partial(
        discriminator_conv_block, stride=stride, padding=pad,
        use_activation=True, use_instance_norm=True))
    y = jax.block_until_ready(fwd(x, w, b))
    assert y.shape == (N, Cout, 8, 8), y.shape
    y_ref = _reference_forward(x, w, b, stride=stride, padding=pad,
                               use_activation=True, use_instance_norm=True)
    err1 = float(jnp.max(jnp.abs(y - y_ref)))
    # bf16 matmul vs f32 reference: deliberate (GAN discriminator tolerance).
    assert err1 < 1e-1, f"config1 max abs err {err1}"

    # Config 2: stride-1, tiny Cout (exercises Cout->128 lane padding and the
    # bias / no-InstanceNorm epilogue path), LeakyReLU on.
    N2, Cin2, H2, W2 = 2, 32, 9, 9
    Cout2, ks2, s2, p2 = 1, 4, 1, 1
    x2 = jax.random.normal(kx2, (N2, Cin2, H2, W2), dtype=jnp.float32)
    w2 = 0.02 * jax.random.normal(kw2, (Cout2, Cin2, ks2, ks2), dtype=jnp.float32)
    b2 = 0.01 * jax.random.normal(kb2, (Cout2,), dtype=jnp.float32)
    fwd2 = jax.jit(functools.partial(
        discriminator_conv_block, stride=s2, padding=p2,
        use_activation=True, use_instance_norm=False))
    y2 = jax.block_until_ready(fwd2(x2, w2, b2))
    assert y2.shape == (N2, Cout2, 8, 8), y2.shape
    y2_ref = _reference_forward(x2, w2, b2, stride=s2, padding=p2,
                                use_activation=True, use_instance_norm=False)
    err2 = float(jnp.max(jnp.abs(y2 - y2_ref)))
    assert err2 < 5e-2, f"config2 max abs err {err2}"

    print("KERNEL_OK")
</pallas_src>

<mosaic_0001>
module attributes {stable_mosaic.version = 11 : i64} {
  func.func @_conv_block_kernel(%arg0: i32, %arg1: i32, %arg2: memref<1x4x160x64xbf16, #tpu.memory_space<vmem>>, %arg3: memref<1024x128xbf16, #tpu.memory_space<vmem>>, %arg4: memref<1x128xf32, #tpu.memory_space<vmem>>, %arg5: memref<1x8x8x128xf32, #tpu.memory_space<vmem>>, %arg6: memref<128x1024xbf16, #tpu.memory_space<vmem>>) attributes {dimension_semantics = [#tpu.dimension_semantics<parallel>, #tpu.dimension_semantics<parallel>], iteration_bounds = array<i64: 2, 1>, scalar_prefetch = 0 : i64, scratch_operands = 1 : i64, tpu.core_type = #tpu.core_type<tc>, window_params = [{transform_indices = @transform_0, window_bounds = array<i64: 1, 4, 160, 64>}, {transform_indices = @transform_1, window_bounds = array<i64: 1024, 128>}, {transform_indices = @transform_2, window_bounds = array<i64: 1, 128>}, {transform_indices = @transform_3, window_bounds = array<i64: 1, 8, 8, 128>}]} {
    %cst = arith.constant 0.000000e+00 : f32
    %0 = vector.broadcast %cst : f32 to vector<1x1x128xf32>
    %cst_0 = arith.constant 0.000000e+00 : f32
    %1 = vector.broadcast %cst_0 : f32 to vector<1x1x128xf32>
    %c0 = arith.constant 0 : index
    %c0_1 = arith.constant 0 : index
    %c0_2 = arith.constant 0 : index
    %c0_3 = arith.constant 0 : index
    %2 = vector.load %arg2[%c0, %c0_1, %c0_2, %c0_3] : memref<1x4x160x64xbf16, #tpu.memory_space<vmem>>, vector<1x1x128x64xbf16>
    %3 = vector.shape_cast %2 : vector<1x1x128x64xbf16> to vector<128x64xbf16>
    %c0_4 = arith.constant 0 : index
    %c0_5 = arith.constant 0 : index
    %4 = vector.load %arg6[%c0_4, %c0_5] : memref<128x1024xbf16, #tpu.memory_space<vmem>>, vector<128x64xbf16>
    tpu.vector_store %arg6[%c0_4, %c0_5], %3 {strides = array<i32>} : memref<128x1024xbf16, #tpu.memory_space<vmem>>, vector<128x64xbf16>,
    %c0_6 = arith.constant 0 : index
    %c1 = arith.constant 1 : index
    %c0_7 = arith.constant 0 : index
    %c0_8 = arith.constant 0 : index
    %5 = vector.load %arg2[%c0_6, %c1, %c0_7, %c0_8] : memref<1x4x160x64xbf16, #tpu.memory_space<vmem>>, vector<1x1x128x64xbf16>
    %6 = vector.shape_cast %5 : vector<1x1x128x64xbf16> to vector<128x64xbf16>
    %c0_9 = arith.constant 0 : index
    %c64 = arith.constant 64 : index
    %7 = vector.load %arg6[%c0_9, %c64] : memref<128x1024xbf16, #tpu.memory_space<vmem>>, vector<128x64xbf16>
    tpu.vector_store %arg6[%c0_9, %c64], %6 {strides = array<i32>} : memref<128x1024xbf16, #tpu.memory_space<vmem>>, vector<128x64xbf16>,
    %c0_10 = arith.constant 0 : index
    %c0_11 = arith.constant 0 : index
    %c1_12 = arith.constant 1 : index
    %c0_13 = arith.constant 0 : index
    %8 = vector.load %arg2[%c0_10, %c0_11, %c1_12, %c0_13] : memref<1x4x160x64xbf16, #tpu.memory_space<vmem>>, vector<1x1x128x64xbf16>
    %9 = vector.shape_cast %8 : vector<1x1x128x64xbf16> to vector<128x64xbf16>
    %c0_14 = arith.constant 0 : index
    %c128 = arith.constant 128 : index
    %10 = vector.load %arg6[%c0_14, %c128] : memref<128x1024xbf16, #tpu.memory_space<vmem>>, vector<128x64xbf16>
    tpu.vector_store %arg6[%c0_14, %c128], %9 {strides = array<i32>} : memref<128x1024xbf16, #tpu.memory_space<vmem>>, vector<128x64xbf16>,
    %c0_15 = arith.constant 0 : index
    %c1_16 = arith.constant 1 : index
    %c1_17 = arith.constant 1 : index
    %c0_18 = arith.constant 0 : index
    %11 = vector.load %arg2[%c0_15, %c1_16, %c1_17, %c0_18] : memref<1x4x160x64xbf16, #tpu.memory_space<vmem>>, vector<1x1x128x64xbf16>
    %12 = vector.shape_cast %11 : vector<1x1x128x64xbf16> to vector<128x64xbf16>
    %c0_19 = arith.constant 0 : index
    %c192 = arith.constant 192 : index
    %13 = vector.load %arg6[%c0_19, %c192] : memref<128x1024xbf16, #tpu.memory_space<vmem>>, vector<128x64xbf16>
    tpu.vector_store %arg6[%c0_19, %c192], %12 {strides = array<i32>} : memref<128x1024xbf16, #tpu.memory_space<vmem>>, vector<128x64xbf16>,
    %c0_20 = arith.constant 0 : index
    %c2 = arith.constant 2 : index
    %c0_21 = arith.constant 0 : index
    %c0_22 = arith.constant 0 : index
    %14 = vector.load %arg2[%c0_20, %c2, %c0_21, %c0_22] : memref<1x4x160x64xbf16, #tpu.memory_space<vmem>>, vector<1x1x128x64xbf16>
    %15 = vector.shape_cast %14 : vector<1x1x128x64xbf16> to vector<128x64xbf16>
    %c0_23 = arith.constant 0 : index
    %c256 = arith.constant 256 : index
    %16 = vector.load %arg6[%c0_23, %c256] : memref<128x1024xbf16, #tpu.memory_space<vmem>>, vector<128x64xbf16>
    tpu.vector_store %arg6[%c0_23, %c256], %15 {strides = array<i32>} : memref<128x1024xbf16, #tpu.memory_space<vmem>>, vector<128x64xbf16>,
    %c0_24 = arith.constant 0 : index
    %c3 = arith.constant 3 : index
    %c0_25 = arith.constant 0 : index
    %c0_26 = arith.constant 0 : index
    %17 = vector.load %arg2[%c0_24, %c3, %c0_25, %c0_26] : memref<1x4x160x64xbf16, #tpu.memory_space<vmem>>, vector<1x1x128x64xbf16>
    %18 = vector.shape_cast %17 : vector<1x1x128x64xbf16> to vector<128x64xbf16>
    %c0_27 = arith.constant 0 : index
    %c320 = arith.constant 320 : index
    %19 = vector.load %arg6[%c0_27, %c320] : memref<128x1024xbf16, #tpu.memory_space<vmem>>, vector<128x64xbf16>
    tpu.vector_store %arg6[%c0_27, %c320], %18 {strides = array<i32>} : memref<128x1024xbf16, #tpu.memory_space<vmem>>, vector<128x64xbf16>,
    %c0_28 = arith.constant 0 : index
    %c2_29 = arith.constant 2 : index
    %c1_30 = arith.constant 1 : index
    %c0_31 = arith.constant 0 : index
    %20 = vector.load %arg2[%c0_28, %c2_29, %c1_30, %c0_31] : memref<1x4x160x64xbf16, #tpu.memory_space<vmem>>, vector<1x1x128x64xbf16>
    %21 = vector.shape_cast %20 : vector<1x1x128x64xbf16> to vector<128x64xbf16>
    %c0_32 = arith.constant 0 : index
    %c384 = arith.constant 384 : index
    %22 = vector.load %arg6[%c0_32, %c384] : memref<128x1024xbf16, #tpu.memory_space<vmem>>, vector<128x64xbf16>
    tpu.vector_store %arg6[%c0_32, %c384], %21 {strides = array<i32>} : memref<128x1024xbf16, #tpu.memory_space<vmem>>, vector<128x64xbf16>,
    %c0_33 = arith.constant 0 : index
    %c3_34 = arith.constant 3 : index
    %c1_35 = arith.constant 1 : index
    %c0_36 = arith.constant 0 : index
    %23 = vector.load %arg2[%c0_33, %c3_34, %c1_35, %c0_36] : memref<1x4x160x64xbf16, #tpu.memory_space<vmem>>, vector<1x1x128x64xbf16>
    %24 = vector.shape_cast %23 : vector<1x1x128x64xbf16> to vector<128x64xbf16>
    %c0_37 = arith.constant 0 : index
    %c448 = arith.constant 448 : index
    %25 = vector.load %arg6[%c0_37, %c448] : memref<128x1024xbf16, #tpu.memory_space<vmem>>, vector<128x64xbf16>
    tpu.vector_store %arg6[%c0_37, %c448], %24 {strides = array<i32>} : memref<128x1024xbf16, #tpu.memory_space<vmem>>, vector<128x64xbf16>,
    %c0_38 = arith.constant 0 : index
    %c0_39 = arith.constant 0 : index
    %c16 = arith.constant 16 : index
    %c0_40 = arith.constant 0 : index
    %26 = vector.load %arg2[%c0_38, %c0_39, %c16, %c0_40] : memref<1x4x160x64xbf16, #tpu.memory_space<vmem>>, vector<1x1x128x64xbf16>
    %27 = vector.shape_cast %26 : vector<1x1x128x64xbf16> to vector<128x64xbf16>
    %c0_41 = arith.constant 0 : index
    %c512 = arith.constant 512 : index
    %28 = vector.load %arg6[%c0_41, %c512] : memref<128x1024xbf16, #tpu.memory_space<vmem>>, vector<128x64xbf16>
    tpu.vector_store %arg6[%c0_41, %c512], %27 {strides = array<i32>} : memref<128x1024xbf16, #tpu.memory_space<vmem>>, vector<128x64xbf16>,
    %c0_42 = arith.constant 0 : index
    %c1_43 = arith.constant 1 : index
    %c16_44 = arith.constant 16 : index
    %c0_45 = arith.constant 0 : index
    %29 = vector.load %arg2[%c0_42, %c1_43, %c16_44, %c0_45] : memref<1x4x160x64xbf16, #tpu.memory_space<vmem>>, vector<1x1x128x64xbf16>
    %30 = vector.shape_cast %29 : vector<1x1x128x64xbf16> to vector<128x64xbf16>
    %c0_46 = arith.constant 0 : index
    %c576 = arith.constant 576 : index
    %31 = vector.load %arg6[%c0_46, %c576] : memref<128x1024xbf16, #tpu.memory_space<vmem>>, vector<128x64xbf16>
    tpu.vector_store %arg6[%c0_46, %c576], %30 {strides = array<i32>} : memref<128x1024xbf16, #tpu.memory_space<vmem>>, vector<128x64xbf16>,
    %c0_47 = arith.constant 0 : index
    %c0_48 = arith.constant 0 : index
    %c17 = arith.constant 17 : index
    %c0_49 = arith.constant 0 : index
    %32 = vector.load %arg2[%c0_47, %c0_48, %c17, %c0_49] : memref<1x4x160x64xbf16, #tpu.memory_space<vmem>>, vector<1x1x128x64xbf16>
    %33 = vector.shape_cast %32 : vector<1x1x128x64xbf16> to vector<128x64xbf16>
    %c0_50 = arith.constant 0 : index
    %c640 = arith.constant 640 : index
    %34 = vector.load %arg6[%c0_50, %c640] : memref<128x1024xbf16, #tpu.memory_space<vmem>>, vector<128x64xbf16>
    tpu.vector_store %arg6[%c0_50, %c640], %33 {strides = array<i32>} : memref<128x1024xbf16, #tpu.memory_space<vmem>>, vector<128x64xbf16>,
    %c0_51 = arith.constant 0 : index
    %c1_52 = arith.constant 1 : index
    %c17_53 = arith.constant 17 : index
    %c0_54 = arith.constant 0 : index
    %35 = vector.load %arg2[%c0_51, %c1_52, %c17_53, %c0_54] : memref<1x4x160x64xbf16, #tpu.memory_space<vmem>>, vector<1x1x128x64xbf16>
    %36 = vector.shape_cast %35 : vector<1x1x128x64xbf16> to vector<128x64xbf16>
    %c0_55 = arith.constant 0 : index
    %c704 = arith.constant 704 : index
    %37 = vector.load %arg6[%c0_55, %c704] : memref<128x1024xbf16, #tpu.memory_space<vmem>>, vector<128x64xbf16>
    tpu.vector_store %arg6[%c0_55, %c704], %36 {strides = array<i32>} : memref<128x1024xbf16, #tpu.memory_space<vmem>>, vector<128x64xbf16>,
    %c0_56 = arith.constant 0 : index
    %c2_57 = arith.constant 2 : index
    %c16_58 = arith.constant 16 : index
    %c0_59 = arith.constant 0 : index
    %38 = vector.load %arg2[%c0_56, %c2_57, %c16_58, %c0_59] : memref<1x4x160x64xbf16, #tpu.memory_space<vmem>>, vector<1x1x128x64xbf16>
    %39 = vector.shape_cast %38 : vector<1x1x128x64xbf16> to vector<128x64xbf16>
    %c0_60 = arith.constant 0 : index
    %c768 = arith.constant 768 : index
    %40 = vector.load %arg6[%c0_60, %c768] : memref<128x1024xbf16, #tpu.memory_space<vmem>>, vector<128x64xbf16>
    tpu.vector_store %arg6[%c0_60, %c768], %39 {strides = array<i32>} : memref<128x1024xbf16, #tpu.memory_space<vmem>>, vector<128x64xbf16>,
    %c0_61 = arith.constant 0 : index
    %c3_62 = arith.constant 3 : index
    %c16_63 = arith.constant 16 : index
    %c0_64 = arith.constant 0 : index
    %41 = vector.load %arg2[%c0_61, %c3_62, %c16_63, %c0_64] : memref<1x4x160x64xbf16, #tpu.memory_space<vmem>>, vector<1x1x128x64xbf16>
    %42 = vector.shape_cast %41 : vector<1x1x128x64xbf16> to vector<128x64xbf16>
    %c0_65 = arith.constant 0 : index
    %c832 = arith.constant 832 : index
    %43 = vector.load %arg6[%c0_65, %c832] : memref<128x1024xbf16, #tpu.memory_space<vmem>>, vector<128x64xbf16>
    tpu.vector_store %arg6[%c0_65, %c832], %42 {strides = array<i32>} : memref<128x1024xbf16, #tpu.memory_space<vmem>>, vector<128x64xbf16>,
    %c0_66 = arith.constant 0 : index
    %c2_67 = arith.constant 2 : index
    %c17_68 = arith.constant 17 : index
    %c0_69 = arith.constant 0 : index
    %44 = vector.load %arg2[%c0_66, %c2_67, %c17_68, %c0_69] : memref<1x4x160x64xbf16, #tpu.memory_space<vmem>>, vector<1x1x128x64xbf16>
    %45 = vector.shape_cast %44 : vector<1x1x128x64xbf16> to vector<128x64xbf16>
    %c0_70 = arith.constant 0 : index
    %c896 = arith.constant 896 : index
    %46 = vector.load %arg6[%c0_70, %c896] : memref<128x1024xbf16, #tpu.memory_space<vmem>>, vector<128x64xbf16>
    tpu.vector_store %arg6[%c0_70, %c896], %45 {strides = array<i32>} : memref<128x1024xbf16, #tpu.memory_space<vmem>>, vector<128x64xbf16>,
    %c0_71 = arith.constant 0 : index
    %c3_72 = arith.constant 3 : index
    %c17_73 = arith.constant 17 : index
    %c0_74 = arith.constant 0 : index
    %47 = vector.load %arg2[%c0_71, %c3_72, %c17_73, %c0_74] : memref<1x4x160x64xbf16, #tpu.memory_space<vmem>>, vector<1x1x128x64xbf16>
    %48 = vector.shape_cast %47 : vector<1x1x128x64xbf16> to vector<128x64xbf16>
    %c0_75 = arith.constant 0 : index
    %c960 = arith.constant 960 : index
    %49 = vector.load %arg6[%c0_75, %c960] : memref<128x1024xbf16, #tpu.memory_space<vmem>>, vector<128x64xbf16>
    tpu.vector_store %arg6[%c0_75, %c960], %48 {strides = array<i32>} : memref<128x1024xbf16, #tpu.memory_space<vmem>>, vector<128x64xbf16>,
    %c0_76 = arith.constant 0 : index
    %c0_77 = arith.constant 0 : index
    %50 = vector.load %arg6[%c0_76, %c0_77] : memref<128x1024xbf16, #tpu.memory_space<vmem>>, vector<128x1024xbf16>
    %c0_78 = arith.constant 0 : index
    %c0_79 = arith.constant 0 : index
    %51 = vector.load %arg3[%c0_78, %c0_79] : memref<1024x128xbf16, #tpu.memory_space<vmem>>, vector<1024x128xbf16>
    %cst_80 = arith.constant dense<0.000000e+00> : vector<128x128xf32>
    %52 = tpu.matmul %50, %51, %cst_80 {dimension_numbers = #tpu.dot_dimension_numbers<[1], [0], [0], [1], [0, 0, 1, 1], [], []>} : vector<128x1024xbf16>, vector<1024x128xbf16>, vector<128x128xf32> -> vector<128x128xf32>
    %53 = vector.shape_cast %52 : vector<128x128xf32> to vector<8x16x128xf32>
    %54 = vector.extract_strided_slice %53 {offsets = [0, 0, 0], sizes = [8, 8, 128], strides = [1, 1, 1]} : vector<8x16x128xf32> to vector<8x8x128xf32>
    %cst_81 = arith.constant dense<0.000000e+00> : vector<128xf32>
    %55 = vector.multi_reduction <add>, %54, %cst_81 [0, 1] : vector<8x8x128xf32> to vector<128xf32>
    %56 = vector.shape_cast %55 : vector<128xf32> to vector<1x1x128xf32>
    %57 = arith.addf %0, %56 : vector<1x1x128xf32>
    %58 = arith.mulf %54, %54 : vector<8x8x128xf32>
    %cst_82 = arith.constant dense<0.000000e+00> : vector<128xf32>
    %59 = vector.multi_reduction <add>, %58, %cst_82 [0, 1] : vector<8x8x128xf32> to vector<128xf32>
    %60 = vector.shape_cast %59 : vector<128xf32> to vector<1x1x128xf32>
    %61 = arith.addf %1, %60 : vector<1x1x128xf32>
    %c0_83 = arith.constant 0 : index
    %c0_84 = arith.constant 0 : index
    %c0_85 = arith.constant 0 : index
    %c0_86 = arith.constant 0 : index
    %62 = vector.load %arg5[%c0_83, %c0_84, %c0_85, %c0_86] : memref<1x8x8x128xf32, #tpu.memory_space<vmem>>, vector<1x8x8x128xf32>
    %63 = vector.shape_cast %62 : vector<1x8x8x128xf32> to vector<8x8x128xf32>
    %64 = vector.shape_cast %54 : vector<8x8x128xf32> to vector<1x8x8x128xf32>
    tpu.vector_store %arg5[%c0_83, %c0_84, %c0_85, %c0_86], %64 {strides = array<i32>} : memref<1x8x8x128xf32, #tpu.memory_space<vmem>>, vector<1x8x8x128xf32>,
    %cst_87 = arith.constant 1.562500e-02 : f32
    %65 = vector.broadcast %cst_87 : f32 to vector<1x1x128xf32>
    %66 = arith.mulf %57, %65 : vector<1x1x128xf32>
    %cst_88 = arith.constant 1.562500e-02 : f32
    %67 = vector.broadcast %cst_88 : f32 to vector<1x1x128xf32>
    %68 = arith.mulf %61, %67 : vector<1x1x128xf32>
    %69 = arith.mulf %66, %66 : vector<1x1x128xf32>
    %70 = arith.subf %68, %69 : vector<1x1x128xf32>
    %cst_89 = arith.constant 0.000000e+00 : f32
    %71 = vector.broadcast %cst_89 : f32 to vector<1x1x128xf32>
    %72 = arith.maximumf %70, %71 : vector<1x1x128xf32>
    %cst_90 = arith.constant 9.99999974E-6 : f32
    %73 = vector.broadcast %cst_90 : f32 to vector<1x1x128xf32>
    %74 = arith.addf %72, %73 : vector<1x1x128xf32>
    %75 = math.rsqrt %74 : vector<1x1x128xf32>
    %c0_91 = arith.constant 0 : index
    %c0_92 = arith.constant 0 : index
    %c0_93 = arith.constant 0 : index
    %c0_94 = arith.constant 0 : index
    %76 = vector.load %arg5[%c0_91, %c0_92, %c0_93, %c0_94] : memref<1x8x8x128xf32, #tpu.memory_space<vmem>>, vector<1x8x8x128xf32>
    %77 = vector.shape_cast %76 : vector<1x8x8x128xf32> to vector<8x8x128xf32>
    %78 = vector.broadcast %66 : vector<1x1x128xf32> to vector<8x8x128xf32>
    %79 = arith.subf %77, %78 : vector<8x8x128xf32>
    %80 = vector.broadcast %75 : vector<1x1x128xf32> to vector<8x8x128xf32>
    %81 = arith.mulf %79, %80 : vector<8x8x128xf32>
    %cst_95 = arith.constant 2.000000e-01 : f32
    %82 = vector.broadcast %cst_95 : f32 to vector<8x8x128xf32>
    %83 = arith.mulf %82, %81 : vector<8x8x128xf32>
    %84 = arith.maximumf %81, %83 : vector<8x8x128xf32>
    %c0_96 = arith.constant 0 : index
    %c0_97 = arith.constant 0 : index
    %c0_98 = arith.constant 0 : index
    %c0_99 = arith.constant 0 : index
    %85 = vector.load %arg5[%c0_96, %c0_97, %c0_98, %c0_99] : memref<1x8x8x128xf32, #tpu.memory_space<vmem>>, vector<1x8x8x128xf32>
    %86 = vector.shape_cast %85 : vector<1x8x8x128xf32> to vector<8x8x128xf32>
    %87 = vector.shape_cast %84 : vector<8x8x128xf32> to vector<1x8x8x128xf32>
    tpu.vector_store %arg5[%c0_96, %c0_97, %c0_98, %c0_99], %87 {strides = array<i32>} : memref<1x8x8x128xf32, #tpu.memory_space<vmem>>, vector<1x8x8x128xf32>,
    return
  }
  func.func @transform_0(%arg0: i32, %arg1: i32) -> (i32, i32, i32, i32) {
    %c0_i32 = arith.constant 0 : i32
    %c0_i32_0 = arith.constant 0 : i32
    %c0_i32_1 = arith.constant 0 : i32
    %c0_i32_2 = arith.constant 0 : i32
    return %arg0, %c0_i32, %c0_i32_0, %c0_i32_1 : i32, i32, i32, i32
  }
  func.func @transform_1(%arg0: i32, %arg1: i32) -> (i32, i32) {
    %c0_i32 = arith.constant 0 : i32
    %c0_i32_0 = arith.constant 0 : i32
    return %c0_i32, %arg1 : i32, i32
  }
  func.func @transform_2(%arg0: i32, %arg1: i32) -> (i32, i32) {
    %c0_i32 = arith.constant 0 : i32
    %c0_i32_0 = arith.constant 0 : i32
    return %c0_i32, %arg1 : i32, i32
  }
  func.func @transform_3(%arg0: i32, %arg1: i32) -> (i32, i32, i32, i32) {
    %c0_i32 = arith.constant 0 : i32
    %c0_i32_0 = arith.constant 0 : i32
    %c0_i32_1 = arith.constant 0 : i32
    return %arg0, %c0_i32, %c0_i32_0, %arg1 : i32, i32, i32, i32
  }
}

</mosaic_0001>

<bundles_post_ra>
// kernel: discriminator_conv_block.1
= control target key start
LH: loop header
LB: loop body
LE: loop exit
PB: predicated region body
PF: predicated region fallthrough
CT: control target
= control target key end

     0   :  { %8 = vsyncpa [#allocation4], 0  ;;  %s6873_s0 = inlined_call_operand.vmem [shape: bf16[2,4,160,64], index: 0, kind: input, shape index: {}]   ;;  %s6874_s1 = inlined_call_operand.vmem [shape: bf16[1024,128], index: 1, kind: input, shape index: {}]   ;;  %s6875_s2 = inlined_call_operand.vmem [shape: f32[1,128], index: 2, kind: input, shape index: {}]   ;;  %s6876_s3 = inlined_call_operand.hbm [shape: f32[2,8,8,128], index: 3, kind: output, shape index: {}]  }
   0x1   :  { %10 = vsyncpa [#allocation4 + $0x1], 0  ;;  %s5031_s12 = smov 0   ;;  %s5033_s13 = smov 0  }
   0x2   :  { %s5035_s14 = smov 0   ;;  %s5037_s15 = smov 0  }
   0x3   :  { %s5039_s16 = smov 0   ;;  %s5041_s17 = smov 0  }
   0x4 LB: > { %s4014_s2 = sadd.s32 4294967295, %s5006_s17   ;;  %s4015_s18 = sadd.s32 4294967294, %s5006_s17   ;;  %s5006_s17 = sphi %s5041_s17, %s16_s17   ;;  %s5002_s16 = sphi %s5039_s16, %s6885_s16   ;;  %s4998_s15 = sphi %s5037_s15, %s6884_s15   ;;  %s4994_s14 = sphi %s5035_s14, %s6883_s14   ;;  %s4990_s13 = sphi %s5033_s13, %s6882_s13   ;;  %s4986_s12 = sphi %s5031_s12, %s6881_s12  }
   0x5   : > { %s28_s19 = sadd.s32 1, %s5002_s16  ;;  %s115_s20 = sadd.s32 1, %s4994_s14 }
   0x6   : > { %p30_p0 = scmp.ge.s32.totalorder %s28_s19, 2  ;;  %p125_p1 = scmp.ne.s32.totalorder %s4994_s14, %s4990_s13 }
   0x7   : > { %p126_p2 = scmp.eq.s32.totalorder %s4014_s2, 1  ;;  %p131_p3 = scmp.ne.s32.totalorder %s4990_s13, %s4986_s12 }
   0x8   : > { %s6887_s19 = smov (%p30_p0, %s28_s19), 0  ;;  %p132_p5 = scmp.eq.s32.totalorder %s4015_s18, 1 }
   0x9   : > { %p5071_p4 = por %p126_p2, %p125_p1  ;;  %s110_s22 = ssub.s32 %s5002_s16, %s6887_s19 }
   0xa   : > { %p4020_p6 = scmp.ge.s32.totalorder %s5006_s17, 1  ;;  %p113_p7 = scmp.eq.s32.totalorder %s110_s22, 0 }
   0xb   : > { %p5078_p8 = por %p132_p5, %p131_p3  ;;  %p171_p9 = scmp.lt.s32.totalorder %s5006_s17, 3 }
   0xc   : > { %s5084_s24 = scalar_select %p113_p7, %s4994_s14, %s115_s20  }
   0xd   : > { %p172_p10 = pnand %p4020_p6, %p171_p9 }
   0xe   : > { %p202_p11 = scmp.lt.s32.totalorder (!%p172_p10), %s4998_s15, 1  ;;  %s5008_s30 = smov (!%p172_p10), 64  }
   0xf   : > { %175 = sbr.rel (%p172_p10) target bundleno = 679 (0x2a7), region = 32  ;;  %s4866_s4 = sshll.u32 (!%p172_p10), %s4998_s15, 6 }
  0x10   : > { %s3911_s7 = scalar_lea.hbm (!%p172_p10), %s6876_s3, %s4866_s4  ;;  %s4948_s22 = scalar_lea.hbm (!%p172_p10), %s6876_s3, 128 }
  0x11   : > { %s3914_s9 = sshll.u32 (!%p172_p10), %s3911_s7, 4  ;;  %s3915_s9 = int_to_ptr.hbm [resolvable:$true] %s3914_s9 }
  0x12   : > { %s4942_s11 = sshra.s32 (!%p172_p10), %s3915_s9, 4  ;;  %s4943_s11 = int_to_ptr.hbm [resolvable:$true] %s4942_s11 }
  0x13   : > { %s4944_s2 = scalar_lea.hbm (!%p172_p10), %s4943_s11, 64  ;;  %p4949_p1 = scmp.lt.s32.totalorder (!%p172_p10), %s4943_s11, %s6876_s3 }
  0x14   : > { %s203_s25 = scalar_select %p202_p11, %s4998_s15, 1  ;;  %vm362_vm0 = vsmask.f32 3328  ;;  %vm363_vm1 = vsmask.f32 7440  ;;  %vm230_vm3 = vcmask 519168  }
  0x15   : > { %vm5113_vm2 = vmor %vm362_vm0, %vm363_vm1  ;;  %vm328_vm4 = vcmask 1043968   ;;  %p4945_p12 = scmp.ne.s32.totalorder %s4943_s11, %s4944_s2  ;;  %p4950_p2 = scmp.lt.s32.totalorder %s4948_s22, %s4944_s2 }
  0x16   : > { %s4867_s26 = smul.u32 320, %s203_s25 }
  0x17   : > { %p4946_p13 = pnand %p4945_p12, %p5071_p4  ;;  %p4951_p3 = por %p4950_p2, %p4949_p1 }
  0x18   : > { %s5091_s29 = scalar_lea.vmem %s6873_s0, %s4867_s26 }
  0x19   : > { %v4072_v0 = vld [vmem:[%s5091_s29 + $0xf0] sm:$0xf]  ;;  %v4074_v2 = vld [vmem:[%s5091_s29 + $0xf8] sm:$0xf]  ;;  %v4040_v4 = vld [vmem:[%s5091_s29 + $0x54] sm:$0xf]  ;;  %p4947_p0 = pneg %p4946_p13 }
  0x1a   : > { %v4023_v1 = vld [vmem:[%s5091_s29 + $0x50] sm:$0xf]  ;;  %872 = vrot.lane.b32.xlu0 %v4072_v0, %s5008_s30  ;;  %876 = vrot.lane.b32.xlu2 %v4074_v2, %s5008_s30  ;;  %v5102_v5 = vld [vmem:[%s5091_s29 + $0x58] sm:$0xf]  ;;  %v588_v8 = vshll.u32 %v4040_v4, 16  ;;  %v592_v9 = vshrl.u32 %v4040_v4, 16 }
  0x1b   : > { %280 = vrot.lane.b32.xlu1 %v4023_v1, %s5008_s30  ;;  %v4039_v3 = vld [vmem:[%s5091_s29 + $0x50] sm:$0xf]  ;;  %v4106_v11 = vld [vmem:[%s5091_s29 + $0xf4] sm:$0xf]  ;;  %v598_v20 = vshll.u32 %v5102_v5, 16  ;;  %v602_v48 = vshrl.u32 %v5102_v5, 16  ;;  %p4952_p5 = pnand %p4951_p3, %p4947_p0 }
  0x1c   : > { %v579_v6 = vshrl.u32 %v4039_v3, 16  ;;  %v582_v7 = vshll.u32 %v4039_v3, 16  ;;  %v4105_v10 = vld [vmem:[%s5091_s29 + $0xf0] sm:$0xf]  ;;  %v4073_v14 = vld [vmem:[%s5091_s29 + $0xf4] sm:$0xf] }
  0x1d   : > { %v1167_v12 = vshrl.u32 %v4105_v10, 16  ;;  %v1170_v13 = vshll.u32 %v4105_v10, 16  ;;  %v590_v17 = vrot.slane %v588_v8, 5  ;;  %v594_v18 = vrot.slane %v592_v9, 4  ;;  %v4024_v19 = vld [vmem:[%s5091_s29 + $0x54] sm:$0xf] }
  0x1e   : > { %v581_v15 = vrot.slane %v579_v6, 4  ;;  %v584_v16 = vrot.slane %v582_v7, 5  ;;  %v1176_v23 = vshll.u32 %v4106_v11, 16  ;;  %v1180_v26 = vshrl.u32 %v4106_v11, 16  ;;  %v4107_v29 = vld [vmem:[%s5091_s29 + $0xf8] sm:$0xf] }
  0x1f   : > { %v1169_v21 = vrot.slane %v1167_v12, 4  ;;  %v1172_v22 = vrot.slane %v1170_v13, 5  ;;  %v595_v25 = vor.u32 %v594_v18, %v590_v17  ;;  %v600_v33 = vrot.slane %v598_v20, 5  ;;  %v4108_v35 = vld [vmem:[%s5091_s29 + $0xfc] sm:$0xf] }
  0x20   : > { %v585_v24 = vor.u32 %v584_v16, %v581_v15  ;;  %v1178_v28 = vrot.slane %v1176_v23, 5  ;;  %v1182_v30 = vrot.slane %v1180_v26, 4  ;;  %v1186_v39 = vshll.u32 %v4107_v29, 16  ;;  %v4109_v51 = vld [vmem:[%s5091_s29 + $0x100] sm:$0xf] }
  0x21   : > { %v1173_v27 = vor.u32 %v1172_v22, %v1169_v21  ;;  %v596_v32 = vrot.slane %v595_v25, 4  ;;  %v1190_v40 = vshrl.u32 %v4107_v29, 16  ;;  %v1196_v41 = vshll.u32 %v4108_v35, 16  ;;  %v4042_v53 = vld [vmem:[%s5091_s29 + $0x5c] sm:$0xf] }
  0x22   : > { %874 = vrot.lane.b32.xlu0 %v4073_v14, %s5008_s30  ;;  %v586_v31 = vrot.slane %v585_v24, 4  ;;  %v1183_v37 = vor.u32 %v1182_v30, %v1178_v28  ;;  %v1200_v45 = vshrl.u32 %v4108_v35, 16  ;;  %v1188_v46 = vrot.slane %v1186_v39, 5  ;;  %v4075_v54 = vld [vmem:[%s5091_s29 + $0xfc] sm:$0xf] }
  0x23   : > { %282 = vrot.lane.b32.xlu1 %v4024_v19, %s5008_s30  ;;  %v1174_v34 = vrot.slane %v1173_v27, 4  ;;  %v601_v43 = vsel %vm5113_vm2, %v596_v32, %v600_v33  ;;  %v1192_v47 = vrot.slane %v1190_v40, 4  ;;  %v1198_v50 = vrot.slane %v1196_v41, 5  ;;  %v4025_v57 = vld [vmem:[%s5091_s29 + $0x58] sm:$0xf] }
  0x24   : > { %v591_v42 = vsel %vm5113_vm2, %v586_v31, %v590_v17  ;;  %v1184_v44 = vrot.slane %v1183_v37, 4  ;;  %v1202_v52 = vrot.slane %v1200_v45, 4  ;;  %v1206_v56 = vshll.u32 %v4109_v51, 16  ;;  %v4043_v0 = vld [vmem:[%s5091_s29 + $0x60] sm:$0xf] }
  0x25   : > { %v1179_v38 = vsel %vm5113_vm2, %v1174_v34, %v1178_v28  ;;  %v1193_v55 = vor.u32 %v1192_v47, %v1188_v46  ;;  %v608_v59 = vshll.u32 %v4042_v53, 16  ;;  %v612_v60 = vshrl.u32 %v4042_v53, 16  ;;  %v4026_v4 = vld [vmem:[%s5091_s29 + $0x5c] sm:$0xf]  ;;  %v4110_v14 = vld [vmem:[%s5091_s29 + $0x104] sm:$0xf] }
  0x26   : > { %1330 = vrot.lane.b32.xlu2 %v1179_v38, %s5008_s30  ;;  %v1189_v49 = vsel %vm5113_vm2, %v1184_v44, %v1188_v46  ;;  %v1203_v58 = vor.u32 %v1202_v52, %v1198_v50  ;;  %v604_v61 = vrot.slane %v602_v48, 4  ;;  %v1208_v63 = vrot.slane %v1206_v56, 5  ;;  %v4076_v19 = vld [vmem:[%s5091_s29 + $0x100] sm:$0xf]  ;;  %v4111_v22 = vld [vmem:[%s5091_s29 + $0x108] sm:$0xf] }
  0x27   : > { %v1194_v62 = vrot.slane %v1193_v55, 4  ;;  %v610_v2 = vrot.slane %v608_v59, 5  ;;  %v614_v3 = vrot.slane %v612_v60, 4  ;;  %v618_v6 = vshll.u32 %v4043_v0, 16  ;;  %v4044_v24 = vld [vmem:[%s5091_s29 + $0x64] sm:$0xf] }
  0x28   : > { %v1204_v1 = vrot.slane %v1203_v58, 4  ;;  %v605_v5 = vor.u32 %v604_v61, %v600_v33  ;;  %v1210_v11 = vshrl.u32 %v4109_v51, 16  ;;  %v1216_v16 = vshll.u32 %v4110_v14, 16  ;;  %v4077_v28 = vld [vmem:[%s5091_s29 + $0x104] sm:$0xf] }
  0x29   : > { %v1199_v7 = vsel %vm5113_vm2, %v1194_v62, %v1198_v50  ;;  %v615_v9 = vor.u32 %v614_v3, %v610_v2  ;;  %v620_v13 = vrot.slane %v618_v6, 5  ;;  %v622_v18 = vshrl.u32 %v4043_v0, 16  ;;  %v4027_v32 = vld [vmem:[%s5091_s29 + $0x60] sm:$0xf]  ;;  %v4028_v33 = vld [vmem:[%s5091_s29 + $0x64] sm:$0xf] }
  0x2a   : > { %742 = vrot.lane.b32.xlu0 %v591_v42, %s5008_s30  ;;  %v1209_v8 = vsel %vm5113_vm2, %v1204_v1, %v1208_v63  ;;  %v606_v10 = vrot.slane %v605_v5, 4  ;;  %v1220_v20 = vshrl.u32 %v4110_v14, 16  ;;  %v1212_v21 = vrot.slane %v1210_v11, 4  ;;  %v4045_v41 = vld [vmem:[%s5091_s29 + $0x68] sm:$0xf]  ;;  %v4825_v11 = vld [vmem:[%s6874_s1 + $0xb8] sm:$0xff] }
  0x2b   : > { %744 = vrot.lane.b32.xlu1 %v601_v43, %s5008_s30  ;;  %v616_v12 = vrot.slane %v615_v9, 4  ;;  %v1218_v23 = vrot.slane %v1216_v16, 5  ;;  %v624_v26 = vrot.slane %v622_v18, 4  ;;  %v632_v27 = vshrl.u32 %v4044_v24, 16  ;;  %v4112_v52 = vld [vmem:[%s5091_s29 + $0x10c] sm:$0xf]  ;;  %3544 = vmatpush.bf16.msra.mxu2 %v4825_v11 }
  0x2c   : > { %v611_v15 = vsel %vm5113_vm2, %v606_v10, %v610_v2  ;;  %v1222_v25 = vrot.slane %v1220_v20, 4  ;;  %v1213_v29 = vor.u32 %v1212_v21, %v1208_v63  ;;  %v628_v30 = vshll.u32 %v4044_v24, 16  ;;  %v4046_v55 = vld [vmem:[%s5091_s29 + $0x6c] sm:$0xf]  ;;  %v4078_v62 = vld [vmem:[%s5091_s29 + $0x108] sm:$0xf] }
  0x2d   : > { %v621_v17 = vsel %vm5113_vm2, %v616_v12, %v620_v13  ;;  %v1226_v31 = vshll.u32 %v4111_v22, 16  ;;  %v625_v35 = vor.u32 %v624_v26, %v620_v13  ;;  %v634_v38 = vrot.slane %v632_v27, 4  ;;  %v4079_v63 = vld [vmem:[%s5091_s29 + $0x10c] sm:$0xf]  ;;  %v4113_v2 = vld [vmem:[%s5091_s29 + $0x110] sm:$0xf] }
  0x2e   : > { %1332 = vrot.lane.b32.xlu2 %v1189_v49, %s5008_s30  ;;  %v1223_v34 = vor.u32 %v1222_v25, %v1218_v23  ;;  %v1214_v37 = vrot.slane %v1213_v29, 4  ;;  %v630_v39 = vrot.slane %v628_v30, 5  ;;  %v638_v46 = vshll.u32 %v4045_v41, 16  ;;  %v4029_v9 = vld [vmem:[%s5091_s29 + $0x68] sm:$0xf]  ;;  %v4832_v14 = vld [vmem:[%s6874_s1 + $0xf0] sm:$0xff] }
  0x2f   : > { %v1228_v40 = vrot.slane %v1226_v31, 5  ;;  %v626_v43 = vrot.slane %v625_v35, 4  ;;  %v1230_v47 = vshrl.u32 %v4111_v22, 16  ;;  %v642_v59 = vshrl.u32 %v4045_v41, 16  ;;  %v4058_v12 = vld [vmem:[%s5091_s29 + $0xa8] sm:$0xf] }
  0x30   : > { %v1224_v42 = vrot.slane %v1223_v34, 4  ;;  %v1219_v44 = vsel %vm5113_vm2, %v1214_v37, %v1218_v23  ;;  %v635_v45 = vor.u32 %v634_v38, %v630_v39  ;;  %v640_v51 = vrot.slane %v638_v46, 5  ;;  %v5196_v13 = vld [vmem:[%s5091_s29 + $0x70] sm:$0xf]  ;;  %825 = vst.msk [vmem:[#allocation2 + $0x48] sm:$0xf] %vm230_vm3, %v4058_v12 }
  0x31   : > { %v631_v49 = vsel %vm5113_vm2, %v626_v43, %v630_v39  ;;  %v1232_v53 = vrot.slane %v1230_v47, 4  ;;  %v648_v60 = vshll.u32 %v4046_v55, 16  ;;  %v652_v61 = vshrl.u32 %v4046_v55, 16  ;;  %v4808_v24 = vld [vmem:[%s6874_s1 + $0x30] sm:$0xff]  ;;  %v4831_v30 = vld [vmem:[%s6874_s1 + $0xe8] sm:$0xff]  ;;  %v4817_v31 = vld [vmem:[%s6874_s1 + $0x78] sm:$0xff] }
  0x32   : > { %878 = vrot.lane.b32.xlu0 %v4075_v54, %s5008_s30  ;;  %v1229_v48 = vsel %vm5113_vm2, %v1224_v42, %v1228_v40  ;;  %v636_v50 = vrot.slane %v635_v45, 4  ;;  %v1240_v54 = vshrl.u32 %v4112_v52, 16  ;;  %v658_v20 = vshll.u32 %v5196_v13, 16  ;;  %v4824_v25 = vld [vmem:[%s6874_s1 + $0xb0] sm:$0xff]  ;;  %v4823_v34 = vld [vmem:[%s6874_s1 + $0xa8] sm:$0xff]  ;;  %3503 = vmatpush.bf16.msra.mxu1 %v4817_v31  ;;  %v4830_v37 = vld [vmem:[%s6874_s1 + $0xe0] sm:$0xff] }
  0x33   : > { %284 = vrot.lane.b32.xlu1 %v4025_v57, %s5008_s30  ;;  %v1236_v57 = vshll.u32 %v4112_v52, 16  ;;  %v1233_v58 = vor.u32 %v1232_v53, %v1228_v40  ;;  %v5182_v5 = vrot.slane %v648_v60, 5  ;;  %v654_v6 = vrot.slane %v652_v61, 4  ;;  %3545 = vmatpush.bf16.msra.mxu2 %v4824_v25  ;;  %v4088_v35 = vld [vmem:[%s5091_s29 + $0xa0] sm:$0xf]  ;;  %v4821_v11 = vld [vmem:[%s6874_s1 + $0x98] sm:$0xff] }
  0x34   : > { %v641_v56 = vsel %vm5113_vm2, %v636_v50, %v640_v51  ;;  %v1242_v0 = vrot.slane %v1240_v54, 4  ;;  %v5218_v27 = vrot.slane %v658_v20, 5  ;;  %v4089_v38 = vld [vmem:[%s5091_s29 + $0xa4] sm:$0xf]  ;;  %v954_v39 = vshrl.u32 %v4088_v35, 16 }
  0x35   : > { %v1238_v1 = vrot.slane %v1236_v57, 5  ;;  %v1234_v3 = vrot.slane %v1233_v58, 4  ;;  %v957_v40 = vshll.u32 %v4088_v35, 16  ;;  %v963_v43 = vshll.u32 %v4089_v38, 16  ;;  %v5249_v50 = vld [vmem:[%s5091_s29 + $0x118] sm:$0xf] }
  0x36   : > { %286 = vrot.lane.b32.xlu2 %v4026_v4, %s5008_s30  ;;  %v644_v4 = vrot.slane %v642_v59, 4  ;;  %v956_v46 = vrot.slane %v954_v39, 4  ;;  %v4080_v52 = vld [vmem:[%s5091_s29 + $0x110] sm:$0xf]  ;;  %v662_v54 = vshrl.u32 %v5196_v13, 16  ;;  %v4806_v58 = vld [vmem:[%s6874_s1 + $0x20] sm:$0xff] }
  0x37   : > { %v1243_v10 = vor.u32 %v1242_v0, %v1238_v1  ;;  %v1239_v18 = vsel %vm5113_vm2, %v1234_v3, %v1238_v1  ;;  %v959_v47 = vrot.slane %v957_v40, 5  ;;  %3546 = vmatpush.bf16.msra.mxu2 %v4823_v34  ;;  %v965_v57 = vrot.slane %v963_v43, 5  ;;  %v4816_v59 = vld [vmem:[%s6874_s1 + $0x70] sm:$0xff]  ;;  %v4822_v61 = vld [vmem:[%s6874_s1 + $0xa0] sm:$0xff]  ;;  %v4827_v39 = vld [vmem:[%s6874_s1 + $0xc8] sm:$0xff] }
  0x38   : > { %v645_v16 = vor.u32 %v644_v4, %v640_v51  ;;  %v4048_v51 = vld [vmem:[%s5091_s29 + $0x74] sm:$0xf]  ;;  %v1266_v0 = vshll.u32 %v5249_v50, 16  ;;  %3504 = vmatpush.bf16.msra.mxu1 %v4816_v59  ;;  %v4057_v34 = vld [vmem:[%s5091_s29 + $0xa4] sm:$0xf]  ;;  %v1270_v59 = vshrl.u32 %v5249_v50, 16 }
  0x39   : > { %v1244_v21 = vrot.slane %v1243_v10, 4  ;;  %v960_v53 = vor.u32 %v959_v47, %v956_v46  ;;  %v668_v4 = vshll.u32 %v4048_v51, 16  ;;  %v4815_v10 = vld [vmem:[%s6874_s1 + $0x68] sm:$0xff]  ;;  %v215_v35 = vld [vmem:[%s5091_s29 + $0x4] sm:$0xf]  ;;  %v4812_v50 = vld [vmem:[%s6874_s1 + $0x50] sm:$0xff] }
  0x3a   : > { %1334 = vrot.lane.b32.xlu0 %v1199_v7, %s5008_s30  ;;  %v4833_v7 = vld [vmem:[%s6874_s1 + $0xf8] sm:$0xff]  ;;  %v646_v23 = vrot.slane %v645_v16, 4  ;;  %v4828_v16 = vld [vmem:[%s6874_s1 + $0xd0] sm:$0xff]  ;;  %824 = vst.msk [vmem:[#allocation2 + $0x28] sm:$0xf] %vm230_vm3, %v4057_v34  ;;  %v4819_v46 = vld [vmem:[%s6874_s1 + $0x88] sm:$0xff] }
  0x3b   : > { %1336 = vrot.lane.b32.xlu1 %v1209_v8, %s5008_s30  ;;  %v4809_v8 = vld [vmem:[%s6874_s1 + $0x38] sm:$0xff]  ;;  %3585 = vmatpush.bf16.msra.mxu3 %v4833_v7  ;;  %v961_v60 = vrot.slane %v960_v53, 4  ;;  %v5280_v7 = vld [vmem:[%s5091_s29 + $0xa8] sm:$0xf]  ;;  %v5309_v25 = vrot.slane %v668_v4, 5 }
  0x3c   : > { %3462 = vmatpush.bf16.msra.mxu0 %v4809_v8  ;;  %3547 = vmatpush.bf16.msra.mxu2 %v4822_v61  ;;  %v973_v13 = vshll.u32 %v5280_v7, 16  ;;  %232 = vst.msk [vmem:[#allocation2 + $0x20] sm:$0xf] %vm230_vm3, %v215_v35  ;;  %v216_v34 = vld [vmem:[%s5091_s29 + $0x8] sm:$0xf] }
  0x3d   : > { %3505 = vmatpush.bf16.msra.mxu1 %v4815_v10  ;;  %233 = vst.msk [vmem:[#allocation2 + $0x40] sm:$0xf] %vm230_vm3, %v216_v34 }
  0x3e   : > { %746 = vrot.lane.b32.xlu2 %v611_v15, %s5008_s30  ;;  %v1246_v15 = vshll.u32 %v4113_v2, 16 }
  0x3f   : > { %3586 = vmatpush.bf16.msra.mxu3 %v4832_v14  ;;  %v4031_v14 = vld [vmem:[%s5091_s29 + $0x70] sm:$0xf] }
  0x40   : > { %v5208_v22 = vrot.slane %v1246_v15, 5  ;;  %3463 = vmatpush.bf16.msra.mxu0 %v4808_v24  ;;  %v672_v15 = vshrl.u32 %v4048_v51, 16  ;;  %3548 = vmatpush.bf16.msra.mxu2 %v4821_v11  ;;  %v5307_v24 = vld [vmem:[%s5091_s29 + $0x78] sm:$0xf] }
  0x41   : > { %v682_v10 = vshrl.u32 %v5307_v24, 16 }
  0x42   : > { %748 = vrot.lane.b32.xlu0 %v621_v17, %s5008_s30  ;;  %v4030_v17 = vld [vmem:[%s5091_s29 + $0x6c] sm:$0xf]  ;;  %v1249_v29 = vsel %vm5113_vm2, %v1244_v21, %v5208_v22  ;;  %v5301_v21 = vrot.slane %v1266_v0, 5 }
  0x43   : > { %880 = vrot.lane.b32.xlu1 %v4076_v19, %s5008_s30  ;;  %v655_v19 = vor.u32 %v654_v6, %v5182_v5  ;;  %3587 = vmatpush.bf16.msra.mxu3 %v4831_v30  ;;  %v4829_v6 = vld [vmem:[%s6874_s1 + $0xd8] sm:$0xff]  ;;  %v674_v30 = vrot.slane %v672_v15, 4  ;;  %v4811_v15 = vld [vmem:[%s6874_s1 + $0x48] sm:$0xff] }
  0x45   : > { %v656_v26 = vrot.slane %v655_v19, 4  ;;  %v5299_v19 = vrot.slane %v973_v13, 5 }
  0x46   : > { %882 = vrot.lane.b32.xlu2 %v4077_v28, %s5008_s30  ;;  %v4114_v28 = vld [vmem:[%s5091_s29 + $0x114] sm:$0xf] }
  0x47   : > { %v1256_v41 = vshll.u32 %v4114_v28, 16  ;;  %v1260_v42 = vshrl.u32 %v4114_v28, 16  ;;  %v661_v45 = vsel %vm5113_vm2, %v656_v26, %v5218_v27  ;;  %3588 = vmatpush.bf16.msra.mxu3 %v4830_v37  ;;  %v4804_v28 = vld [vmem:[%s6874_s1 + $0x10] sm:$0xff]  ;;  %v346_v37 = vld [vmem:[%s5091_s29 + $0x4] sm:$0xf] }
  0x48   : > { %v379_v47 = vshrl.u32 %v346_v37, 16 }
  0x49   : > { %v5256_v55 = vrot.slane %v1256_v41, 5  ;;  %v375_v41 = vshll.u32 %v346_v37, 16 }
  0x4a   : > { %288 = vrot.lane.b32.xlu0 %v4027_v32, %s5008_s30  ;;  %v1250_v32 = vshrl.u32 %v4113_v2, 16  ;;  %v4081_v2 = vld [vmem:[%s5091_s29 + $0x114] sm:$0xf] }
  0x4b   : > { %290 = vrot.lane.b32.xlu1 %v4028_v33, %s5008_s30  ;;  %v4807_v33 = vld [vmem:[%s6874_s1 + $0x28] sm:$0xff]  ;;  %3589 = vmatpush.bf16.msra.mxu3 %v4829_v6 }
  0x4c   : > { %3464 = vmatpush.bf16.msra.mxu0 %v4807_v33  ;;  %v345_v33 = vld [vmem:[%s5091_s29] sm:$0xf] }
  0x4d   : > { %v366_v40 = vshrl.u32 %v345_v33, 16 }
  0x4e   : > { %1338 = vrot.lane.b32.xlu2 %v1219_v44, %s5008_s30  ;;  %v651_v44 = vsel %vm5113_vm2, %v646_v23, %v5182_v5  ;;  %v966_v5 = vsel %vm5113_vm2, %v961_v60, %v965_v57  ;;  %v4116_v60 = vld [vmem:[%s5091_s29 + $0x11c] sm:$0xf] }
  0x4f   : > { %1133 = vst.msk [vmem:[#allocation2 + $0xc] sm:$0xf] %vm230_vm3, %v966_v5  ;;  %3590 = vmatpush.bf16.msra.mxu3 %v4828_v16  ;;  %v368_v53 = vrot.slane %v366_v40, 4  ;;  %v1272_v16 = vrot.slane %v1270_v59, 4 }
  0x50   : > { %3465 = vmatpush.bf16.msra.mxu0 %v4806_v58 }
  0x52   : > { %1340 = vrot.lane.b32.xlu0 %v1229_v48, %s5008_s30  ;;  %v1252_v48 = vrot.slane %v1250_v32, 4  ;;  %v4820_v32 = vld [vmem:[%s6874_s1 + $0x90] sm:$0xff] }
  0x53   : > { %750 = vrot.lane.b32.xlu1 %v631_v49, %s5008_s30  ;;  %v967_v49 = vshrl.u32 %v4089_v38, 16  ;;  %3549 = vmatpush.bf16.msra.mxu2 %v4820_v32  ;;  %v5412_v32 = vld [vmem:[%s5091_s29 + $0x120] sm:$0xf] }
  0x54   : > { %v1253_v3 = vor.u32 %v1252_v48, %v5208_v22  ;;  %v4032_v22 = vld [vmem:[%s5091_s29 + $0x74] sm:$0xf]  ;;  %v675_v48 = vor.u32 %v674_v30, %v5309_v25  ;;  %3591 = vmatpush.bf16.msra.mxu3 %v4827_v39  ;;  %v1273_v30 = vor.u32 %v1272_v16, %v5301_v21  ;;  %v5462_v16 = vld [vmem:[%s5091_s29 + $0x10] sm:$0xf] }
  0x55   : > { %v969_v1 = vrot.slane %v967_v49, 4  ;;  %v678_v49 = vshll.u32 %v5307_v24, 16  ;;  %v684_v24 = vrot.slane %v682_v10, 4 }
  0x56   : > { %752 = vrot.lane.b32.xlu2 %v641_v56, %s5008_s30  ;;  %v1262_v56 = vrot.slane %v1260_v42, 4  ;;  %v1254_v20 = vrot.slane %v1253_v3, 4  ;;  %v4818_v3 = vld [vmem:[%s6874_s1 + $0x80] sm:$0xff] }
  0x57   : > { %v970_v12 = vor.u32 %v969_v1, %v965_v57  ;;  %v381_v57 = vrot.slane %v379_v47, 4  ;;  %3550 = vmatpush.bf16.msra.mxu2 %v4819_v46  ;;  %v5364_v0 = vrot.slane %v678_v49, 5 }
  0x58   : > { %v1263_v8 = vor.u32 %v1262_v56, %v5256_v55  ;;  %v1259_v42 = vsel %vm5113_vm2, %v1254_v20, %v5256_v55  ;;  %v377_v55 = vrot.slane %v375_v41, 5  ;;  %v5357_v56 = vld [vmem:[%s5091_s29 + $0x8] sm:$0xf]  ;;  %v1286_v41 = vshll.u32 %v5412_v32, 16 }
  0x59   : > { %v385_v58 = vshll.u32 %v5357_v56, 16  ;;  %v685_v40 = vor.u32 %v684_v24, %v5364_v0  ;;  %v389_v46 = vshrl.u32 %v5357_v56, 16  ;;  %v4118_v24 = vld [vmem:[%s5091_s29 + $0x124] sm:$0xf] }
  0x5a   : > { %884 = vrot.lane.b32.xlu0 %v4078_v62, %s5008_s30  ;;  %v4056_v62 = vld [vmem:[%s5091_s29 + $0xa0] sm:$0xf]  ;;  %v1264_v23 = vrot.slane %v1263_v8, 4  ;;  %v1276_v8 = vshll.u32 %v4116_v60, 16 }
  0x5b   : > { %886 = vrot.lane.b32.xlu1 %v4079_v63, %s5008_s30  ;;  %v214_v63 = vld [vmem:[%s5091_s29] sm:$0xf]  ;;  %823 = vst.msk [vmem:[#allocation2 + $0x8] sm:$0xf] %vm230_vm3, %v4056_v62  ;;  %v382_v62 = vor.u32 %v381_v57, %v377_v55  ;;  %v5378_v4 = vrot.slane %v385_v58, 5  ;;  %3551 = vmatpush.bf16.msra.mxu2 %v4818_v3  ;;  %v5436_v58 = vrot.slane %v1286_v41, 5 }
  0x5c   : > { %231 = vst.msk [vmem:[#allocation2] sm:$0xf] %vm230_vm3, %v214_v63  ;;  %v1269_v43 = vsel %vm5113_vm2, %v1264_v23, %v5301_v21  ;;  %v676_v63 = vrot.slane %v675_v48, 4  ;;  %v977_v23 = vshrl.u32 %v5280_v7, 16  ;;  %v4033_v7 = vld [vmem:[%s5091_s29 + $0x78] sm:$0xf] }
  0x5d   : > { %v383_v6 = vrot.slane %v382_v62, 4  ;;  %v1290_v3 = vshrl.u32 %v5412_v32, 16  ;;  %v1300_v32 = vshrl.u32 %v4118_v24, 16  ;;  %v4061_v41 = vld [vmem:[%s5091_s29 + $0xb4] sm:$0xf] }
  0x5e   : > { %292 = vrot.lane.b32.xlu2 %v4029_v9, %s5008_s30  ;;  %v4805_v9 = vld [vmem:[%s6874_s1 + $0x18] sm:$0xff]  ;;  %v681_v13 = vsel %vm5113_vm2, %v676_v63, %v5364_v0  ;;  %v979_v21 = vrot.slane %v977_v23, 4  ;;  %828 = vst.msk [vmem:[#allocation2 + $0xa8] sm:$0xf] %vm230_vm3, %v4061_v41 }
  0x5f   : > { %3466 = vmatpush.bf16.msra.mxu0 %v4805_v9  ;;  %v1280_v9 = vshrl.u32 %v4116_v60, 16  ;;  %v348_v60 = vld [vmem:[%s5091_s29 + $0xc] sm:$0xf] }
  0x60   : > { %v980_v47 = vor.u32 %v979_v21, %v5299_v19 }
  0x61   : > { %v1282_v20 = vrot.slane %v1280_v9, 4 }
  0x62   : > { %294 = vrot.lane.b32.xlu0 %v4030_v17, %s5008_s30  ;;  %v664_v17 = vrot.slane %v662_v54, 4  ;;  %v981_v57 = vrot.slane %v980_v47, 4  ;;  %v1302_v47 = vrot.slane %v1300_v32, 4 }
  0x63   : > { %1342 = vrot.lane.b32.xlu1 %v1239_v18, %s5008_s30  ;;  %v971_v18 = vrot.slane %v970_v12, 4  ;;  %3467 = vmatpush.bf16.msra.mxu0 %v4804_v28  ;;  %v388_v12 = vsel %vm5113_vm2, %v383_v6, %v5378_v4  ;;  %v4059_v28 = vld [vmem:[%s5091_s29 + $0xac] sm:$0xf] }
  0x64   : > { %v665_v31 = vor.u32 %v664_v17, %v5218_v27  ;;  %v369_v27 = vshll.u32 %v345_v33, 16  ;;  %546 = vst.msk [vmem:[#allocation2 + $0x24] sm:$0xf] %vm230_vm3, %v388_v12  ;;  %v217_v33 = vld [vmem:[%s5091_s29 + $0xc] sm:$0xf] }
  0x65   : > { %v976_v26 = vsel %vm5113_vm2, %v971_v18, %v5299_v19  ;;  %v5397_v18 = vrot.slane %v1276_v8, 5  ;;  %826 = vst.msk [vmem:[#allocation2 + $0x68] sm:$0xf] %vm230_vm3, %v4059_v28  ;;  %v4052_v28 = vld [vmem:[%s5091_s29 + $0x84] sm:$0xf] }
  0x66   : > { %1344 = vrot.lane.b32.xlu2 %v1249_v29, %s5008_s30  ;;  %v4814_v29 = vld [vmem:[%s6874_s1 + $0x60] sm:$0xff]  ;;  %1134 = vst.msk [vmem:[#allocation2 + $0x2c] sm:$0xf] %vm230_vm3, %v976_v26  ;;  %v666_v51 = vrot.slane %v665_v31, 4  ;;  %v371_v54 = vrot.slane %v369_v27, 5 }
  0x67   : > { %3506 = vmatpush.bf16.msra.mxu1 %v4814_v29  ;;  %v4810_v26 = vld [vmem:[%s6874_s1 + $0x40] sm:$0xff]  ;;  %v4083_v29 = vld [vmem:[%s5091_s29 + $0x11c] sm:$0xf]  ;;  %v4091_v31 = vld [vmem:[%s5091_s29 + $0xac] sm:$0xf]  ;;  %v1283_v39 = vor.u32 %v1282_v20, %v5397_v18 }
  0x68   : > { %v372_v61 = vor.u32 %v371_v54, %v368_v53  ;;  %v671_v1 = vsel %vm5113_vm2, %v666_v51, %v5309_v25  ;;  %234 = vst.msk [vmem:[#allocation2 + $0x60] sm:$0xf] %vm230_vm3, %v217_v33  ;;  %v983_v37 = vshll.u32 %v4091_v31, 16  ;;  %v987_v27 = vshrl.u32 %v4091_v31, 16 }
  0x69   : > { %v1284_v53 = vrot.slane %v1283_v39, 4  ;;  %v686_v54 = vrot.slane %v685_v40, 4  ;;  %v4084_v39 = vld [vmem:[%s5091_s29 + $0x120] sm:$0xf]  ;;  %v4085_v40 = vld [vmem:[%s5091_s29 + $0x124] sm:$0xf] }
  0x6a   : > { %754 = vrot.lane.b32.xlu0 %v651_v44, %s5008_s30  ;;  %v4803_v44 = vld [vmem:[%s6874_s1 + $0x8] sm:$0xff]  ;;  %v373_v5 = vrot.slane %v372_v61, 4  ;;  %v985_v48 = vrot.slane %v983_v37, 5  ;;  %v989_v49 = vrot.slane %v987_v27, 4  ;;  %v1296_v37 = vshll.u32 %v4118_v24, 16 }
  0x6b   : > { %756 = vrot.lane.b32.xlu1 %v661_v45, %s5008_s30  ;;  %v4813_v45 = vld [vmem:[%s6874_s1 + $0x58] sm:$0xff]  ;;  %3468 = vmatpush.bf16.msra.mxu0 %v4803_v44  ;;  %v5425_v44 = vld [vmem:[%s5091_s29 + $0xb0] sm:$0xf]  ;;  %v1289_v12 = vsel %vm5113_vm2, %v1284_v53, %v5436_v58  ;;  %v708_v27 = vshll.u32 %v4052_v28, 16 }
  0x6c   : > { %3507 = vmatpush.bf16.msra.mxu1 %v4813_v45  ;;  %v378_v11 = vsel %vm5113_vm2, %v373_v5, %v377_v55  ;;  %v5434_v55 = vld [vmem:[%s5091_s29 + $0x80] sm:$0xf]  ;;  %v990_v56 = vor.u32 %v989_v49, %v985_v48  ;;  %v986_v0 = vsel %vm5113_vm2, %v981_v57, %v985_v48  ;;  %v1298_v48 = vrot.slane %v1296_v37, 5 }
  0x6d   : > { %545 = vst.msk [vmem:[#allocation2 + $0x4] sm:$0xf] %vm230_vm3, %v378_v11  ;;  %v698_v5 = vshll.u32 %v5434_v55, 16  ;;  %v702_v33 = vshrl.u32 %v5434_v55, 16  ;;  %v5499_v53 = vrot.slane %v708_v27, 5 }
  0x6e   : > { %888 = vrot.lane.b32.xlu2 %v4080_v52, %s5008_s30  ;;  %v4826_v52 = vld [vmem:[%s6874_s1 + $0xc0] sm:$0xff]  ;;  %v991_v6 = vrot.slane %v990_v56, 4  ;;  %1135 = vst.msk [vmem:[#allocation2 + $0x4c] sm:$0xf] %vm230_vm3, %v986_v0 }
  0x6f   : > { %3592 = vmatpush.bf16.msra.mxu3 %v4826_v52  ;;  %v993_v52 = vshll.u32 %v5425_v44, 16  ;;  %v4035_v56 = vld [vmem:[%s5091_s29 + $0x80] sm:$0xf] }
  0x70   : > { %3508 = vmatpush.bf16.msra.mxu1 %v4812_v50  ;;  %v399_v50 = vshrl.u32 %v348_v60, 16 }
  0x71   : > { %v5442_v61 = vrot.slane %v993_v52, 5 }
  0x72   : > { %890 = vrot.lane.b32.xlu0 %v4081_v2, %s5008_s30  ;;  %v4802_v2 = vld [vmem:[%s6874_s1] sm:$0xff]  ;;  %v401_v11 = vrot.slane %v399_v50, 4 }
  0x73   : > { %296 = vrot.lane.b32.xlu1 %v4031_v14, %s5008_s30  ;;  %3469 = vmatpush.bf16.msra.mxu0 %v4802_v2  ;;  %v4082_v14 = vld [vmem:[%s5091_s29 + $0x118] sm:$0xf]  ;;  %v395_v2 = vshll.u32 %v348_v60, 16  ;;  %v4093_v60 = vld [vmem:[%s5091_s29 + $0xb4] sm:$0xf] }
  0x74   : > { %v877_v38 = vpop.permute.xlu2 %876  ;;  %3509 = vmatpush.bf16.msra.mxu1 %v4811_v15  ;;  %v996_v15 = vsel %vm5113_vm2, %v991_v6, %v5442_v61  ;;  %v4036_v6 = vld [vmem:[%s5091_s29 + $0x84] sm:$0xf] }
  0x75   : > { %922 = vst.msk [vmem:[#allocation2 + $0x48] sm:$0xf] %vm328_vm4, %v877_v38  ;;  %v4034_v38 = vld [vmem:[%s5091_s29 + $0x7c] sm:$0xf]  ;;  %v397_v10 = vrot.slane %v395_v2, 5 }
  0x76   : > { %298 = vrot.lane.b32.xlu2 %v4032_v22, %s5008_s30  ;;  %v4050_v22 = vld [vmem:[%s5091_s29 + $0x7c] sm:$0xf]  ;;  %1136 = vst.msk [vmem:[#allocation2 + $0x6c] sm:$0xf] %vm230_vm3, %v996_v15  ;;  %v218_v2 = vld [vmem:[%s5091_s29 + $0x10] sm:$0xf] }
  0x77   : > { %v692_v25 = vshrl.u32 %v4050_v22, 16  ;;  %v688_v35 = vshll.u32 %v4050_v22, 16  ;;  %v402_v20 = vor.u32 %v401_v11, %v397_v10  ;;  %v405_v22 = vshll.u32 %v5462_v16, 16  ;;  %235 = vst.msk [vmem:[#allocation2 + $0x80] sm:$0xf] %vm230_vm3, %v218_v2 }
  0x78   : > { %3510 = vmatpush.bf16.msra.mxu1 %v4810_v26  ;;  %v5468_v26 = vrot.slane %v698_v5, 5  ;;  %v4121_v2 = vld [vmem:[%s5091_s29 + $0x130] sm:$0x1] }
  0x79   : > { %v690_v51 = vrot.slane %v688_v35, 5  ;;  %v5475_v31 = vrot.slane %v405_v22, 5  ;;  %v409_v22 = vshrl.u32 %v5462_v16, 16 }
  0x7a   : > { %1346 = vrot.lane.b32.xlu0 %v1259_v42, %s5008_s30  ;;  %v1274_v42 = vrot.slane %v1273_v30, 4  ;;  %v403_v30 = vrot.slane %v402_v20, 4 }
  0x7b   : > { %1348 = vrot.lane.b32.xlu1 %v1269_v43, %s5008_s30  ;;  %v694_v43 = vrot.slane %v692_v25, 4  ;;  %v1292_v25 = vrot.slane %v1290_v3, 4 }
  0x7c   : > { %v1279_v19 = vsel %vm5113_vm2, %v1274_v42, %v5397_v18  ;;  %v712_v42 = vshrl.u32 %v4052_v28, 16 }
  0x7d   : > { %v695_v59 = vor.u32 %v694_v43, %v690_v51  ;;  %v1293_v21 = vor.u32 %v1292_v25, %v5436_v58  ;;  %v5493_v43 = vld [vmem:[%s5091_s29 + $0x88] sm:$0xf] }
  0x7e   : > { %758 = vrot.lane.b32.xlu2 %v671_v1, %s5008_s30  ;;  %v391_v1 = vrot.slane %v389_v46, 4  ;;  %v4060_v46 = vld [vmem:[%s5091_s29 + $0xb0] sm:$0xf]  ;;  %v714_v55 = vrot.slane %v712_v42, 4  ;;  %v718_v57 = vshll.u32 %v5493_v43, 16 }
  0x7f   : > { %v1294_v52 = vrot.slane %v1293_v21, 4  ;;  %827 = vst.msk [vmem:[#allocation2 + $0x88] sm:$0xf] %vm230_vm3, %v4060_v46 }
  0x80   : > { %v1331_v17 = vpop.permute.xlu2 %1330  ;;  %v392_v9 = vor.u32 %v391_v1, %v5378_v4  ;;  %v715_v11 = vor.u32 %v714_v55, %v5499_v53  ;;  %v5525_v20 = vrot.slane %v718_v57, 5 }
  0x81   : > { %1378 = vst.msk [vmem:[#allocation2 + $0xc] sm:$0xf] %vm328_vm4, %v1331_v17  ;;  %v1299_v15 = vsel %vm5113_vm2, %v1294_v52, %v1298_v48 }
  0x82   : > { %760 = vrot.lane.b32.xlu0 %v681_v13, %s5008_s30  ;;  %v691_v13 = vsel %vm5113_vm2, %v686_v54, %v690_v51  ;;  %v393_v18 = vrot.slane %v392_v9, 4  ;;  %v997_v51 = vshrl.u32 %v5425_v44, 16  ;;  %v5503_v54 = vld [vmem:[%s5091_s29 + $0x128] sm:$0xf]  ;;  %v1007_v9 = vshrl.u32 %v4093_v60, 16 }
  0x83   : > { %892 = vrot.lane.b32.xlu1 %v4082_v14, %s5008_s30  ;;  %v696_v14 = vrot.slane %v695_v59, 4  ;;  %v1303_v59 = vor.u32 %v1302_v47, %v1298_v48  ;;  %v1306_v1 = vshll.u32 %v5503_v54, 16  ;;  %v411_v47 = vrot.slane %v409_v22, 4 }
  0x84   : > { %v999_v50 = vrot.slane %v997_v51, 4  ;;  %v1009_v24 = vrot.slane %v1007_v9, 4  ;;  %v1326_v22 = vshll.u32 %v4121_v2, 16 }
  0x85   : > { %v701_v34 = vsel %vm5113_vm2, %v696_v14, %v5468_v26  ;;  %v350_v14 = vld [vmem:[%s5091_s29 + $0x14] sm:$0xf]  ;;  %v5530_v25 = vrot.slane %v1306_v1, 5  ;;  %v412_v57 = vor.u32 %v411_v47, %v5475_v31  ;;  %v4095_v47 = vld [vmem:[%s5091_s29 + $0xbc] sm:$0xf] }
  0x86   : > { %894 = vrot.lane.b32.xlu2 %v4083_v29, %s5008_s30  ;;  %v398_v29 = vsel %vm5113_vm2, %v393_v18, %v397_v10  ;;  %v415_v28 = vshll.u32 %v350_v14, 16  ;;  %v419_v41 = vshrl.u32 %v350_v14, 16  ;;  %v4037_v14 = vld [vmem:[%s5091_s29 + $0x88] sm:$0xf] }
  0x87   : > { %547 = vst.msk [vmem:[#allocation2 + $0x44] sm:$0xf] %vm230_vm3, %v398_v29  ;;  %v716_v29 = vrot.slane %v715_v11, 4 }
  0x88   : > { %v1333_v45 = vpop.permute.xlu2 %1332  ;;  %v4739_v8 = vld [vmem:[#allocation2 + $0xc] sm:$0xf]  ;;  %v417_v37 = vrot.slane %v415_v28, 5  ;;  %v421_v52 = vrot.slane %v419_v41, 4 }
  0x89   : > { %1379 = vst.msk [vmem:[#allocation2 + $0x2c] sm:$0xf] %vm328_vm4, %v1333_v45  ;;  %v704_v45 = vrot.slane %v702_v33, 4  ;;  %v721_v55 = vsel %vm5113_vm2, %v716_v29, %v5525_v20 }
  0x8a   : > { %300 = vrot.lane.b32.xlu0 %v4033_v7, %s5008_s30 }
  0x8b   : > { %302 = vrot.lane.b32.xlu1 %v4034_v38, %s5008_s30  ;;  %v408_v38 = vsel %vm5113_vm2, %v403_v30, %v5475_v31  ;;  %v4120_v30 = vld [vmem:[%s5091_s29 + $0x12c] sm:$0xf] }
  0x8c   : > { %v873_v62 = vpop.permute.xlu0 %872  ;;  %548 = vst.msk [vmem:[#allocation2 + $0x64] sm:$0xf] %vm230_vm3, %v408_v38  ;;  %v1316_v46 = vshll.u32 %v4120_v30, 16 }
  0x8d   : > { %v281_v63 = vpop.permute.xlu1 %280  ;;  %920 = vst.msk [vmem:[#allocation2 + $0x8] sm:$0xf] %vm328_vm4, %v873_v62 }
  0x8e   : > { %329 = vst.msk [vmem:[#allocation2] sm:$0xf] %vm328_vm4, %v281_v63  ;;  %1350 = vrot.lane.b32.xlu2 %v1279_v19, %s5008_s30  ;;  %v705_v19 = vor.u32 %v704_v45, %v5468_v26  ;;  %v5533_v26 = vld [vmem:[%s5091_s29 + $0xb8] sm:$0xf]  ;;  %v5573_v31 = vrot.slane %v1316_v46, 5 }
  0x8f   : > { %v1013_v33 = vshll.u32 %v5533_v26, 16  ;;  %v221_v46 = vld [vmem:[%s5091_s29 + $0x1c] sm:$0xf] }
  0x90   : > { %v4233_v4 = vld [vmem:[#allocation2 + $0x28] sm:$0xf0]  ;;  %v287_v17 = vpop.permute.xlu2 %286  ;;  %238 = vst.msk [vmem:[#allocation2 + $0xe0] sm:$0xf] %vm230_vm3, %v221_v46 }
  0x91   : > { %v4236_v23 = vor.u32 %v4739_v8, %v4233_v4  ;;  %332 = vst.msk [vmem:[#allocation2 + $0x60] sm:$0xf] %vm328_vm4, %v287_v17  ;;  %v1003_v8 = vshll.u32 %v4093_v60, 16  ;;  %v706_v4 = vrot.slane %v705_v19, 4  ;;  %v1304_v17 = vrot.slane %v1303_v59, 4 }
  0x92   : > { %1352 = vrot.lane.b32.xlu0 %v1289_v12, %s5008_s30  ;;  %v1000_v12 = vor.u32 %v999_v50, %v5442_v61  ;;  %v5549_v27 = vrot.slane %v1013_v33, 5  ;;  %v4054_v59 = vld [vmem:[%s5091_s29 + $0x8c] sm:$0xf]  ;;  %v722_v60 = vshrl.u32 %v5493_v43, 16  ;;  %v4086_v50 = vld [vmem:[%s5091_s29 + $0x128] sm:$0xf] }
  0x93   : > { %762 = vrot.lane.b32.xlu1 %v691_v13, %s5008_s30  ;;  %3593 = vmatmul.bf16.vlgmr.msra.gmra.mxu3 %v4236_v23  ;;  %v219_v13 = vld [vmem:[%s5091_s29 + $0x14] sm:$0xf]  ;;  %v1005_v18 = vrot.slane %v1003_v8, 5  ;;  %v728_v43 = vshll.u32 %v4054_v59, 16  ;;  %v732_v9 = vshrl.u32 %v4054_v59, 16  ;;  %v1328_v33 = vrot.slane %v1326_v22, 5 }
  0x94   : > { %v875_v7 = vpop.permute.xlu0 %874  ;;  %v4231_v58 = vld [vmem:[#allocation2 + $0x8] sm:$0xf]  ;;  %v1001_v61 = vrot.slane %v1000_v12, 4  ;;  %236 = vst.msk [vmem:[#allocation2 + $0xa0] sm:$0xf] %vm230_vm3, %v219_v13  ;;  %v724_v28 = vrot.slane %v722_v60, 4 }
  0x95   : > { %v283_v35 = vpop.permute.xlu1 %282  ;;  %921 = vst.msk [vmem:[#allocation2 + $0x28] sm:$0xf] %vm328_vm4, %v875_v7  ;;  %v4223_v44 = vld [vmem:[#allocation2] sm:$0xf]  ;;  %v1010_v32 = vor.u32 %v1009_v24, %v1005_v18  ;;  %v1309_v7 = vsel %vm5113_vm2, %v1304_v17, %v5530_v25  ;;  %v4087_v13 = vld [vmem:[%s5091_s29 + $0x12c] sm:$0xf] }
  0x96   : > { %330 = vst.msk [vmem:[#allocation2 + $0x20] sm:$0xf] %vm328_vm4, %v283_v35  ;;  %764 = vrot.lane.b32.xlu2 %v701_v34, %s5008_s30  ;;  %v1006_v16 = vsel %vm5113_vm2, %v1001_v61, %v1005_v18  ;;  %v1310_v34 = vshrl.u32 %v5503_v54, 16  ;;  %v5547_v35 = vld [vmem:[%s5091_s29 + $0x18] sm:$0xf]  ;;  %v711_v54 = vsel %vm5113_vm2, %v706_v4, %v5499_v53  ;;  %v413_v53 = vrot.slane %v412_v57, 4 }
  0x97   : > { %1137 = vst.msk [vmem:[#allocation2 + $0x8c] sm:$0xf] %vm230_vm3, %v1006_v16  ;;  %v1011_v21 = vrot.slane %v1010_v32, 4  ;;  %v425_v42 = vshll.u32 %v5547_v35, 16  ;;  %v4062_v4 = vld [vmem:[%s5091_s29 + $0xb8] sm:$0xf] }
  0x98   : > { %v747_v49 = vpop.permute.xlu2 %746  ;;  %v1312_v19 = vrot.slane %v1310_v34, 4  ;;  %v4750_v1 = vld [vmem:[#allocation2 + $0x5c] sm:$0xf0]  ;;  %v1017_v61 = vshrl.u32 %v5533_v26, 16  ;;  %v220_v24 = vld [vmem:[%s5091_s29 + $0x18] sm:$0xf] }
  0x99   : > { %792 = vst.msk [vmem:[#allocation2 + $0x44] sm:$0xf] %vm328_vm4, %v747_v49  ;;  %v1320_v49 = vshrl.u32 %v4120_v30, 16  ;;  %v1016_v51 = vsel %vm5113_vm2, %v1011_v21, %v5549_v27  ;;  %v734_v29 = vrot.slane %v732_v9, 4  ;;  %v4063_v16 = vld [vmem:[%s5091_s29 + $0xbc] sm:$0xf] }
  0x9a   : > { %896 = vrot.lane.b32.xlu0 %v4084_v39, %s5008_s30  ;;  %1138 = vst.msk [vmem:[#allocation2 + $0xac] sm:$0xf] %vm230_vm3, %v1016_v51  ;;  %v1019_v34 = vrot.slane %v1017_v61, 4  ;;  %v5619_v51 = vld [vmem:[%s5091_s29 + $0xc0] sm:$0xf] }
  0x9b   : > { %898 = vrot.lane.b32.xlu1 %v4085_v40, %s5008_s30  ;;  %829 = vst.msk [vmem:[#allocation2 + $0xc8] sm:$0xf] %vm230_vm3, %v4062_v4 }
  0x9c   : > { %v743_v62 = vpop.permute.xlu0 %742  ;;  %v4743_v0 = vld [vmem:[#allocation2 + $0x24] sm:$0xf0]  ;;  %237 = vst.msk [vmem:[#allocation2 + $0xc0] sm:$0xf] %vm230_vm3, %v220_v24  ;;  %v4171_v24 = vld [vmem:[%s5091_s29 + $0xf8] sm:$0xf] }
  0x9d   : > { %v745_v63 = vpop.permute.xlu1 %744  ;;  %790 = vst.msk [vmem:[#allocation2 + $0x4] sm:$0xf] %vm328_vm4, %v743_v62  ;;  %v4742_v3 = vld [vmem:[#allocation2 + $0x1c] sm:$0xf0]  ;;  %v4232_v5 = vor.u32 %v4743_v0, %v4231_v58  ;;  %v5566_v58 = vrot.slane %v425_v42, 5 }
  0x9e   : > { %791 = vst.msk [vmem:[#allocation2 + $0x24] sm:$0xf] %vm328_vm4, %v745_v63  ;;  %v4224_v10 = vor.u32 %v4742_v3, %v4223_v44  ;;  %304 = vrot.lane.b32.xlu2 %v4035_v56, %s5008_s30  ;;  %v422_v44 = vor.u32 %v421_v52, %v417_v37  ;;  %v4263_v62 = vld [vmem:[#allocation2 + $0x48] sm:$0xf]  ;;  %v1322_v63 = vrot.slane %v1320_v49, 4  ;;  %v418_v3 = vsel %vm5113_vm2, %v413_v53, %v417_v37 }
  0x9f   : > { %3552 = vmatmul.bf16.vlgmr.msra.gmra.mxu2 %v4232_v5  ;;  %549 = vst.msk [vmem:[#allocation2 + $0x84] sm:$0xf] %vm230_vm3, %v418_v3  ;;  %v429_v37 = vshrl.u32 %v5547_v35, 16  ;;  %v1023_v52 = vshll.u32 %v4095_v47, 16  ;;  %v4138_v3 = vld [vmem:[%s5091_s29 + $0x58] sm:$0xf] }
  0xa0   : > { %3470 = vmatmul.bf16.vlgmr.msra.gmra.mxu0 %v4224_v10  ;;  %v883_v23 = vpop.permute.xlu2 %882  ;;  %v423_v0 = vrot.slane %v422_v44, 4  ;;  %v1323_v18 = vor.u32 %v1322_v63, %v5573_v31  ;;  %830 = vst.msk [vmem:[#allocation2 + $0xe8] sm:$0xf] %vm230_vm3, %v4063_v16  ;;  %v4746_v2 = vld [vmem:[#allocation2 + $0x44] sm:$0xf] }
  0xa1   : > { %925 = vst.msk [vmem:[#allocation2 + $0xa8] sm:$0xf] %vm328_vm4, %v883_v23  ;;  %v4055_v23 = vld [vmem:[%s5091_s29 + $0x90] sm:$0x1]  ;;  %v431_v44 = vrot.slane %v429_v37, 4  ;;  %v1025_v60 = vrot.slane %v1023_v52, 5 }
  0xa2   : > { %306 = vrot.lane.b32.xlu0 %v4036_v6, %s5008_s30  ;;  %v428_v10 = vsel %vm5113_vm2, %v423_v0, %v5566_v58  ;;  %v1324_v26 = vrot.slane %v1323_v18, 4  ;;  %v352_v0 = vld [vmem:[%s5091_s29 + $0x1c] sm:$0xf] }
  0xa3   : > { %1354 = vrot.lane.b32.xlu1 %v1299_v15, %s5008_s30  ;;  %v1313_v15 = vor.u32 %v1312_v19, %v5530_v25  ;;  %550 = vst.msk [vmem:[#allocation2 + $0xa4] sm:$0xf] %vm230_vm3, %v428_v10  ;;  %v5595_v25 = vrot.slane %v728_v43, 5  ;;  %v439_v43 = vshrl.u32 %v352_v0, 16 }
  0xa4   : > { %v879_v38 = vpop.permute.xlu0 %878  ;;  %v4738_v40 = vld [vmem:[#allocation2 + $0x4] sm:$0xf] }
  0xa5   : > { %v285_v39 = vpop.permute.xlu1 %284  ;;  %923 = vst.msk [vmem:[#allocation2 + $0x68] sm:$0xf] %vm328_vm4, %v879_v38  ;;  %v4225_v45 = vld [vmem:[#allocation2 + $0x20] sm:$0xf0]  ;;  %v1314_v32 = vrot.slane %v1313_v15, 4  ;;  %v735_v42 = vor.u32 %v734_v29, %v5595_v25 }
  0xa6   : > { %331 = vst.msk [vmem:[#allocation2 + $0x40] sm:$0xf] %vm328_vm4, %v285_v39  ;;  %v4228_v48 = vor.u32 %v4738_v40, %v4225_v45  ;;  %1356 = vrot.lane.b32.xlu2 %v1309_v7, %s5008_s30  ;;  %v738_v7 = vshll.u32 %v4055_v23, 16  ;;  %v4038_v38 = vld [vmem:[%s5091_s29 + $0x8c] sm:$0xf]  ;;  %v725_v39 = vor.u32 %v724_v28, %v5525_v20  ;;  %v1753_v28 = vshrl.u32 %v4138_v3, 16 }
  0xa7   : > { %v5609_v45 = vld [vmem:[%s5091_s29 + $0xfc] sm:$0xf]  ;;  %v1319_v35 = vsel %vm5113_vm2, %v1314_v32, %v5573_v31  ;;  %v736_v19 = vrot.slane %v735_v42, 4  ;;  %v4064_v32 = vld [vmem:[%s5091_s29 + $0xc0] sm:$0xf] }
  0xa8   : > { %3511 = vmatmul.bf16.vlgmr.msra.gmra.mxu1 %v4228_v48  ;;  %v1339_v56 = vpop.permute.xlu2 %1338  ;;  %v1020_v48 = vor.u32 %v1019_v34, %v5549_v27  ;;  %v1329_v27 = vsel %vm5113_vm2, %v1324_v26, %v1328_v33  ;;  %v726_v57 = vrot.slane %v725_v39, 4  ;;  %v740_v59 = vrot.slane %v738_v7, 5  ;;  %v4204_v26 = vld [vmem:[%s5091_s29 + $0xf8] sm:$0xf]  ;;  %v4206_v33 = vld [vmem:[%s5091_s29 + $0x100] sm:$0xf] }
  0xa9   : > { %1382 = vst.msk [vmem:[#allocation2 + $0x8c] sm:$0xf] %vm328_vm4, %v1339_v56  ;;  %v2348_v31 = vshll.u32 %v5609_v45, 16  ;;  %v2352_v9 = vshrl.u32 %v5609_v45, 16  ;;  %v2339_v37 = vshrl.u32 %v4204_v26, 16 }
  0xaa   : > { %766 = vrot.lane.b32.xlu0 %v711_v54, %s5008_s30  ;;  %v1027_v54 = vshrl.u32 %v4095_v47, 16  ;;  %v1021_v56 = vrot.slane %v1020_v48, 4  ;;  %v741_v61 = vsel %vm5113_vm2, %v736_v19, %v740_v59  ;;  %v1755_v47 = vrot.slane %v1753_v28, 4  ;;  %831 = vst.msk [vmem:[#allocation2 + $0x108] sm:$0xf] %vm230_vm3, %v4064_v32 }
  0xab   : > { %768 = vrot.lane.b32.xlu1 %v721_v55, %s5008_s30  ;;  %v1033_v55 = vshll.u32 %v5619_v51, 16  ;;  %v5664_v39 = vrot.slane %v2348_v31, 5  ;;  %v2341_v45 = vrot.slane %v2339_v37, 4  ;;  %v4122_v19 = vld [vmem:[%s5091_s29 + $0x58] sm:$0xf] }
  0xac   : > { %v1335_v5 = vpop.permute.xlu0 %1334  ;;  %v4751_v8 = vld [vmem:[#allocation2 + $0x64] sm:$0xf0]  ;;  %v4123_v59 = vld [vmem:[%s5091_s29 + $0x5c] sm:$0xf] }
  0xad   : > { %v1337_v6 = vpop.permute.xlu1 %1336  ;;  %1380 = vst.msk [vmem:[#allocation2 + $0x4c] sm:$0xf] %vm328_vm4, %v1335_v5  ;;  %v4255_v11 = vld [vmem:[#allocation2 + $0x40] sm:$0xf]  ;;  %v4264_v12 = vor.u32 %v4751_v8, %v4263_v62  ;;  %v1029_v62 = vrot.slane %v1027_v54, 4  ;;  %v5629_v63 = vrot.slane %v1033_v55, 5 }
  0xae   : > { %1381 = vst.msk [vmem:[#allocation2 + $0x6c] sm:$0xf] %vm328_vm4, %v1337_v6  ;;  %v4256_v17 = vor.u32 %v4750_v1, %v4255_v11  ;;  %900 = vrot.lane.b32.xlu2 %v4086_v50, %s5008_s30  ;;  %v432_v1 = vor.u32 %v431_v44, %v5566_v58  ;;  %v4759_v50 = vld [vmem:[#allocation2 + $0xa4] sm:$0xf0]  ;;  %v1026_v6 = vsel %vm5113_vm2, %v1021_v56, %v1025_v60  ;;  %v435_v8 = vshll.u32 %v352_v0, 16 }
  0xaf   : > { %3556 = vmatmul.bf16.gmra.mxu2 %v4264_v12  ;;  %v1030_v5 = vor.u32 %v1029_v62, %v1025_v60  ;;  %v731_v58 = vsel %vm5113_vm2, %v726_v57, %v5595_v25  ;;  %1139 = vst.msk [vmem:[#allocation2 + $0xcc] sm:$0xf] %vm230_vm3, %v1026_v6  ;;  %v5644_v11 = vld [vmem:[%s5091_s29 + $0x20] sm:$0xf]  ;;  %v1756_v25 = vshll.u32 %v4138_v3, 16  ;;  %v2358_v57 = vshll.u32 %v4206_v33, 16 }
  0xb0   : > { %3474 = vmatmul.bf16.gmra.mxu0 %v4256_v17  ;;  %v753_v30 = vpop.permute.xlu2 %752  ;;  %v433_v10 = vrot.slane %v432_v1, 4  ;;  %v437_v4 = vrot.slane %v435_v8, 5  ;;  %v441_v17 = vrot.slane %v439_v43, 4  ;;  %v445_v18 = vshll.u32 %v5644_v11, 16  ;;  %v223_v1 = vld [vmem:[%s5091_s29 + $0x24] sm:$0xf] }
  0xb1   : > { %795 = vst.msk [vmem:[#allocation2 + $0xa4] sm:$0xf] %vm328_vm4, %v753_v30  ;;  %v1031_v15 = vrot.slane %v1030_v5, 4  ;;  %v1758_v48 = vrot.slane %v1756_v25, 5  ;;  %v2362_v56 = vshrl.u32 %v4206_v33, 16  ;;  %v449_v8 = vshrl.u32 %v5644_v11, 16 }
  0xb2   : > { %902 = vrot.lane.b32.xlu0 %v4087_v13, %s5008_s30  ;;  %v438_v16 = vsel %vm5113_vm2, %v433_v10, %v437_v4  ;;  %v442_v34 = vor.u32 %v441_v17, %v437_v4  ;;  %v5662_v7 = vrot.slane %v445_v18, 5  ;;  %240 = vst.msk [vmem:[#allocation2 + $0x120] sm:$0xf] %vm230_vm3, %v223_v1  ;;  %v222_v5 = vld [vmem:[%s5091_s29 + $0x20] sm:$0xf] }
  0xb3   : > { %308 = vrot.lane.b32.xlu1 %v4037_v14, %s5008_s30  ;;  %v1036_v30 = vsel %vm5113_vm2, %v1031_v15, %v5629_v63  ;;  %551 = vst.msk [vmem:[#allocation2 + $0xc4] sm:$0xf] %vm230_vm3, %v438_v16  ;;  %v1759_v0 = vor.u32 %v1758_v48, %v1755_v47  ;;  %v4755_v15 = vld [vmem:[#allocation2 + $0x8c] sm:$0xf]  ;;  %v354_v25 = vld [vmem:[%s5091_s29 + $0x24] sm:$0xf] }
  0xb4   : > { %v749_v40 = vpop.permute.xlu0 %748  ;;  %v4747_v41 = vld [vmem:[#allocation2 + $0x4c] sm:$0xf]  ;;  %1140 = vst.msk [vmem:[#allocation2 + $0xec] sm:$0xf] %vm230_vm3, %v1036_v30  ;;  %v443_v42 = vrot.slane %v442_v34, 4  ;;  %v459_v48 = vshrl.u32 %v354_v25, 16 }
  0xb5   : > { %v881_v21 = vpop.permute.xlu1 %880  ;;  %793 = vst.msk [vmem:[#allocation2 + $0x64] sm:$0xf] %vm328_vm4, %v749_v40  ;;  %v4265_v49 = vld [vmem:[#allocation2 + $0x68] sm:$0xf0]  ;;  %v4139_v40 = vld [vmem:[%s5091_s29 + $0x5c] sm:$0xf] }
  0xb6   : > { %924 = vst.msk [vmem:[#allocation2 + $0x88] sm:$0xf] %vm328_vm4, %v881_v21  ;;  %v4268_v20 = vor.u32 %v4747_v41, %v4265_v49  ;;  %310 = vrot.lane.b32.xlu2 %v4038_v38, %s5008_s30  ;;  %v2342_v38 = vshll.u32 %v4204_v26, 16  ;;  %v2354_v41 = vrot.slane %v2352_v9, 4  ;;  %v4065_v49 = vld [vmem:[%s5091_s29 + $0xc4] sm:$0xf] }
  0xb7   : > { %832 = vst.msk [vmem:[#allocation2 + $0x128] sm:$0xf] %vm230_vm3, %v4065_v49  ;;  %v1762_v60 = vshll.u32 %v4139_v40, 16  ;;  %v1766_v62 = vshrl.u32 %v4139_v40, 16  ;;  %v5694_v9 = vrot.slane %v2358_v57, 5 }
  0xb8   : > { %3597 = vmatmul.bf16.gmra.mxu3 %v4268_v20  ;;  %v293_v53 = vpop.permute.xlu2 %292  ;;  %v2344_v46 = vrot.slane %v2342_v38, 5  ;;  %v448_v20 = vsel %vm5113_vm2, %v443_v42, %v5662_v7  ;;  %239 = vst.msk [vmem:[#allocation2 + $0x100] sm:$0xf] %vm230_vm3, %v222_v5  ;;  %v4289_v11 = vld [vmem:[#allocation2 + $0xa0] sm:$0xf0]  ;;  %v455_v42 = vshll.u32 %v354_v25, 16 }
  0xb9   : > { %335 = vst.msk [vmem:[#allocation2 + $0xc0] sm:$0xf] %vm328_vm4, %v293_v53  ;;  %v2355_v53 = vor.u32 %v2354_v41, %v5664_v39  ;;  %v1768_v10 = vrot.slane %v1766_v62, 4  ;;  %v4173_v5 = vld [vmem:[%s5091_s29 + $0x100] sm:$0xf] }
  0xba   : > { %1358 = vrot.lane.b32.xlu0 %v1319_v35, %s5008_s30  ;;  %v4172_v35 = vld [vmem:[%s5091_s29 + $0xfc] sm:$0xf]  ;;  %v2345_v52 = vor.u32 %v2344_v46, %v2341_v45  ;;  %552 = vst.msk [vmem:[#allocation2 + $0xe4] sm:$0xf] %vm230_vm3, %v448_v20  ;;  %v457_v20 = vrot.slane %v455_v42, 5 }
  0xbb   : > { %1360 = vrot.lane.b32.xlu1 %v1329_v27, %s5008_s30  ;;  %v2356_v43 = vrot.slane %v2355_v53, 4  ;;  %v461_v53 = vrot.slane %v459_v48, 4  ;;  %v224_v48 = vld [vmem:[%s5091_s29 + $0x28] sm:$0xf] }
  0xbc   : > { %v289_v12 = vpop.permute.xlu0 %288  ;;  %v4257_v14 = vld [vmem:[#allocation2 + $0x60] sm:$0xf0]  ;;  %v2346_v3 = vrot.slane %v2345_v52, 4  ;;  %241 = vst.msk [vmem:[#allocation2 + $0x140] sm:$0xf] %vm230_vm3, %v224_v48 }
  0xbd   : > { %v291_v13 = vpop.permute.xlu1 %290  ;;  %333 = vst.msk [vmem:[#allocation2 + $0x80] sm:$0xf] %vm328_vm4, %v289_v12  ;;  %v4260_v22 = vor.u32 %v4746_v2, %v4257_v14  ;;  %v4295_v23 = vld [vmem:[#allocation2 + $0x88] sm:$0xf]  ;;  %v5687_v2 = vld [vmem:[%s5091_s29 + $0x60] sm:$0xf]  ;;  %v2361_v32 = vsel %vm5113_vm2, %v2356_v43, %v5694_v9  ;;  %v462_v43 = vor.u32 %v461_v53, %v457_v20 }
  0xbe   : > { %334 = vst.msk [vmem:[#allocation2 + $0xa0] sm:$0xf] %vm328_vm4, %v291_v13  ;;  %v4296_v29 = vor.u32 %v4759_v50, %v4295_v23  ;;  %770 = vrot.lane.b32.xlu2 %v731_v58, %s5008_s30  ;;  %v1037_v50 = vshrl.u32 %v5619_v51, 16  ;;  %v1764_v58 = vrot.slane %v1762_v60, 5  ;;  %v1760_v51 = vrot.slane %v1759_v0, 4 }
  0xbf   : > { %3515 = vmatmul.bf16.gmra.mxu1 %v4260_v22  ;;  %v2364_v12 = vrot.slane %v2362_v56, 4  ;;  %v1772_v13 = vshll.u32 %v5687_v2, 16  ;;  %v4097_v14 = vld [vmem:[%s5091_s29 + $0xc4] sm:$0xf]  ;;  %v2351_v4 = vsel %vm5113_vm2, %v2346_v3, %v5664_v39  ;;  %v5714_v39 = vld [vmem:[%s5091_s29 + $0xc8] sm:$0xf] }
  0xc0   : > { %3560 = vmatmul.bf16.gmra.mxu2 %v4296_v29  ;;  %v1345_v21 = vpop.permute.xlu2 %1344  ;;  %v1769_v17 = vor.u32 %v1768_v10, %v1764_v58  ;;  %v1039_v18 = vrot.slane %v1037_v50, 4  ;;  %v1043_v22 = vshll.u32 %v4097_v14, 16  ;;  %v1047_v28 = vshrl.u32 %v4097_v14, 16  ;;  %v4857_v56 = vld [vmem:[%s6874_s1 + $0x1b8] sm:$0xff]  ;;  %v4209_v53 = vld [vmem:[%s5091_s29 + $0x10c] sm:$0xf] }
  0xc1   : > { %1385 = vst.msk [vmem:[#allocation2 + $0xec] sm:$0xf] %vm328_vm4, %v1345_v21  ;;  %v451_v29 = vrot.slane %v449_v8, 4  ;;  %v1765_v40 = vsel %vm5113_vm2, %v1760_v51, %v1764_v58  ;;  %v4207_v21 = vld [vmem:[%s5091_s29 + $0x104] sm:$0xf]  ;;  %v2365_v41 = vor.u32 %v2364_v12, %v5694_v9  ;;  %v5720_v46 = vrot.slane %v1772_v13, 5  ;;  %3708 = vmatpush.bf16.msrb.mxu2 %v4857_v56 }
  0xc2   : > { %772 = vrot.lane.b32.xlu0 %v741_v61, %s5008_s30  ;;  %v1040_v26 = vor.u32 %v1039_v18, %v5629_v63  ;;  %v1770_v34 = vrot.slane %v1769_v17, 4  ;;  %v1045_v37 = vrot.slane %v1043_v22, 5  ;;  %v1049_v49 = vrot.slane %v1047_v28, 4  ;;  %v4067_v13 = vld [vmem:[%s5091_s29 + $0xcc] sm:$0xf]  ;;  %v4841_v14 = vld [vmem:[%s6874_s1 + $0x138] sm:$0xff] }
  0xc3   : > { %2044 = vrot.lane.b32.xlu1 %v4171_v24, %s5008_s30  ;;  %v452_v38 = vor.u32 %v451_v29, %v5662_v7  ;;  %v5723_v7 = vld [vmem:[%s5091_s29 + $0x28] sm:$0xf]  ;;  %v1053_v52 = vshll.u32 %v5714_v39, 16  ;;  %v5744_v1 = vrot.slane %v2365_v41, 4  ;;  %v1776_v8 = vshrl.u32 %v5687_v2, 16  ;;  %v4849_v22 = vld [vmem:[%s6874_s1 + $0x178] sm:$0xff]  ;;  %3626 = vmatpush.bf16.msrb.mxu0 %v4841_v14 }
  0xc4   : > { %v1341_v54 = vpop.permute.xlu0 %1340  ;;  %v4287_v27 = vld [vmem:[#allocation2 + $0x80] sm:$0xf]  ;;  %v1041_v63 = vrot.slane %v1040_v26, 4  ;;  %v1050_v57 = vor.u32 %v1049_v49, %v1045_v37  ;;  %v465_v60 = vshll.u32 %v5723_v7, 16  ;;  %v463_v2 = vrot.slane %v462_v43, 4  ;;  %3667 = vmatpush.bf16.msrb.mxu1 %v4849_v22 }
  0xc5   : > { %v751_v55 = vpop.permute.xlu1 %750  ;;  %1383 = vst.msk [vmem:[#allocation2 + $0xac] sm:$0xf] %vm328_vm4, %v1341_v54  ;;  %v4758_v44 = vld [vmem:[#allocation2 + $0x9c] sm:$0xf0]  ;;  %v453_v47 = vrot.slane %v452_v38, 4  ;;  %v2368_v54 = vshll.u32 %v4207_v21, 16 }
  0xc6   : > { %794 = vst.msk [vmem:[#allocation2 + $0x84] sm:$0xf] %vm328_vm4, %v751_v55  ;;  %v4288_v31 = vor.u32 %v4758_v44, %v4287_v27  ;;  %2046 = vrot.lane.b32.xlu2 %v4172_v35, %s5008_s30  ;;  %v1046_v35 = vsel %vm5113_vm2, %v1041_v63, %v1045_v37  ;;  %v2372_v55 = vshrl.u32 %v4207_v21, 16  ;;  %v1775_v27 = vsel %vm5113_vm2, %v1770_v34, %v5720_v46  ;;  %v4141_v44 = vld [vmem:[%s5091_s29 + $0x64] sm:$0xf] }
  0xc7   : > { %1141 = vst.msk [vmem:[#allocation2 + $0x10c] sm:$0xf] %vm230_vm3, %v1046_v35  ;;  %v1051_v50 = vrot.slane %v1050_v57, 4  ;;  %v5751_v9 = vrot.slane %v465_v60, 5  ;;  %v1782_v10 = vshll.u32 %v4141_v44, 16  ;;  %v1786_v51 = vshrl.u32 %v4141_v44, 16 }
  0xc8   : > { %3478 = vmatmul.bf16.gmra.mxu0 %v4288_v31  ;;  %v889_v6 = vpop.permute.xlu2 %888  ;;  %834 = vst.msk [vmem:[#allocation2 + $0x168] sm:$0xf] %vm230_vm3, %v4067_v13  ;;  %v4066_v18 = vld [vmem:[%s5091_s29 + $0xc8] sm:$0xf]  ;;  %v1778_v28 = vrot.slane %v1776_v8, 4  ;;  %v2388_v43 = vshll.u32 %v4209_v53, 16 }
  0xc9   : > { %928 = vst.msk [vmem:[#allocation2 + $0x108] sm:$0xf] %vm328_vm4, %v889_v6  ;;  %v4174_v6 = vld [vmem:[%s5091_s29 + $0x104] sm:$0xf]  ;;  %v5780_v25 = vrot.slane %v1782_v10, 5  ;;  %v2392_v14 = vshrl.u32 %v4209_v53, 16 }
  0xca   : > { %1458 = vrot.lane.b32.xlu0 %v4122_v19, %s5008_s30  ;;  %v458_v19 = vsel %vm5113_vm2, %v453_v47, %v457_v20  ;;  %v5784_v29 = vld [vmem:[%s5091_s29 + $0x108] sm:$0xf]  ;;  %833 = vst.msk [vmem:[#allocation2 + $0x148] sm:$0xf] %vm230_vm3, %v4066_v18  ;;  %v4319_v37 = vld [vmem:[#allocation2 + $0xc0] sm:$0xf]  ;;  %v1779_v47 = vor.u32 %v1778_v28, %v5720_v46 }
  0xcb   : > { %1460 = vrot.lane.b32.xlu1 %v4123_v59, %s5008_s30  ;;  %v5741_v59 = vrot.slane %v1053_v52, 5  ;;  %553 = vst.msk [vmem:[#allocation2 + $0x104] sm:$0xf] %vm230_vm3, %v458_v19  ;;  %v4125_v41 = vld [vmem:[%s5091_s29 + $0x64] sm:$0xf] }
  0xcc   : > { %v885_v23 = vpop.permute.xlu0 %884  ;;  %v4297_v24 = vld [vmem:[#allocation2 + $0xa8] sm:$0xf0]  ;;  %v1780_v44 = vrot.slane %v1779_v47, 4  ;;  %v4068_v53 = vld [vmem:[%s5091_s29 + $0xd0] sm:$0xf] }
  0xcd   : > { %v887_v61 = vpop.permute.xlu1 %886  ;;  %926 = vst.msk [vmem:[#allocation2 + $0xc8] sm:$0xf] %vm328_vm4, %v885_v23  ;;  %v4754_v30 = vld [vmem:[#allocation2 + $0x84] sm:$0xf]  ;;  %v4300_v16 = vor.u32 %v4755_v15, %v4297_v24  ;;  %v1056_v12 = vsel %vm5113_vm2, %v1051_v50, %v5741_v59  ;;  %v2374_v15 = vrot.slane %v2372_v55, 4  ;;  %v468_v24 = vsel %vm5113_vm2, %v463_v2, %v5751_v9 }
  0xce   : > { %927 = vst.msk [vmem:[#allocation2 + $0xe8] sm:$0xf] %vm328_vm4, %v887_v61  ;;  %v4292_v33 = vor.u32 %v4754_v30, %v4289_v11  ;;  %2502 = vrot.lane.b32.xlu2 %v2351_v4, %s5008_s30  ;;  %v4865_v11 = vld [vmem:[%s6874_s1 + $0x1f8] sm:$0xff]  ;;  %v2370_v4 = vrot.slane %v2368_v54, 5  ;;  %v4329_v23 = vld [vmem:[#allocation2 + $0xe8] sm:$0xf0] }
  0xcf   : > { %3601 = vmatmul.bf16.gmra.mxu3 %v4300_v16  ;;  %1142 = vst.msk [vmem:[#allocation2 + $0x12c] sm:$0xf] %vm230_vm3, %v1056_v12  ;;  %v5772_v61 = vld [vmem:[%s5091_s29 + $0x68] sm:$0xf]  ;;  %v1788_v30 = vrot.slane %v1786_v51, 4  ;;  %v1057_v16 = vshrl.u32 %v5714_v39, 16 }
  0xd0   : > { %3519 = vmatmul.bf16.gmra.mxu1 %v4292_v33  ;;  %v299_v45 = vpop.permute.xlu2 %298  ;;  %3749 = vmatpush.bf16.msrb.mxu3 %v4865_v11  ;;  %554 = vst.msk [vmem:[#allocation2 + $0x124] sm:$0xf] %vm230_vm3, %v468_v24  ;;  %v2375_v26 = vor.u32 %v2374_v15, %v2370_v4  ;;  %v1792_v63 = vshll.u32 %v5772_v61, 16  ;;  %v2378_v39 = vshll.u32 %v5784_v29, 16  ;;  %v4099_v49 = vld [vmem:[%s5091_s29 + $0xcc] sm:$0xf] }
  0xd1   : > { %338 = vst.msk [vmem:[#allocation2 + $0x120] sm:$0xf] %vm328_vm4, %v299_v45  ;;  %v2371_v45 = vsel %vm5113_vm2, %v5744_v1, %v2370_v4  ;;  %v1789_v35 = vor.u32 %v1788_v30, %v5780_v25  ;;  %v1059_v52 = vrot.slane %v1057_v16, 4  ;;  %v1063_v54 = vshll.u32 %v4099_v49, 16  ;;  %v5831_v12 = vld [vmem:[%s5091_s29 + $0xd0] sm:$0xf] }
  0xd2   : > { %2504 = vrot.lane.b32.xlu0 %v2361_v32, %s5008_s30  ;;  %v4124_v32 = vld [vmem:[%s5091_s29 + $0x60] sm:$0xf]  ;;  %v2376_v20 = vrot.slane %v2375_v26, 4  ;;  %v5805_v57 = vrot.slane %v2378_v39, 5  ;;  %v1067_v56 = vshrl.u32 %v4099_v49, 16  ;;  %v5810_v19 = vrot.slane %v1792_v63, 5 }
  0xd3   : > { %1916 = vrot.lane.b32.xlu1 %v1765_v40, %s5008_s30  ;;  %v1060_v46 = vor.u32 %v1059_v52, %v5741_v59  ;;  %v1790_v60 = vrot.slane %v1789_v35, 4  ;;  %v4856_v59 = vld [vmem:[%s6874_s1 + $0x1b0] sm:$0xff]  ;;  %v356_v13 = vld [vmem:[%s5091_s29 + $0x2c] sm:$0xf]  ;;  %v1073_v15 = vshll.u32 %v5831_v12, 16 }
  0xd4   : > { %v295_v62 = vpop.permute.xlu0 %294  ;;  %v4327_v0 = vld [vmem:[#allocation2 + $0xc8] sm:$0xf]  ;;  %3709 = vmatpush.bf16.msrb.mxu2 %v4856_v59  ;;  %v1069_v10 = vrot.slane %v1067_v56, 4  ;;  %v5840_v4 = vld [vmem:[%s5091_s29 + $0x30] sm:$0xf]  ;;  %v475_v22 = vshll.u32 %v356_v13, 16 }
  0xd5   : > { %v1343_v31 = vpop.permute.xlu1 %1342  ;;  %336 = vst.msk [vmem:[#allocation2 + $0xe0] sm:$0xf] %vm328_vm4, %v295_v62  ;;  %v4767_v3 = vld [vmem:[#allocation2 + $0xe4] sm:$0xf0]  ;;  %v2381_v62 = vsel %vm5113_vm2, %v2376_v20, %v5805_v57  ;;  %v1795_v2 = vsel %vm5113_vm2, %v1790_v60, %v5810_v19  ;;  %v4143_v18 = vld [vmem:[%s5091_s29 + $0x6c] sm:$0xf] }
  0xd6   : > { %1384 = vst.msk [vmem:[#allocation2 + $0xcc] sm:$0xf] %vm328_vm4, %v1343_v31  ;;  %v4328_v58 = vor.u32 %v4767_v3, %v4327_v0  ;;  %1918 = vrot.lane.b32.xlu2 %v1775_v27, %s5008_s30  ;;  %v225_v27 = vld [vmem:[%s5091_s29 + $0x2c] sm:$0xf]  ;;  %v1061_v31 = vrot.slane %v1060_v46, 4  ;;  %v1065_v0 = vrot.slane %v1063_v54, 5 }
  0xd7   : > { %242 = vst.msk [vmem:[#allocation2 + $0x160] sm:$0xf] %vm230_vm3, %v225_v27  ;;  %v485_v24 = vshll.u32 %v5840_v4, 16  ;;  %v5848_v30 = vrot.slane %v1073_v15, 5  ;;  %v4359_v26 = vld [vmem:[#allocation2 + $0x108] sm:$0xf] }
  0xd8   : > { %3564 = vmatmul.bf16.gmra.mxu2 %v4328_v58  ;;  %v759_v17 = vpop.permute.xlu2 %758  ;;  %v1066_v58 = vsel %vm5113_vm2, %v1061_v31, %v1065_v0  ;;  %v1070_v11 = vor.u32 %v1069_v10, %v1065_v0  ;;  %v4774_v28 = vld [vmem:[#allocation2 + $0x11c] sm:$0xf0]  ;;  %v4175_v63 = vld [vmem:[%s5091_s29 + $0x108] sm:$0xf]  ;;  %v1802_v49 = vshll.u32 %v4143_v18, 16 }
  0xd9   : > { %798 = vst.msk [vmem:[#allocation2 + $0x104] sm:$0xf] %vm328_vm4, %v759_v17  ;;  %v5870_v20 = vrot.slane %v485_v24, 5  ;;  %v4176_v54 = vld [vmem:[%s5091_s29 + $0x10c] sm:$0xf]  ;;  %v489_v24 = vshrl.u32 %v5840_v4, 16 }
  0xda   : > { %2048 = vrot.lane.b32.xlu0 %v4173_v5, %s5008_s30  ;;  %v469_v5 = vshrl.u32 %v5723_v7, 16  ;;  %v1785_v7 = vsel %vm5113_vm2, %v1780_v44, %v5780_v25  ;;  %1143 = vst.msk [vmem:[#allocation2 + $0x14c] sm:$0xf] %vm230_vm3, %v1066_v58  ;;  %v5845_v25 = vld [vmem:[%s5091_s29 + $0x110] sm:$0xf]  ;;  %v1077_v58 = vshrl.u32 %v5831_v12, 16 }
  0xdb   : > { %2050 = vrot.lane.b32.xlu1 %v4174_v6, %s5008_s30  ;;  %v2382_v6 = vshrl.u32 %v5784_v29, 16  ;;  %v1071_v29 = vrot.slane %v1070_v11, 4  ;;  %v2398_v56 = vshll.u32 %v5845_v25, 16  ;;  %v4126_v60 = vld [vmem:[%s5091_s29 + $0x68] sm:$0xf]  ;;  %v2402_v15 = vshrl.u32 %v5845_v25, 16 }
  0xdc   : > { %v755_v33 = vpop.permute.xlu0 %754  ;;  %v4766_v38 = vld [vmem:[#allocation2 + $0xdc] sm:$0xf0]  ;;  %v471_v16 = vrot.slane %v469_v5, 4  ;;  %835 = vst.msk [vmem:[#allocation2 + $0x188] sm:$0xf] %vm230_vm3, %v4068_v53  ;;  %v4839_v4 = vld [vmem:[%s6874_s1 + $0x128] sm:$0xff] }
  0xdd   : > { %v757_v34 = vpop.permute.xlu1 %756  ;;  %796 = vst.msk [vmem:[#allocation2 + $0xc4] sm:$0xf] %vm328_vm4, %v755_v33  ;;  %v4320_v40 = vor.u32 %v4766_v38, %v4319_v37  ;;  %v4763_v21 = vld [vmem:[#allocation2 + $0xcc] sm:$0xf]  ;;  %v2384_v33 = vrot.slane %v2382_v6, 4  ;;  %v4840_v38 = vld [vmem:[%s6874_s1 + $0x130] sm:$0xff] }
  0xde   : > { %797 = vst.msk [vmem:[#allocation2 + $0xe4] sm:$0xf] %vm328_vm4, %v757_v34  ;;  %v4332_v42 = vor.u32 %v4763_v21, %v4329_v23  ;;  %1462 = vrot.lane.b32.xlu2 %v4124_v32, %s5008_s30  ;;  %v479_v23 = vshrl.u32 %v356_v13, 16  ;;  %v1796_v32 = vshrl.u32 %v5772_v61, 16  ;;  %v477_v34 = vrot.slane %v475_v22, 5  ;;  %3627 = vmatpush.bf16.msrb.mxu0 %v4840_v38 }
  0xdf   : > { %3482 = vmatmul.bf16.gmra.mxu0 %v4320_v40  ;;  %v4864_v40 = vld [vmem:[%s6874_s1 + $0x1f0] sm:$0xff]  ;;  %v5859_v21 = vrot.slane %v2388_v43, 5  ;;  %v1076_v61 = vsel %vm5113_vm2, %v1071_v29, %v5848_v30  ;;  %v472_v39 = vor.u32 %v471_v16, %v5751_v9  ;;  %v5896_v43 = vrot.slane %v2398_v56, 5  ;;  %v5929_v38 = vld [vmem:[%s5091_s29 + $0xd8] sm:$0xf] }
  0xe0   : > { %3605 = vmatmul.bf16.gmra.mxu3 %v4332_v42  ;;  %v895_v55 = vpop.permute.xlu2 %894  ;;  %v481_v37 = vrot.slane %v479_v23, 4  ;;  %v4848_v42 = vld [vmem:[%s6874_s1 + $0x170] sm:$0xff]  ;;  %1144 = vst.msk [vmem:[#allocation2 + $0x16c] sm:$0xf] %vm230_vm3, %v1076_v61  ;;  %v1798_v59 = vrot.slane %v1796_v32, 4  ;;  %v1079_v16 = vrot.slane %v1077_v58, 4 }
  0xe1   : > { %931 = vst.msk [vmem:[#allocation2 + $0x168] sm:$0xf] %vm328_vm4, %v895_v55  ;;  %3750 = vmatpush.bf16.msrb.mxu3 %v4864_v40  ;;  %v1806_v55 = vshrl.u32 %v4143_v18, 16  ;;  %v473_v27 = vrot.slane %v472_v39, 4  ;;  %3668 = vmatpush.bf16.msrb.mxu1 %v4848_v42  ;;  %v226_v5 = vld [vmem:[%s5091_s29 + $0x30] sm:$0xf] }
  0xe2   : > { %1464 = vrot.lane.b32.xlu0 %v4125_v41, %s5008_s30  ;;  %v2394_v41 = vrot.slane %v2392_v14, 4  ;;  %v482_v35 = vor.u32 %v481_v37, %v477_v34  ;;  %243 = vst.msk [vmem:[#allocation2 + $0x180] sm:$0xf] %vm230_vm3, %v226_v5  ;;  %v1799_v13 = vor.u32 %v1798_v59, %v5810_v19  ;;  %v4855_v19 = vld [vmem:[%s6874_s1 + $0x1a8] sm:$0xff]  ;;  %v227_v29 = vld [vmem:[%s5091_s29 + $0x34] sm:$0xf]  ;;  %3628 = vmatpush.bf16.msrb.mxu0 %v4839_v4 }
  0xe3   : > { %2506 = vrot.lane.b32.xlu1 %v2371_v45, %s5008_s30  ;;  %v478_v0 = vsel %vm5113_vm2, %v473_v27, %v477_v34  ;;  %v1808_v6 = vrot.slane %v1806_v55, 4  ;;  %3710 = vmatpush.bf16.msrb.mxu2 %v4855_v19  ;;  %244 = vst.msk [vmem:[#allocation2 + $0x1a0] sm:$0xf] %vm230_vm3, %v227_v29  ;;  %v4101_v34 = vld [vmem:[%s5091_s29 + $0xd4] sm:$0xf]  ;;  %v4847_v61 = vld [vmem:[%s6874_s1 + $0x168] sm:$0xff] }
  0xe4   : > { %v891_v1 = vpop.permute.xlu0 %890  ;;  %v4762_v3 = vld [vmem:[#allocation2 + $0xc4] sm:$0xf]  ;;  %v483_v44 = vrot.slane %v482_v35, 4  ;;  %v2395_v31 = vor.u32 %v2394_v41, %v5859_v21  ;;  %555 = vst.msk [vmem:[#allocation2 + $0x144] sm:$0xf] %vm230_vm3, %v478_v0  ;;  %v1083_v40 = vshll.u32 %v4101_v34, 16 }
  0xe5   : > { %v297_v50 = vpop.permute.xlu1 %296  ;;  %929 = vst.msk [vmem:[#allocation2 + $0x128] sm:$0xf] %vm328_vm4, %v891_v1  ;;  %v4321_v8 = vld [vmem:[#allocation2 + $0xe0] sm:$0xf0]  ;;  %v4144_v1 = vld [vmem:[%s5091_s29 + $0x70] sm:$0xf]  ;;  %3669 = vmatpush.bf16.msrb.mxu1 %v4847_v61 }
  0xe6   : > { %337 = vst.msk [vmem:[#allocation2 + $0x100] sm:$0xf] %vm328_vm4, %v297_v50  ;;  %v4324_v51 = vor.u32 %v4762_v3, %v4321_v8  ;;  %2508 = vrot.lane.b32.xlu2 %v2381_v62, %s5008_s30  ;;  %v2385_v62 = vor.u32 %v2384_v33, %v5805_v57  ;;  %v488_v50 = vsel %vm5113_vm2, %v483_v44, %v5870_v20  ;;  %v5890_v57 = vrot.slane %v1802_v49, 5  ;;  %v4069_v8 = vld [vmem:[%s5091_s29 + $0xd4] sm:$0xf] }
  0xe7   : > { %556 = vst.msk [vmem:[#allocation2 + $0x164] sm:$0xf] %vm230_vm3, %v488_v50  ;;  %v1816_v22 = vshrl.u32 %v4144_v1, 16  ;;  %v1800_v33 = vrot.slane %v1799_v13, 4  ;;  %v1087_v41 = vshrl.u32 %v4101_v34, 16 }
  0xe8   : > { %3523 = vmatmul.bf16.gmra.mxu1 %v4324_v51  ;;  %v1351_v17 = vpop.permute.xlu2 %1350  ;;  %v2386_v10 = vrot.slane %v2385_v62, 4  ;;  %v2396_v51 = vrot.slane %v2395_v31, 4  ;;  %836 = vst.msk [vmem:[#allocation2 + $0x1a8] sm:$0xf] %vm230_vm3, %v4069_v8  ;;  %v1809_v18 = vor.u32 %v1808_v6, %v5890_v57  ;;  %v358_v31 = vld [vmem:[%s5091_s29 + $0x34] sm:$0xf] }
  0xe9   : > { %1388 = vst.msk [vmem:[#allocation2 + $0x14c] sm:$0xf] %vm328_vm4, %v1351_v17  ;;  %v1812_v17 = vshll.u32 %v4144_v1, 16  ;;  %v1089_v49 = vrot.slane %v1087_v41, 4  ;;  %v1805_v27 = vsel %vm5113_vm2, %v1800_v33, %v5890_v57  ;;  %v5958_v59 = vld [vmem:[%s5091_s29 + $0x38] sm:$0xf] }
  0xea   : > { %1920 = vrot.lane.b32.xlu0 %v1785_v7, %s5008_s30  ;;  %v4127_v7 = vld [vmem:[%s5091_s29 + $0x6c] sm:$0xf]  ;;  %v2391_v32 = vsel %vm5113_vm2, %v2386_v10, %v5859_v21  ;;  %v1080_v21 = vor.u32 %v1079_v16, %v5848_v30  ;;  %v1810_v39 = vrot.slane %v1809_v18, 4  ;;  %v4770_v30 = vld [vmem:[#allocation2 + $0x104] sm:$0xf]  ;;  %v495_v5 = vshll.u32 %v358_v31, 16 }
  0xeb   : > { %1922 = vrot.lane.b32.xlu1 %v1795_v2, %s5008_s30  ;;  %v5938_v42 = vrot.slane %v1812_v17, 5  ;;  %v499_v57 = vshrl.u32 %v358_v31, 16  ;;  %v4070_v10 = vld [vmem:[%s5091_s29 + $0xd8] sm:$0xf]  ;;  %v505_v13 = vshll.u32 %v5958_v59, 16  ;;  %v2404_v18 = vrot.slane %v2402_v15, 4 }
  0xec   : > { %v1347_v45 = vpop.permute.xlu0 %1346  ;;  %v4775_v48 = vld [vmem:[#allocation2 + $0x124] sm:$0xf0]  ;;  %v1081_v35 = vrot.slane %v1080_v21, 4  ;;  %837 = vst.msk [vmem:[#allocation2 + $0x1c8] sm:$0xf] %vm230_vm3, %v4070_v10 }
  0xed   : > { %v1349_v47 = vpop.permute.xlu1 %1348  ;;  %1386 = vst.msk [vmem:[#allocation2 + $0x10c] sm:$0xf] %vm328_vm4, %v1347_v45  ;;  %v4351_v9 = vld [vmem:[#allocation2 + $0x100] sm:$0xf]  ;;  %v4360_v52 = vor.u32 %v4775_v48, %v4359_v26  ;;  %v2401_v26 = vsel %vm5113_vm2, %v2396_v51, %v5896_v43  ;;  %v5941_v45 = vrot.slane %v1816_v22, 4  ;;  %v1085_v48 = vrot.slane %v1083_v40, 5 }
  0xee   : > { %1387 = vst.msk [vmem:[#allocation2 + $0x12c] sm:$0xf] %vm328_vm4, %v1349_v47  ;;  %v4352_v46 = vor.u32 %v4774_v28, %v4351_v9  ;;  %2052 = vrot.lane.b32.xlu2 %v4175_v63, %s5008_s30  ;;  %v5914_v28 = vld [vmem:[%s5091_s29 + $0x114] sm:$0xf]  ;;  %v4863_v63 = vld [vmem:[%s6874_s1 + $0x1e8] sm:$0xff]  ;;  %v1093_v47 = vshll.u32 %v5929_v38, 16  ;;  %v2405_v25 = vor.u32 %v2404_v18, %v5896_v43 }
  0xef   : > { %3568 = vmatmul.bf16.gmra.mxu2 %v4360_v52  ;;  %v491_v9 = vrot.slane %v489_v24, 4  ;;  %v4783_v52 = vld [vmem:[#allocation2 + $0x164] sm:$0xf0]  ;;  %v2412_v55 = vshrl.u32 %v5914_v28, 16  ;;  %3751 = vmatpush.bf16.msrb.mxu3 %v4863_v63  ;;  %v1086_v62 = vsel %vm5113_vm2, %v1081_v35, %v1085_v48  ;;  %v497_v51 = vrot.slane %v495_v5, 5 }
  0xf0   : > { %3486 = vmatmul.bf16.gmra.mxu0 %v4352_v46  ;;  %v765_v3 = vpop.permute.xlu2 %764  ;;  %v5951_v46 = vrot.slane %v1093_v47, 5  ;;  %1145 = vst.msk [vmem:[#allocation2 + $0x18c] sm:$0xf] %vm230_vm3, %v1086_v62  ;;  %v4145_v19 = vld [vmem:[%s5091_s29 + $0x74] sm:$0xf]  ;;  %v2406_v47 = vrot.slane %v2405_v25, 4 }
  0xf1   : > { %801 = vst.msk [vmem:[#allocation2 + $0x164] sm:$0xf] %vm328_vm4, %v765_v3  ;;  %v492_v0 = vor.u32 %v491_v9, %v5870_v20  ;;  %v4177_v3 = vld [vmem:[%s5091_s29 + $0x110] sm:$0xf]  ;;  %v1815_v20 = vsel %vm5113_vm2, %v1810_v39, %v5938_v42  ;;  %v2414_v22 = vrot.slane %v2412_v55, 4  ;;  %v1826_v29 = vshrl.u32 %v4145_v19, 16 }
  0xf2   : > { %2054 = vrot.lane.b32.xlu0 %v4176_v54, %s5008_s30  ;;  %v2408_v54 = vshll.u32 %v5914_v28, 16  ;;  %v5987_v28 = vrot.slane %v505_v13, 5  ;;  %v4178_v15 = vld [vmem:[%s5091_s29 + $0x114] sm:$0xf]  ;;  %v1822_v40 = vshll.u32 %v4145_v19, 16  ;;  %v4853_v19 = vld [vmem:[%s6874_s1 + $0x198] sm:$0xff] }
  0xf3   : > { %1466 = vrot.lane.b32.xlu1 %v4126_v60, %s5008_s30  ;;  %v1090_v60 = vor.u32 %v1089_v49, %v1085_v48  ;;  %v493_v58 = vrot.slane %v492_v0, 4  ;;  %v4128_v41 = vld [vmem:[%s5091_s29 + $0x70] sm:$0xf]  ;;  %v4129_v21 = vld [vmem:[%s5091_s29 + $0x74] sm:$0xf] }
  0xf4   : > { %v761_v2 = vpop.permute.xlu0 %760  ;;  %v4771_v11 = vld [vmem:[#allocation2 + $0x10c] sm:$0xf]  ;;  %v4071_v39 = vld [vmem:[%s5091_s29 + $0xdc] sm:$0xf]  ;;  %v228_v49 = vld [vmem:[%s5091_s29 + $0x38] sm:$0xf] }
  0xf5   : > { %v893_v14 = vpop.permute.xlu1 %892  ;;  %799 = vst.msk [vmem:[#allocation2 + $0x124] sm:$0xf] %vm328_vm4, %v761_v2  ;;  %v4361_v12 = vld [vmem:[#allocation2 + $0x128] sm:$0xf0]  ;;  %v1091_v8 = vrot.slane %v1090_v60, 4  ;;  %v6015_v35 = vrot.slane %v1822_v40, 5 }
  0xf6   : > { %930 = vst.msk [vmem:[#allocation2 + $0x148] sm:$0xf] %vm328_vm4, %v893_v14  ;;  %v4364_v23 = vor.u32 %v4771_v11, %v4361_v12  ;;  %1468 = vrot.lane.b32.xlu2 %v4127_v7, %s5008_s30  ;;  %v501_v7 = vrot.slane %v499_v57, 4  ;;  %v5971_v2 = vld [vmem:[%s5091_s29 + $0x118] sm:$0xf]  ;;  %v5973_v14 = vrot.slane %v2408_v54, 5  ;;  %v1819_v11 = vor.u32 %v5941_v45, %v5938_v42 }
  0xf7   : > { %v1096_v17 = vsel %vm5113_vm2, %v1091_v8, %v5951_v46  ;;  %v2418_v4 = vshll.u32 %v5971_v2, 16  ;;  %v1097_v45 = vshrl.u32 %v5929_v38, 16  ;;  %v229_v48 = vld [vmem:[%s5091_s29 + $0x3c] sm:$0xf]  ;;  %838 = vst.msk [vmem:[#allocation2 + $0x1e8] sm:$0xf] %vm230_vm3, %v4071_v39 }
  0xf8   : > { %3609 = vmatmul.bf16.gmra.mxu3 %v4364_v23  ;;  %v305_v37 = vpop.permute.xlu2 %304  ;;  %1146 = vst.msk [vmem:[#allocation2 + $0x1ac] sm:$0xf] %vm230_vm3, %v1096_v17  ;;  %v498_v23 = vsel %vm5113_vm2, %v493_v58, %v497_v51  ;;  %v502_v24 = vor.u32 %v501_v7, %v497_v51  ;;  %v2415_v63 = vor.u32 %v2414_v22, %v5973_v14  ;;  %v4838_v38 = vld [vmem:[%s6874_s1 + $0x120] sm:$0xff]  ;;  %v6042_v0 = vld [vmem:[%s5091_s29 + $0x11c] sm:$0xf]  ;;  %v2422_v57 = vshrl.u32 %v5971_v2, 16 }
  0xf9   : > { %341 = vst.msk [vmem:[#allocation2 + $0x180] sm:$0xf] %vm328_vm4, %v305_v37  ;;  %v5999_v37 = vrot.slane %v1819_v11, 4  ;;  %v4846_v54 = vld [vmem:[%s6874_s1 + $0x160] sm:$0xff]  ;;  %v1099_v62 = vrot.slane %v1097_v45, 4  ;;  %v2411_v31 = vsel %vm5113_vm2, %v2406_v47, %v5973_v14  ;;  %3629 = vmatpush.bf16.msrb.mxu0 %v4838_v38  ;;  %v2428_v40 = vshll.u32 %v6042_v0, 16 }
  0xfa   : > { %2510 = vrot.lane.b32.xlu0 %v2391_v32, %s5008_s30  ;;  %557 = vst.msk [vmem:[#allocation2 + $0x184] sm:$0xf] %vm230_vm3, %v498_v23  ;;  %v503_v16 = vrot.slane %v502_v24, 4  ;;  %v4854_v32 = vld [vmem:[%s6874_s1 + $0x1a0] sm:$0xff]  ;;  %3670 = vmatpush.bf16.msrb.mxu1 %v4846_v54  ;;  %v360_v11 = vld [vmem:[%s5091_s29 + $0x3c] sm:$0xf] }
  0xfb   : > { %2512 = vrot.lane.b32.xlu1 %v2401_v26, %s5008_s30  ;;  %3711 = vmatpush.bf16.msrb.mxu2 %v4854_v32  ;;  %v4385_v55 = vld [vmem:[#allocation2 + $0x160] sm:$0xf0]  ;;  %246 = vst.msk [vmem:[#allocation2 + $0x1e0] sm:$0xf] %vm230_vm3, %v229_v48  ;;  %v1825_v13 = vsel %vm5113_vm2, %v5999_v37, %v6015_v35  ;;  %v4104_v22 = vld [vmem:[%s5091_s29 + $0xe0] sm:$0x1] }
  0xfc   : > { %v301_v56 = vpop.permute.xlu0 %300  ;;  %v4353_v53 = vld [vmem:[#allocation2 + $0x120] sm:$0xf0]  ;;  %v508_v61 = vsel %vm5113_vm2, %v503_v16, %v5987_v28  ;;  %245 = vst.msk [vmem:[#allocation2 + $0x1c0] sm:$0xf] %vm230_vm3, %v228_v49  ;;  %v4147_v24 = vld [vmem:[%s5091_s29 + $0x7c] sm:$0xf] }
  0xfd   : > { %v303_v44 = vpop.permute.xlu1 %302  ;;  %339 = vst.msk [vmem:[#allocation2 + $0x140] sm:$0xf] %vm328_vm4, %v301_v56  ;;  %v4356_v1 = vor.u32 %v4770_v30, %v4353_v53  ;;  %v4391_v50 = vld [vmem:[#allocation2 + $0x148] sm:$0xf]  ;;  %v1828_v30 = vrot.slane %v1826_v29, 4  ;;  %v6027_v56 = vrot.slane %v2418_v4, 5 }
  0xfe   : > { %340 = vst.msk [vmem:[#allocation2 + $0x160] sm:$0xf] %vm328_vm4, %v303_v44  ;;  %v4392_v6 = vor.u32 %v4783_v52, %v4391_v50  ;;  %1924 = vrot.lane.b32.xlu2 %v1805_v27, %s5008_s30  ;;  %v4862_v52 = vld [vmem:[%s6874_s1 + $0x1e0] sm:$0xff]  ;;  %v2416_v27 = vrot.slane %v2415_v63, 4  ;;  %v509_v44 = vshrl.u32 %v5958_v59, 16  ;;  %v515_v25 = vshll.u32 %v360_v11, 16 }
  0xff   : > { %3527 = vmatmul.bf16.gmra.mxu1 %v4356_v1  ;;  %558 = vst.msk [vmem:[#allocation2 + $0x1a4] sm:$0xf] %vm230_vm3, %v508_v61  ;;  %v6035_v53 = vld [vmem:[%s5091_s29 + $0x78] sm:$0xf]  ;;  %v1829_v60 = vor.u32 %v1828_v30, %v6015_v35  ;;  %3752 = vmatpush.bf16.msrb.mxu3 %v4862_v52  ;;  %v4103_v1 = vld [vmem:[%s5091_s29 + $0xdc] sm:$0xf] }
 0x100   : > { %3572 = vmatmul.bf16.gmra.mxu2 %v4392_v6  ;;  %v1357_v12 = vpop.permute.xlu2 %1356  ;;  %v2432_v6 = vshrl.u32 %v6042_v0, 16  ;;  %v1832_v10 = vshll.u32 %v6035_v53, 16  ;;  %v1103_v51 = vshll.u32 %v4103_v1, 16  ;;  %v1107_v14 = vshrl.u32 %v4103_v1, 16  ;;  %v361_v4 = vld [vmem:[%s5091_s29 + $0x40] sm:$0x1] }
 0x101   : > { %1391 = vst.msk [vmem:[#allocation2 + $0x1ac] sm:$0xf] %vm328_vm4, %v1357_v12  ;;  %v1830_v2 = vrot.slane %v1829_v60, 4  ;;  %v511_v18 = vrot.slane %v509_v44, 4  ;;  %v1836_v29 = vshrl.u32 %v6035_v53, 16  ;;  %3712 = vmatpush.bf16.msrb.mxu2 %v4853_v19  ;;  %v2424_v37 = vrot.slane %v2422_v57, 4 }
 0x102   : > { %1926 = vrot.lane.b32.xlu0 %v1815_v20, %s5008_s30  ;;  %v1100_v20 = vor.u32 %v1099_v62, %v5951_v46  ;;  %v2421_v46 = vsel %vm5113_vm2, %v2416_v27, %v6027_v56  ;;  %v1105_v12 = vrot.slane %v1103_v51, 5  ;;  %v1109_v16 = vrot.slane %v1107_v14, 4  ;;  %v4179_v38 = vld [vmem:[%s5091_s29 + $0x118] sm:$0xf]  ;;  %v4180_v52 = vld [vmem:[%s5091_s29 + $0x11c] sm:$0xf] }
 0x103   : > { %2056 = vrot.lane.b32.xlu1 %v4177_v3, %s5008_s30  ;;  %v4779_v3 = vld [vmem:[#allocation2 + $0x14c] sm:$0xf]  ;;  %v6068_v32 = vrot.slane %v1832_v10, 5  ;;  %v1846_v30 = vshrl.u32 %v4147_v24, 16  ;;  %v525_v35 = vshll.u32 %v361_v4, 16  ;;  %v1838_v54 = vrot.slane %v1836_v29, 4 }
 0x104   : > { %v1353_v26 = vpop.permute.xlu0 %1352  ;;  %v4383_v34 = vld [vmem:[#allocation2 + $0x140] sm:$0xf]  ;;  %v1101_v17 = vrot.slane %v1100_v20, 4  ;;  %v6089_v27 = vrot.slane %v2432_v6, 4  ;;  %v4837_v1 = vld [vmem:[%s6874_s1 + $0x118] sm:$0xff]  ;;  %v2430_v10 = vrot.slane %v2428_v40, 5 }
 0x105   : > { %v763_v33 = vpop.permute.xlu1 %762  ;;  %1389 = vst.msk [vmem:[#allocation2 + $0x16c] sm:$0xf] %vm328_vm4, %v1353_v26  ;;  %v4782_v43 = vld [vmem:[#allocation2 + $0x15c] sm:$0xf0]  ;;  %v1835_v63 = vsel %vm5113_vm2, %v1830_v2, %v6068_v32  ;;  %v527_v0 = vrot.slane %v525_v35, 5  ;;  %v1848_v6 = vrot.slane %v1846_v30, 4  ;;  %3630 = vmatpush.bf16.msrb.mxu0 %v4837_v1 }
 0x106   : > { %800 = vst.msk [vmem:[#allocation2 + $0x144] sm:$0xf] %vm328_vm4, %v763_v33  ;;  %v4384_v42 = vor.u32 %v4782_v43, %v4383_v34  ;;  %2058 = vrot.lane.b32.xlu2 %v4178_v15, %s5008_s30  ;;  %v519_v15 = vshrl.u32 %v360_v11, 16  ;;  %v1106_v26 = vsel %vm5113_vm2, %v1101_v17, %v1105_v12  ;;  %v512_v33 = vor.u32 %v511_v18, %v5987_v28  ;;  %v4852_v28 = vld [vmem:[%s6874_s1 + $0x190] sm:$0xff]  ;;  %v6096_v60 = vld [vmem:[%s5091_s29 + $0x80] sm:$0xf] }
 0x107   : > { %v1113_v34 = vshll.u32 %v4104_v22, 16  ;;  %1147 = vst.msk [vmem:[#allocation2 + $0x1cc] sm:$0xf] %vm230_vm3, %v1106_v26  ;;  %v517_v43 = vrot.slane %v515_v25, 5  ;;  %3713 = vmatpush.bf16.msrb.mxu2 %v4852_v28  ;;  %v4155_v20 = vld [vmem:[%s5091_s29 + $0xa8] sm:$0xf]  ;;  %v2435_v17 = vor.u32 %v6089_v27, %v2430_v10 }
 0x108   : > { %3490 = vmatmul.bf16.gmra.mxu0 %v4384_v42  ;;  %v901_v9 = vpop.permute.xlu2 %900  ;;  %v513_v61 = vrot.slane %v512_v33, 4  ;;  %v521_v49 = vrot.slane %v519_v15, 4  ;;  %v4425_v51 = vld [vmem:[#allocation2 + $0x1a8] sm:$0xf0]  ;;  %v6127_v2 = vld [vmem:[%s5091_s29 + $0x120] sm:$0xf] }
 0x109   : > { %934 = vst.msk [vmem:[#allocation2 + $0x1c8] sm:$0xf] %vm328_vm4, %v901_v9  ;;  %v1115_v39 = vrot.slane %v1113_v34, 5  ;;  %v1852_v11 = vshll.u32 %v6096_v60, 16  ;;  %v4415_v22 = vld [vmem:[#allocation2 + $0x180] sm:$0xf] }
 0x10a   : > { %1470 = vrot.lane.b32.xlu0 %v4128_v41, %s5008_s30  ;;  %v1110_v41 = vor.u32 %v1109_v16, %v1105_v12  ;;  %1996 = vst.msk [vmem:[#allocation2 + $0x18] sm:$0xf] %vm230_vm3, %v4155_v20  ;;  %v4131_v15 = vld [vmem:[%s5091_s29 + $0x7c] sm:$0xf]  ;;  %v2438_v16 = vshll.u32 %v6127_v2, 16  ;;  %v2436_v28 = vrot.slane %v2435_v17, 4 }
 0x10b   : > { %1472 = vrot.lane.b32.xlu1 %v4129_v21, %s5008_s30  ;;  %v1842_v21 = vshll.u32 %v4147_v24, 16  ;;  %v4215_v4 = vld [vmem:[%s5091_s29 + $0x124] sm:$0xf]  ;;  %v1394_v40 = vld [vmem:[%s5091_s29 + $0x8] sm:$0xf] }
 0x10c   : > { %v897_v50 = vpop.permute.xlu0 %896  ;;  %v4393_v5 = vld [vmem:[#allocation2 + $0x168] sm:$0xf0]  ;;  %v1111_v48 = vrot.slane %v1110_v41, 4  ;;  %v6152_v41 = vrot.slane %v1852_v11, 5  ;;  %1410 = vst.msk [vmem:[#allocation2 + $0x10] sm:$0xf] %vm230_vm3, %v1394_v40 }
 0x10d   : > { %v899_v59 = vpop.permute.xlu1 %898  ;;  %932 = vst.msk [vmem:[#allocation2 + $0x188] sm:$0xf] %vm328_vm4, %v897_v50  ;;  %v4778_v8 = vld [vmem:[#allocation2 + $0x144] sm:$0xf]  ;;  %v4396_v58 = vor.u32 %v4779_v3, %v4393_v5  ;;  %v2425_v50 = vor.u32 %v2424_v37, %v6027_v56  ;;  %v4861_v3 = vld [vmem:[%s6874_s1 + $0x1d8] sm:$0xff]  ;;  %v4851_v5 = vld [vmem:[%s6874_s1 + $0x188] sm:$0xff] }
 0x10e   : > { %933 = vst.msk [vmem:[#allocation2 + $0x1a8] sm:$0xf] %vm328_vm4, %v899_v59  ;;  %v4388_v7 = vor.u32 %v4778_v8, %v4385_v55  ;;  %2514 = vrot.lane.b32.xlu2 %v2411_v31, %s5008_s30  ;;  %v518_v55 = vsel %vm5113_vm2, %v513_v61, %v517_v43  ;;  %v1116_v62 = vsel %vm5113_vm2, %v1111_v48, %v1115_v39  ;;  %v4156_v59 = vld [vmem:[%s5091_s29 + $0xac] sm:$0xf]  ;;  %v6112_v57 = vrot.slane %v1842_v21, 5  ;;  %v4850_v37 = vld [vmem:[%s6874_s1 + $0x180] sm:$0xff] }
 0x10f   : > { %3613 = vmatmul.bf16.gmra.mxu3 %v4396_v58  ;;  %v522_v31 = vor.u32 %v521_v49, %v517_v43  ;;  %559 = vst.msk [vmem:[#allocation2 + $0x1c4] sm:$0xf] %vm230_vm3, %v518_v55  ;;  %v4845_v58 = vld [vmem:[%s6874_s1 + $0x158] sm:$0xff]  ;;  %3714 = vmatpush.bf16.msrb.mxu2 %v4851_v5  ;;  %v2426_v14 = vrot.slane %v2425_v50, 4  ;;  %v4187_v21 = vld [vmem:[%s5091_s29 + $0xa8] sm:$0xf] }
 0x110   : > { %3531 = vmatmul.bf16.gmra.mxu1 %v4388_v7  ;;  %v311_v23 = vpop.permute.xlu2 %310  ;;  %1148 = vst.msk [vmem:[#allocation2 + $0x1ec] sm:$0xf] %vm230_vm3, %v1116_v62  ;;  %3753 = vmatpush.bf16.msrb.mxu3 %v4861_v3  ;;  %v1839_v7 = vor.u32 %v1838_v54, %v6068_v32  ;;  %v4836_v32 = vld [vmem:[%s6874_s1 + $0x110] sm:$0xff]  ;;  %v4188_v39 = vld [vmem:[%s5091_s29 + $0xac] sm:$0xf]  ;;  %v6163_v30 = vrot.slane %v2438_v16, 5 }
 0x111   : > { %344 = vst.msk [vmem:[#allocation2 + $0x1e0] sm:$0xf] %vm328_vm4, %v311_v23  ;;  %v523_v56 = vrot.slane %v522_v31, 4  ;;  %3671 = vmatpush.bf16.msrb.mxu1 %v4845_v58  ;;  %v1849_v23 = vor.u32 %v1848_v6, %v6112_v57  ;;  %v2431_v43 = vsel %vm5113_vm2, %v2426_v14, %v2430_v10  ;;  %3631 = vmatpush.bf16.msrb.mxu0 %v4836_v32  ;;  %v2442_v48 = vshrl.u32 %v6127_v2, 16  ;;  %v1395_v49 = vld [vmem:[%s5091_s29 + $0xc] sm:$0xf] }
 0x112   : > { %2516 = vrot.lane.b32.xlu0 %v2421_v46, %s5008_s30  ;;  %1997 = vst.msk [vmem:[#allocation2 + $0x38] sm:$0xf] %vm230_vm3, %v4156_v59  ;;  %v4130_v46 = vld [vmem:[%s5091_s29 + $0x78] sm:$0xf]  ;;  %v6142_v34 = vrot.slane %v1839_v7, 4  ;;  %v2448_v54 = vshll.u32 %v4215_v4, 16  ;;  %v2441_v27 = vsel %vm5113_vm2, %v2436_v28, %v6163_v30 }
 0x113   : > { %1928 = vrot.lane.b32.xlu1 %v1825_v13, %s5008_s30  ;;  %v528_v13 = vsel %vm5113_vm2, %v523_v56, %v527_v0  ;;  %3715 = vmatpush.bf16.msrb.mxu2 %v4850_v37  ;;  %1411 = vst.msk [vmem:[#allocation2 + $0x30] sm:$0xf] %vm230_vm3, %v1395_v49  ;;  %v2452_v55 = vshrl.u32 %v4215_v4, 16  ;;  %v6177_v62 = vld [vmem:[%s5091_s29 + $0x84] sm:$0xf]  ;;  %v1856_v50 = vshrl.u32 %v6096_v60, 16 }
 0x114   : > { %v307_v42 = vpop.permute.xlu0 %306  ;;  %v4423_v47 = vld [vmem:[#allocation2 + $0x188] sm:$0xf]  ;;  %560 = vst.msk [vmem:[#allocation2 + $0x1e4] sm:$0xf] %vm230_vm3, %v528_v13  ;;  %v2139_v3 = vshrl.u32 %v4188_v39, 16  ;;  %v4834_v5 = vld [vmem:[%s6874_s1 + $0x100] sm:$0xff]  ;;  %v1845_v10 = vsel %vm5113_vm2, %v6142_v34, %v6112_v57 }
 0x115   : > { %v1355_v45 = vpop.permute.xlu1 %1354  ;;  %342 = vst.msk [vmem:[#allocation2 + $0x1a0] sm:$0xf] %vm328_vm4, %v307_v42  ;;  %v4791_v9 = vld [vmem:[#allocation2 + $0x1a4] sm:$0xf0]  ;;  %v2126_v42 = vshrl.u32 %v4187_v21, 16  ;;  %v4844_v6 = vld [vmem:[%s6874_s1 + $0x150] sm:$0xff] }
 0x116   : > { %1390 = vst.msk [vmem:[#allocation2 + $0x18c] sm:$0xf] %vm328_vm4, %v1355_v45  ;;  %v4424_v44 = vor.u32 %v4791_v9, %v4423_v47  ;;  %v6092_v53 = vpop.f32.mrf.mxu3  ;;  %1930 = vrot.lane.b32.xlu2 %v1835_v63, %s5008_s30  ;;  %v6156_v63 = vrot.slane %v1849_v23, 4  ;;  %v2129_v45 = vshll.u32 %v4187_v21, 16  ;;  %v4835_v47 = vld [vmem:[%s6874_s1 + $0x108] sm:$0xff]  ;;  %v4860_v7 = vld [vmem:[%s6874_s1 + $0x1d0] sm:$0xff]  ;;  %3672 = vmatpush.bf16.msrb.mxu1 %v4844_v6 }
 0x117   : > { %v2128_v9 = vrot.slane %v2126_v42, 4  ;;  %3632 = vmatpush.bf16.msrb.mxu0 %v4835_v47  ;;  %v6202_v11 = vrot.slane %v2448_v54, 5  ;;  %3754 = vmatpush.bf16.msrb.mxu3 %v4860_v7  ;;  %v1866_v16 = vshrl.u32 %v6177_v62, 16  ;;  %v6218_v32 = vld [vmem:[%s5091_s29 + $0x10] sm:$0xf]  ;;  %v4843_v28 = vld [vmem:[%s6874_s1 + $0x148] sm:$0xff] }
 0x118   : > { %3576 = vmatmul.bf16.gmra.mxu2 %v4424_v44  ;;  %v771_v8 = vpop.permute.xlu2 %770  ;;  %v6174_v44 = vld [vmem:[%s5091_s29 + $0x128] sm:$0xf]  ;;  %v1855_v20 = vsel %vm5113_vm2, %v6156_v63, %v6152_v41  ;;  %v4181_v21 = vld [vmem:[%s5091_s29 + $0x120] sm:$0xf]  ;;  %v1396_v60 = vld [vmem:[%s5091_s29 + $0x10] sm:$0xf] }
 0x119   : > { %804 = vst.msk [vmem:[#allocation2 + $0x1c4] sm:$0xf] %vm328_vm4, %v771_v8  ;;  %v2458_v17 = vshll.u32 %v6174_v44, 16  ;;  %v4455_v34 = vld [vmem:[#allocation2 + $0x1c8] sm:$0xf]  ;;  %v1868_v7 = vrot.slane %v1866_v16, 4 }
 0x11a   : > { %2060 = vrot.lane.b32.xlu0 %v4179_v38, %s5008_s30  ;;  %v2131_v38 = vrot.slane %v2129_v45, 5  ;;  %3673 = vmatpush.bf16.msrb.mxu1 %v4843_v28  ;;  %1412 = vst.msk [vmem:[#allocation2 + $0x50] sm:$0xf] %vm230_vm3, %v1396_v60  ;;  %v4183_v60 = vld [vmem:[%s5091_s29 + $0x128] sm:$0xf] }
 0x11b   : > { %2062 = vrot.lane.b32.xlu1 %v4180_v52, %s5008_s30  ;;  %v2135_v52 = vshll.u32 %v4188_v39, 16  ;;  %3633 = vmatpush.bf16.msrb.mxu0 %v4834_v5  ;;  %v4859_v39 = vld [vmem:[%s6874_s1 + $0x1c8] sm:$0xff]  ;;  %v4132_v5 = vld [vmem:[%s5091_s29 + $0x80] sm:$0xf] }
 0x11c   : > { %v767_v12 = vpop.permute.xlu0 %766  ;;  %v4790_v19 = vld [vmem:[#allocation2 + $0x19c] sm:$0xf0]  ;;  %v2132_v59 = vor.u32 %v2131_v38, %v2128_v9  ;;  %3755 = vmatpush.bf16.msrb.mxu3 %v4859_v39 }
 0x11d   : > { %v769_v18 = vpop.permute.xlu1 %768  ;;  %802 = vst.msk [vmem:[#allocation2 + $0x184] sm:$0xf] %vm328_vm4, %v767_v12  ;;  %v3471_v24 = vpop.f32.mrf.mxu0  ;;  %v4416_v29 = vor.u32 %v4790_v19, %v4415_v22  ;;  %v4787_v25 = vld [vmem:[#allocation2 + $0x18c] sm:$0xf]  ;;  %v2137_v57 = vrot.slane %v2135_v52, 5  ;;  %v1862_v12 = vshll.u32 %v6177_v62, 16 }
 0x11e   : > { %803 = vst.msk [vmem:[#allocation2 + $0x1a4] sm:$0xf] %vm328_vm4, %v769_v18  ;;  %v4428_v26 = vor.u32 %v4787_v25, %v4425_v51  ;;  %v3596_v33 = vpop.f32.mrf.mxu3  ;;  %1474 = vrot.lane.b32.xlu2 %v4130_v46, %s5008_s30  ;;  %v6195_v51 = vrot.slane %v2442_v48, 4  ;;  %v2133_v14 = vrot.slane %v2132_v59, 4  ;;  %v6204_v46 = vrot.slane %v2452_v55, 4  ;;  %v4842_v59 = vld [vmem:[%s6874_s1 + $0x140] sm:$0xff] }
 0x11f   : > { %3494 = vmatmul.bf16.gmra.mxu0 %v4416_v29  ;;  %v6209_v18 = vld [vmem:[%s5091_s29 + $0xb0] sm:$0xf]  ;;  %v1523_v25 = vld [vmem:[%s5091_s29 + $0xc] sm:$0xf]  ;;  %3674 = vmatpush.bf16.msrb.mxu1 %v4842_v59 }
 0x120   : > { %3617 = vmatmul.bf16.gmra.mxu3 %v4428_v26  ;;  %v2047_v61 = vpop.permute.xlu2 %2046  ;;  %v2138_v19 = vsel %vm5113_vm2, %v2133_v14, %v2137_v57  ;;  %v2145_v29 = vshll.u32 %v6209_v18, 16  ;;  %v1549_v26 = vshll.u32 %v1523_v25, 16  ;;  %v1553_v40 = vshrl.u32 %v1523_v25, 16  ;;  %v4157_v14 = vld [vmem:[%s5091_s29 + $0xb0] sm:$0xf] }
 0x121   : > { %2093 = vst.msk [vmem:[#allocation2 + $0x38] sm:$0xf] %vm328_vm4, %v2047_v61  ;;  %v1522_v61 = vld [vmem:[%s5091_s29 + $0x8] sm:$0xf]  ;;  %v4133_v25 = vld [vmem:[%s5091_s29 + $0x84] sm:$0xf] }
 0x122   : > { %v3553_v35 = vpop.f32.mrf.mxu2  ;;  %1476 = vrot.lane.b32.xlu0 %v4131_v15, %s5008_s30  ;;  %v4798_v15 = vld [vmem:[#allocation2 + $0x1dc] sm:$0xf0]  ;;  %2305 = vst.msk [vmem:[#allocation2 + $0x1c] sm:$0xf] %vm230_vm3, %v2138_v19  ;;  %v6223_v37 = vrot.slane %v2145_v29, 5  ;;  %v6230_v63 = vrot.slane %v1549_v26, 5 }
 0x123   : > { %2518 = vrot.lane.b32.xlu1 %v2431_v43, %s5008_s30  ;;  %v1559_v43 = vshll.u32 %v6218_v32, 16  ;;  %v1540_v38 = vshrl.u32 %v1522_v61, 16  ;;  %1998 = vst.msk [vmem:[#allocation2 + $0x58] sm:$0xf] %vm230_vm3, %v4157_v14 }
 0x124   : > { %v903_v31 = vpop.permute.xlu0 %902  ;;  %v4786_v1 = vld [vmem:[#allocation2 + $0x184] sm:$0xf] }
 0x125   : > { %v309_v0 = vpop.permute.xlu1 %308  ;;  %935 = vst.msk [vmem:[#allocation2 + $0x1e8] sm:$0xf] %vm328_vm4, %v903_v31  ;;  %v3512_v8 = vpop.f32.mrf.mxu1  ;;  %v4417_v58 = vld [vmem:[#allocation2 + $0x1a0] sm:$0xf0]  ;;  %v6239_v9 = vrot.slane %v1559_v43, 5  ;;  %v2445_v31 = vor.u32 %v6195_v51, %v6163_v30  ;;  %v6270_v51 = vrot.slane %v1862_v12, 5 }
 0x126   : > { %v3473_v56 = vpop.f32.mrf.mxu0  ;;  %v3513_v13 = vadd.f32 %v3512_v8, %v3471_v24  ;;  %343 = vst.msk [vmem:[#allocation2 + $0x1c0] sm:$0xf] %vm328_vm4, %v309_v0  ;;  %v4420_v2 = vor.u32 %v4786_v1, %v4417_v58  ;;  %2520 = vrot.lane.b32.xlu2 %v2441_v27, %s5008_s30  ;;  %v2141_v24 = vrot.slane %v2139_v3, 4  ;;  %v2455_v0 = vor.u32 %v6204_v46, %v6202_v11  ;;  %v6263_v58 = vld [vmem:[%s5091_s29 + $0x88] sm:$0xf] }
 0x127   : > { %v1543_v1 = vshll.u32 %v1522_v61, 16  ;;  %v1542_v8 = vrot.slane %v1540_v38, 4  ;;  %v4858_v56 = vld [vmem:[%s6874_s1 + $0x1c0] sm:$0xff]  ;;  %v2462_v46 = vshrl.u32 %v6174_v44, 16  ;;  %v6282_v12 = vrot.slane %v2458_v17, 5 }
 0x128   : > { %v3554_v22 = vadd.f32 %v3553_v35, %v3513_v13  ;;  %3535 = vmatmul.bf16.gmra.mxu1 %v4420_v2  ;;  %v2503_v23 = vpop.permute.xlu2 %2502  ;;  %v2142_v4 = vor.u32 %v2141_v24, %v2137_v57  ;;  %v1555_v35 = vrot.slane %v1553_v40, 4  ;;  %v2446_v57 = vrot.slane %v2445_v31, 4  ;;  %3756 = vmatpush.bf16.msrb.mxu3 %v4858_v56  ;;  %v4217_v43 = vld [vmem:[%s5091_s29 + $0x12c] sm:$0xf]  ;;  %v1397_v38 = vld [vmem:[%s5091_s29 + $0x14] sm:$0xf] }
 0x129   : > { %2550 = vst.msk [vmem:[#allocation2 + $0x1c] sm:$0xf] %vm328_vm4, %v2503_v23  ;;  %v2456_v62 = vrot.slane %v2455_v0, 4  ;;  %v1872_v19 = vshll.u32 %v6263_v58, 16  ;;  %v2149_v24 = vshrl.u32 %v6209_v18, 16  ;;  %v1563_v61 = vshrl.u32 %v6218_v32, 16 }
 0x12a   : > { %v3555_v33 = vpop.f32.mrf.mxu2  ;;  %1932 = vrot.lane.b32.xlu0 %v1845_v10, %s5008_s30  ;;  %v6237_v42 = vadd.f32 %v6092_v53, %v3554_v22  ;;  %v2143_v49 = vrot.slane %v2142_v4, 4  ;;  %v4182_v53 = vld [vmem:[%s5091_s29 + $0x124] sm:$0xf]  ;;  %v1556_v6 = vor.u32 %v1555_v35, %v6230_v63  ;;  %v1545_v10 = vrot.slane %v1543_v1, 5  ;;  %1413 = vst.msk [vmem:[#allocation2 + $0x70] sm:$0xf] %vm230_vm3, %v1397_v38 }
 0x12b   : > { %1934 = vrot.lane.b32.xlu1 %v1855_v20, %s5008_s30  ;;  %v1858_v20 = vrot.slane %v1856_v50, 4  ;;  %v1869_v33 = vor.u32 %v1868_v7, %v6270_v51  ;;  %v6302_v28 = vrot.slane %v1872_v19, 5  ;;  %v2451_v39 = vsel %vm5113_vm2, %v2446_v57, %v6202_v11  ;;  %v4190_v11 = vld [vmem:[%s5091_s29 + $0xb4] sm:$0xf] }
 0x12c   : > { %v1359_v45 = vpop.permute.xlu0 %1358  ;;  %v4799_v48 = vld [vmem:[#allocation2 + $0x1e4] sm:$0xf0]  ;;  %v2148_v30 = vsel %vm5113_vm2, %v2143_v49, %v6223_v37  ;;  %v1557_v13 = vrot.slane %v1556_v6, 4  ;;  %v1546_v22 = vor.u32 %v1545_v10, %v1542_v8  ;;  %v2468_v35 = vshll.u32 %v4217_v43, 16 }
 0x12d   : > { %v1361_v47 = vpop.permute.xlu1 %1360  ;;  %1392 = vst.msk [vmem:[#allocation2 + $0x1cc] sm:$0xf] %vm328_vm4, %v1359_v45  ;;  %v3514_v52 = vpop.f32.mrf.mxu1  ;;  %v4447_v55 = vld [vmem:[#allocation2 + $0x1c0] sm:$0xf]  ;;  %v4456_v27 = vor.u32 %v4799_v48, %v4455_v34  ;;  %v4158_v34 = vld [vmem:[%s5091_s29 + $0xb4] sm:$0xf] }
 0x12e   : > { %v6242_v54 = vpop.f32.mrf.mxu0  ;;  %1393 = vst.msk [vmem:[#allocation2 + $0x1ec] sm:$0xf] %vm328_vm4, %v1361_v47  ;;  %v4448_v3 = vor.u32 %v4798_v15, %v4447_v55  ;;  %2064 = vrot.lane.b32.xlu2 %v4181_v21, %s5008_s30  ;;  %v1562_v23 = vsel %vm5113_vm2, %v1557_v13, %v6239_v9  ;;  %v1547_v29 = vrot.slane %v1546_v22, 4  ;;  %v1859_v15 = vor.u32 %v1858_v20, %v6152_v41  ;;  %v6315_v45 = vld [vmem:[%s5091_s29 + $0x130] sm:$0xf] }
 0x12f   : > { %3580 = vmatmul.bf16.gmra.mxu2 %v4456_v27  ;;  %2306 = vst.msk [vmem:[#allocation2 + $0x3c] sm:$0xf] %vm230_vm3, %v2148_v30  ;;  %v1876_v21 = vshrl.u32 %v6263_v58, 16  ;;  %v2151_v48 = vrot.slane %v2149_v24, 4  ;;  %v6317_v49 = vrot.slane %v1869_v33, 4  ;;  %v2472_v31 = vshrl.u32 %v4217_v43, 16 }
 0x130   : > { %3498 = vmatmul.bf16.gmra.mxu0 %v4448_v3  ;;  %v1919_v2 = vpop.permute.xlu2 %1918  ;;  %1720 = vst.msk [vmem:[#allocation2 + $0x34] sm:$0xf] %vm230_vm3, %v1562_v23  ;;  %v1552_v18 = vsel %vm5113_vm2, %v1547_v29, %v6230_v63  ;;  %v2461_v63 = vsel %vm5113_vm2, %v2456_v62, %v6282_v12  ;;  %v1860_v47 = vrot.slane %v1859_v15, 4  ;;  %v6324_v52 = vld [vmem:[%s5091_s29 + $0xb8] sm:$0xf]  ;;  %v2155_v1 = vshll.u32 %v4190_v11, 16 }
 0x131   : > { %1965 = vst.msk [vmem:[#allocation2 + $0x34] sm:$0xf] %vm328_vm4, %v1919_v2  ;;  %v2152_v55 = vor.u32 %v2151_v48, %v6223_v37  ;;  %v6329_v0 = vrot.slane %v1876_v21, 4  ;;  %v2159_v59 = vshrl.u32 %v4190_v11, 16  ;;  %v2165_v37 = vshll.u32 %v6324_v52, 16 }
 0x132   : > { %v6276_v50 = vpop.f32.mrf.mxu2  ;;  %2066 = vrot.lane.b32.xlu0 %v4182_v53, %s5008_s30  ;;  %1719 = vst.msk [vmem:[#allocation2 + $0x14] sm:$0xf] %vm230_vm3, %v1552_v18  ;;  %v4794_v53 = vld [vmem:[#allocation2 + $0x1c4] sm:$0xf]  ;;  %v1865_v30 = vsel %vm5113_vm2, %v1860_v47, %v6270_v51  ;;  %v1565_v8 = vrot.slane %v1563_v61, 4  ;;  %v1875_v20 = vsel %vm5113_vm2, %v6317_v49, %v6302_v28  ;;  %v2478_v7 = vshll.u32 %v6315_v45, 16 }
 0x133   : > { %1478 = vrot.lane.b32.xlu1 %v4132_v5, %s5008_s30  ;;  %1999 = vst.msk [vmem:[#allocation2 + $0x78] sm:$0xf] %vm230_vm3, %v4158_v34  ;;  %v4745_v5 = vld [vmem:[#allocation2 + $0x34] sm:$0xf0]  ;;  %v2153_v6 = vrot.slane %v2152_v55, 4  ;;  %v2157_v13 = vrot.slane %v2155_v1, 5 }
 0x134   : > { %v773_v16 = vpop.permute.xlu0 %772  ;;  %v4795_v26 = vld [vmem:[#allocation2 + $0x1cc] sm:$0xf]  ;;  %v2161_v2 = vrot.slane %v2159_v59, 4  ;;  %v6344_v62 = vrot.slane %v2468_v35, 5  ;;  %v1566_v19 = vor.u32 %v1565_v8, %v6239_v9  ;;  %v1879_v9 = vor.u32 %v6329_v0, %v6302_v28  ;;  %v4159_v43 = vld [vmem:[%s5091_s29 + $0xb8] sm:$0xf] }
 0x135   : > { %v2045_v17 = vpop.permute.xlu1 %2044  ;;  %805 = vst.msk [vmem:[#allocation2 + $0x1e4] sm:$0xf] %vm328_vm4, %v773_v16  ;;  %v4457_v40 = vld [vmem:[#allocation2 + $0x1e8] sm:$0xf0]  ;;  %v2474_v16 = vrot.slane %v2472_v31, 4  ;;  %v6380_v47 = vrot.slane %v2478_v7, 5 }
 0x136   : > { %v3477_v4 = vpop.f32.mrf.mxu0  ;;  %2092 = vst.msk [vmem:[#allocation2 + $0x18] sm:$0xf] %vm328_vm4, %v2045_v17  ;;  %v4460_v41 = vor.u32 %v4795_v26, %v4457_v40  ;;  %1480 = vrot.lane.b32.xlu2 %v4133_v25, %s5008_s30  ;;  %v6350_v24 = vld [vmem:[%s5091_s29 + $0x8c] sm:$0xf]  ;;  %v2162_v29 = vor.u32 %v2161_v2, %v2157_v13  ;;  %v6352_v25 = vrot.slane %v2165_v37, 5  ;;  %v2464_v26 = vrot.slane %v2462_v46, 4 }
 0x137   : > { %v1525_v17 = vld [vmem:[%s5091_s29 + $0x14] sm:$0xf]  ;;  %v1567_v4 = vrot.slane %v1566_v19, 4  ;;  %2000 = vst.msk [vmem:[#allocation2 + $0x98] sm:$0xf] %vm230_vm3, %v4159_v43  ;;  %v1882_v48 = vshll.u32 %v6350_v24, 16 }
 0x138   : > { %3621 = vmatmul.bf16.gmra.mxu3 %v4460_v41  ;;  %v1463_v32 = vpop.permute.xlu2 %1462  ;;  %v2163_v33 = vrot.slane %v2162_v29, 4  ;;  %v1569_v40 = vshll.u32 %v1525_v17, 16  ;;  %v1573_v18 = vshrl.u32 %v1525_v17, 16  ;;  %v6367_v41 = vld [vmem:[%s5091_s29 + $0x18] sm:$0xf]  ;;  %v6386_v55 = vrot.slane %v1879_v9, 4 }
 0x139   : > { %1508 = vst.msk [vmem:[#allocation2 + $0x50] sm:$0xf] %vm328_vm4, %v1463_v32  ;;  %v1579_v61 = vshll.u32 %v6367_v41, 16  ;;  %v4184_v49 = vld [vmem:[%s5091_s29 + $0x12c] sm:$0xf]  ;;  %v2465_v32 = vor.u32 %v2464_v26, %v6282_v12 }
 0x13a   : > { %v3559_v27 = vpop.f32.mrf.mxu2  ;;  %2522 = vrot.lane.b32.xlu0 %v2451_v39, %s5008_s30  ;;  %v2168_v44 = vsel %vm5113_vm2, %v2163_v33, %v6352_v25  ;;  %v1571_v46 = vrot.slane %v1569_v40, 5  ;;  %v1575_v21 = vrot.slane %v1573_v18, 4  ;;  %v4134_v12 = vld [vmem:[%s5091_s29 + $0x88] sm:$0xf]  ;;  %v6411_v2 = vld [vmem:[%s5091_s29 + $0x134] sm:$0xf] }
 0x13b   : > { %2524 = vrot.lane.b32.xlu1 %v2461_v63, %s5008_s30  ;;  %v3598_v3 = vpop.f32.mrf.mxu3  ;;  %2308 = vst.msk [vmem:[#allocation2 + $0x7c] sm:$0xf] %vm230_vm3, %v2168_v44  ;;  %v6391_v31 = vrot.slane %v1579_v61, 5  ;;  %v4241_v29 = vld [vmem:[#allocation2 + $0x30] sm:$0xf0] }
 0x13c   : > { %v1459_v56 = vpop.permute.xlu0 %1458  ;;  %v3516_v58 = vpop.f32.mrf.mxu1  ;;  %v4449_v10 = vld [vmem:[#allocation2 + $0x1e0] sm:$0xf0]  ;;  %v1572_v27 = vsel %vm5113_vm2, %v1567_v4, %v1571_v46  ;;  %v6431_v17 = vld [vmem:[%s5091_s29 + $0x94] sm:$0xf] }
 0x13d   : > { %1506 = vst.msk [vmem:[#allocation2 + $0x10] sm:$0xf] %vm328_vm4, %v1459_v56  ;;  %v3517_v51 = vadd.f32 %v3516_v58, %v6242_v54  ;;  %v1461_v14 = vpop.permute.xlu1 %1460  ;;  %v4452_v57 = vor.u32 %v4794_v53, %v4449_v10  ;;  %v4247_v22 = vld [vmem:[#allocation2 + $0x18] sm:$0xf]  ;;  %v2158_v54 = vsel %vm5113_vm2, %v2153_v6, %v2157_v13  ;;  %v1576_v53 = vor.u32 %v1575_v21, %v1571_v46  ;;  %v4160_v56 = vld [vmem:[%s5091_s29 + $0xbc] sm:$0xf] }
 0x13e   : > { %1507 = vst.msk [vmem:[#allocation2 + $0x30] sm:$0xf] %vm328_vm4, %v1461_v14  ;;  %v4248_v23 = vor.u32 %v4745_v5, %v4247_v22  ;;  %1936 = vrot.lane.b32.xlu2 %v1865_v30, %s5008_s30  ;;  %v1886_v5 = vshrl.u32 %v6350_v24, 16  ;;  %v2169_v30 = vshrl.u32 %v6324_v52, 16  ;;  %v6403_v10 = vrot.slane %v1882_v48, 5 }
 0x13f   : > { %v3558_v15 = vadd.f32 %v6276_v50, %v3517_v51  ;;  %3539 = vmatmul.bf16.gmra.mxu1 %v4452_v57  ;;  %2307 = vst.msk [vmem:[#allocation2 + $0x5c] sm:$0xf] %vm230_vm3, %v2158_v54  ;;  %v2482_v50 = vshrl.u32 %v6315_v45, 16  ;;  %v2475_v45 = vor.u32 %v2474_v16, %v6344_v62  ;;  %v1577_v6 = vrot.slane %v1576_v53, 4  ;;  %v1399_v51 = vld [vmem:[%s5091_s29 + $0x1c] sm:$0xf] }
 0x140   : > { %3716 = vmatmul.bf16.vlgmr.msrb.gmra.mxu2 %v4248_v23  ;;  %v2509_v34 = vpop.permute.xlu2 %2508  ;;  %1721 = vst.msk [vmem:[#allocation2 + $0x54] sm:$0xf] %vm230_vm3, %v1572_v27  ;;  %v2466_v52 = vrot.slane %v2465_v32, 4  ;;  %v1398_v14 = vld [vmem:[%s5091_s29 + $0x18] sm:$0xf]  ;;  %v1888_v19 = vrot.slane %v1886_v5, 4 }
 0x141   : > { %v6369_v28 = vadd.f32 %v3598_v3, %v3558_v15  ;;  %2553 = vst.msk [vmem:[#allocation2 + $0x7c] sm:$0xf] %vm328_vm4, %v2509_v34  ;;  %v4135_v3 = vld [vmem:[%s5091_s29 + $0x8c] sm:$0xf]  ;;  %v2484_v8 = vrot.slane %v2482_v50, 4  ;;  %v6401_v58 = vrot.slane %v2475_v45, 4  ;;  %v1582_v13 = vsel %vm5113_vm2, %v1577_v6, %v6391_v31 }
 0x142   : > { %1938 = vrot.lane.b32.xlu0 %v1875_v20, %s5008_s30  ;;  %v1583_v20 = vshrl.u32 %v6367_v41, 16  ;;  %2001 = vst.msk [vmem:[#allocation2 + $0xb8] sm:$0xf] %vm230_vm3, %v4160_v56  ;;  %v6418_v57 = vld [vmem:[%s5091_s29 + $0x90] sm:$0xf]  ;;  %v2171_v23 = vrot.slane %v2169_v30, 4  ;;  %v2471_v54 = vsel %vm5113_vm2, %v2466_v52, %v6344_v62  ;;  %v1889_v33 = vor.u32 %v1888_v19, %v6403_v10 }
 0x143   : > { %2068 = vrot.lane.b32.xlu1 %v4183_v60, %s5008_s30  ;;  %v6377_v39 = vpop.f32.mrf.mxu2  ;;  %v3600_v63 = vpop.f32.mrf.mxu3  ;;  %v4741_v22 = vld [vmem:[#allocation2 + $0x1c] sm:$0xf]  ;;  %1722 = vst.msk [vmem:[#allocation2 + $0x74] sm:$0xf] %vm230_vm3, %v1582_v13  ;;  %v2485_v60 = vor.u32 %v2484_v8, %v6380_v47  ;;  %v2488_v15 = vshll.u32 %v6411_v2, 16  ;;  %v1892_v26 = vshll.u32 %v6418_v57, 16  ;;  %v2481_v43 = vsel %vm5113_vm2, %v6401_v58, %v6380_v47 }
 0x144   : > { %v2505_v35 = vpop.permute.xlu0 %2504  ;;  %v3518_v38 = vpop.f32.mrf.mxu1  ;;  %v4239_v11 = vld [vmem:[#allocation2 + $0x10] sm:$0xf]  ;;  %1415 = vst.msk [vmem:[#allocation2 + $0xb0] sm:$0xf] %vm230_vm3, %v1399_v51  ;;  %v2172_v34 = vor.u32 %v2171_v23, %v6352_v25  ;;  %v1885_v50 = vsel %vm5113_vm2, %v6386_v55, %v6403_v10  ;;  %v1585_v41 = vrot.slane %v1583_v20, 4  ;;  %v1890_v61 = vrot.slane %v1889_v33, 4 }
 0x145   : > { %2551 = vst.msk [vmem:[#allocation2 + $0x3c] sm:$0xf] %vm328_vm4, %v2505_v35  ;;  %v1917_v0 = vpop.permute.xlu1 %1916  ;;  %v3479_v1 = vpop.f32.mrf.mxu0  ;;  %v4744_v59 = vld [vmem:[#allocation2 + $0x2c] sm:$0xf0]  ;;  %v6447_v21 = vrot.slane %v2485_v60, 4  ;;  %v6450_v45 = vrot.slane %v2488_v15, 5 }
 0x146   : > { %1964 = vst.msk [vmem:[#allocation2 + $0x14] sm:$0xf] %vm328_vm4, %v1917_v0  ;;  %v4240_v37 = vor.u32 %v4744_v59, %v4239_v11  ;;  %2070 = vrot.lane.b32.xlu2 %v4184_v49, %s5008_s30  ;;  %v4192_v63 = vld [vmem:[%s5091_s29 + $0xbc] sm:$0xf]  ;;  %v2492_v47 = vshrl.u32 %v6411_v2, 16  ;;  %v2173_v48 = vrot.slane %v2172_v34, 4  ;;  %v1586_v59 = vor.u32 %v1585_v41, %v6391_v31 }
 0x147   : > { %1414 = vst.msk [vmem:[#allocation2 + $0x90] sm:$0xf] %vm230_vm3, %v1398_v14  ;;  %v2175_v49 = vshll.u32 %v4192_v63, 16  ;;  %v1527_v32 = vld [vmem:[%s5091_s29 + $0x1c] sm:$0xf]  ;;  %v6455_v11 = vrot.slane %v1892_v26, 5 }
 0x148   : > { %3634 = vmatmul.bf16.vlgmr.msrb.gmra.mxu0 %v4240_v37  ;;  %v2053_v7 = vpop.permute.xlu2 %2052  ;;  %v1896_v55 = vshrl.u32 %v6418_v57, 16  ;;  %v2179_v27 = vshrl.u32 %v4192_v63, 16  ;;  %v6459_v53 = vld [vmem:[%s5091_s29 + $0xc0] sm:$0xf]  ;;  %v1902_v0 = vshll.u32 %v6431_v17, 16  ;;  %v1593_v5 = vshrl.u32 %v1527_v32, 16 }
 0x149   : > { %2096 = vst.msk [vmem:[#allocation2 + $0x98] sm:$0xf] %vm328_vm4, %v2053_v7  ;;  %v2185_v37 = vshll.u32 %v6459_v53, 16  ;;  %v6471_v6 = vld [vmem:[%s5091_s29 + $0x20] sm:$0xf]  ;;  %v1587_v56 = vrot.slane %v1586_v59, 4 }
 0x14a   : > { %1482 = vrot.lane.b32.xlu0 %v4134_v12, %s5008_s30  ;;  %v1589_v12 = vshll.u32 %v1527_v32, 16  ;;  %v2181_v30 = vrot.slane %v2179_v27, 4  ;;  %v1906_v52 = vshrl.u32 %v6431_v17, 16  ;;  %v4185_v57 = vld [vmem:[%s5091_s29 + $0x130] sm:$0xf]  ;;  %v1595_v23 = vrot.slane %v1593_v5, 4 }
 0x14b   : > { %1484 = vrot.lane.b32.xlu1 %v4135_v3, %s5008_s30  ;;  %v3563_v24 = vpop.f32.mrf.mxu2  ;;  %v1895_v3 = vsel %vm5113_vm2, %v1890_v61, %v6455_v11  ;;  %v6479_v13 = vrot.slane %v2185_v37, 5  ;;  %v6485_v60 = vld [vmem:[%s5091_s29 + $0x98] sm:$0x1]  ;;  %v2494_v33 = vrot.slane %v2492_v47, 4  ;;  %v4136_v63 = vld [vmem:[%s5091_s29 + $0x90] sm:$0xf] }
 0x14c   : > { %v2049_v16 = vpop.permute.xlu0 %2048  ;;  %v4249_v9 = vld [vmem:[#allocation2 + $0x38] sm:$0xf0]  ;;  %v1591_v58 = vrot.slane %v1589_v12, 5  ;;  %v1599_v24 = vshll.u32 %v6471_v6, 16  ;;  %v1912_v61 = vshll.u32 %v6485_v60, 16  ;;  %v1603_v32 = vshrl.u32 %v6471_v6, 16 }
 0x14d   : > { %2094 = vst.msk [vmem:[#allocation2 + $0x58] sm:$0xf] %vm328_vm4, %v2049_v16  ;;  %v3520_v62 = vpop.f32.mrf.mxu1  ;;  %v2051_v4 = vpop.permute.xlu1 %2050  ;;  %v4740_v40 = vld [vmem:[#allocation2 + $0x14] sm:$0xf]  ;;  %v4252_v18 = vor.u32 %v4741_v22, %v4249_v9  ;;  %v4162_v16 = vld [vmem:[%s5091_s29 + $0xc4] sm:$0xf] }
 0x14e   : > { %v3521_v25 = vadd.f32 %v3520_v62, %v3479_v1  ;;  %2095 = vst.msk [vmem:[#allocation2 + $0x78] sm:$0xf] %vm328_vm4, %v2051_v4  ;;  %v3481_v44 = vpop.f32.mrf.mxu0  ;;  %v4244_v46 = vor.u32 %v4740_v40, %v4241_v29  ;;  %2526 = vrot.lane.b32.xlu2 %v2471_v54, %s5008_s30  ;;  %v2177_v1 = vrot.slane %v2175_v49, 5  ;;  %v4186_v22 = vld [vmem:[%s5091_s29 + $0x134] sm:$0xf]  ;;  %v1592_v19 = vsel %vm5113_vm2, %v1587_v56, %v1591_v58 }
 0x14f   : > { %3757 = vmatmul.bf16.vlgmr.msrb.gmra.mxu3 %v4252_v18  ;;  %v6491_v54 = vrot.slane %v1896_v55, 4  ;;  %v6495_v9 = vrot.slane %v1902_v0, 5  ;;  %1723 = vst.msk [vmem:[#allocation2 + $0x94] sm:$0xf] %vm230_vm3, %v1592_v19  ;;  %v1596_v17 = vor.u32 %v1595_v23, %v1591_v58  ;;  %v6498_v26 = vrot.slane %v1599_v24, 5 }
 0x150   : > { %3675 = vmatmul.bf16.vlgmr.msrb.gmra.mxu1 %v4244_v46  ;;  %v3562_v35 = vadd.f32 %v6377_v39, %v3521_v25  ;;  %v1469_v38 = vpop.permute.xlu2 %1468  ;;  %v2178_v31 = vsel %vm5113_vm2, %v2173_v48, %v2177_v1  ;;  %v2182_v7 = vor.u32 %v2181_v30, %v2177_v1  ;;  %2003 = vst.msk [vmem:[#allocation2 + $0xf8] sm:$0xf] %vm230_vm3, %v4162_v16  ;;  %v4161_v4 = vld [vmem:[%s5091_s29 + $0xc0] sm:$0xf]  ;;  %v4220_v40 = vld [vmem:[%s5091_s29 + $0x138] sm:$0x1] }
 0x151   : > { %1511 = vst.msk [vmem:[#allocation2 + $0xb0] sm:$0xf] %vm328_vm4, %v1469_v38  ;;  %v4281_v18 = vld [vmem:[#allocation2 + $0x78] sm:$0xf0]  ;;  %v1597_v41 = vrot.slane %v1596_v17, 4  ;;  %v2495_v25 = vor.u32 %v2494_v33, %v6450_v45  ;;  %v2498_v47 = vshll.u32 %v4220_v40, 16  ;;  %v1899_v0 = vor.u32 %v6491_v54, %v6455_v11 }
 0x152   : > { %2528 = vrot.lane.b32.xlu0 %v2481_v43, %s5008_s30  ;;  %v3602_v39 = vpop.f32.mrf.mxu3  ;;  %2309 = vst.msk [vmem:[#allocation2 + $0x9c] sm:$0xf] %vm230_vm3, %v2178_v31  ;;  %v2183_v15 = vrot.slane %v2182_v7, 4  ;;  %v1908_v43 = vrot.slane %v1906_v52, 4  ;;  %v4271_v46 = vld [vmem:[#allocation2 + $0x50] sm:$0xf]  ;;  %v2491_v58 = vsel %vm5113_vm2, %v6447_v21, %v6450_v45 }
 0x153   : > { %1940 = vrot.lane.b32.xlu1 %v1885_v50, %s5008_s30  ;;  %v6473_v8 = vadd.f32 %v3602_v39, %v3562_v35  ;;  %v2189_v50 = vshrl.u32 %v6459_v53, 16  ;;  %v1602_v49 = vsel %vm5113_vm2, %v1597_v41, %v6498_v26  ;;  %2002 = vst.msk [vmem:[#allocation2 + $0xd8] sm:$0xf] %vm230_vm3, %v4161_v4  ;;  %v6521_v35 = vrot.slane %v2495_v25, 4  ;;  %v1400_v38 = vld [vmem:[%s5091_s29 + $0x20] sm:$0xf] }
 0x154   : > { %v1465_v10 = vpop.permute.xlu0 %1464  ;;  %v4279_v20 = vld [vmem:[#allocation2 + $0x58] sm:$0xf]  ;;  %v2188_v62 = vsel %vm5113_vm2, %v2183_v15, %v6479_v13  ;;  %1724 = vst.msk [vmem:[#allocation2 + $0xb4] sm:$0xf] %vm230_vm3, %v1602_v49  ;;  %v4194_v1 = vld [vmem:[%s5091_s29 + $0xc4] sm:$0xf]  ;;  %v1909_v6 = vor.u32 %v1908_v43, %v6495_v9 }
 0x155   : > { %1509 = vst.msk [vmem:[#allocation2 + $0x70] sm:$0xf] %vm328_vm4, %v1465_v10  ;;  %v3522_v2 = vpop.f32.mrf.mxu1  ;;  %v2507_v51 = vpop.permute.xlu1 %2506  ;;  %v4753_v14 = vld [vmem:[#allocation2 + $0x74] sm:$0xf0]  ;;  %v2191_v5 = vrot.slane %v2189_v50, 4  ;;  %v2195_v30 = vshll.u32 %v4194_v1, 16 }
 0x156   : > { %2552 = vst.msk [vmem:[#allocation2 + $0x5c] sm:$0xf] %vm328_vm4, %v2507_v51  ;;  %v4280_v29 = vor.u32 %v4753_v14, %v4279_v20  ;;  %1942 = vrot.lane.b32.xlu2 %v1895_v3, %s5008_s30  ;;  %v4137_v3 = vld [vmem:[%s5091_s29 + $0x94] sm:$0xf]  ;;  %v2500_v11 = vrot.slane %v2498_v47, 5  ;;  %v2199_v31 = vshrl.u32 %v4194_v1, 16 }
 0x157   : > { %2310 = vst.msk [vmem:[#allocation2 + $0xbc] sm:$0xf] %vm230_vm3, %v2188_v62  ;;  %v1401_v56 = vld [vmem:[%s5091_s29 + $0x24] sm:$0xf]  ;;  %v2192_v10 = vor.u32 %v2191_v5, %v6479_v13  ;;  %v2197_v20 = vrot.slane %v2195_v30, 5  ;;  %v1605_v7 = vrot.slane %v1603_v32, 4 }
 0x158   : > { %3720 = vmatmul.bf16.gmra.mxu2 %v4280_v29  ;;  %v1925_v34 = vpop.permute.xlu2 %1924  ;;  %1416 = vst.msk [vmem:[#allocation2 + $0xd0] sm:$0xf] %vm230_vm3, %v1400_v38  ;;  %v1529_v52 = vld [vmem:[%s5091_s29 + $0x24] sm:$0xf]  ;;  %v1900_v2 = vrot.slane %v1899_v0, 4  ;;  %v1910_v13 = vrot.slane %v1909_v6, 4  ;;  %v2501_v19 = vsel %vm5113_vm2, %v6521_v35, %v2500_v11 }
 0x159   : > { %1968 = vst.msk [vmem:[#allocation2 + $0x94] sm:$0xf] %vm328_vm4, %v1925_v34  ;;  %v6543_v14 = vld [vmem:[%s5091_s29 + $0xc8] sm:$0xf]  ;;  %v1609_v45 = vshll.u32 %v1529_v52, 16  ;;  %v1914_v60 = vrot.slane %v1912_v61, 5  ;;  %v1606_v33 = vor.u32 %v1605_v7, %v6498_v26 }
 0x15a   : > { %2072 = vrot.lane.b32.xlu0 %v4185_v57, %s5008_s30  ;;  %v3604_v44 = vpop.f32.mrf.mxu3  ;;  %1417 = vst.msk [vmem:[#allocation2 + $0xf0] sm:$0xf] %vm230_vm3, %v1401_v56  ;;  %v2193_v57 = vrot.slane %v2192_v10, 4  ;;  %v2205_v21 = vshll.u32 %v6543_v14, 16  ;;  %v6553_v23 = vld [vmem:[%s5091_s29 + $0x28] sm:$0xf]  ;;  %v1905_v25 = vsel %vm5113_vm2, %v1900_v2, %v6495_v9 }
 0x15b   : > { %2074 = vrot.lane.b32.xlu1 %v4186_v22, %s5008_s30  ;;  %v6514_v48 = vpop.f32.mrf.mxu2  ;;  %v2201_v22 = vrot.slane %v2199_v31, 4  ;;  %v1613_v24 = vshrl.u32 %v1529_v52, 16  ;;  %v1611_v40 = vrot.slane %v1609_v45, 5  ;;  %v1915_v47 = vsel %vm5113_vm2, %v1910_v13, %v1914_v60  ;;  %v4311_v0 = vld [vmem:[#allocation2 + $0x98] sm:$0xf] }
 0x15c   : > { %v1921_v55 = vpop.permute.xlu0 %1920  ;;  %v3483_v27 = vpop.f32.mrf.mxu0  ;;  %v4752_v53 = vld [vmem:[#allocation2 + $0x6c] sm:$0xf0]  ;;  %v2198_v15 = vsel %vm5113_vm2, %v2193_v57, %v2197_v20  ;;  %v6557_v17 = vrot.slane %v2205_v21, 5  ;;  %v1607_v9 = vrot.slane %v1606_v33, 4  ;;  %v4196_v30 = vld [vmem:[%s5091_s29 + $0xcc] sm:$0xf] }
 0x15d   : > { %1966 = vst.msk [vmem:[#allocation2 + $0x54] sm:$0xf] %vm328_vm4, %v1921_v55  ;;  %v1923_v59 = vpop.permute.xlu1 %1922  ;;  %v4272_v12 = vor.u32 %v4752_v53, %v4271_v46  ;;  %v4749_v39 = vld [vmem:[#allocation2 + $0x5c] sm:$0xf]  ;;  %v2202_v16 = vor.u32 %v2201_v22, %v2197_v20  ;;  %v1619_v46 = vshll.u32 %v6553_v23, 16  ;;  %v2215_v52 = vshll.u32 %v4196_v30, 16 }
 0x15e   : > { %1967 = vst.msk [vmem:[#allocation2 + $0x74] sm:$0xf] %vm328_vm4, %v1923_v59  ;;  %v4284_v37 = vor.u32 %v4749_v39, %v4281_v18  ;;  %1486 = vrot.lane.b32.xlu2 %v4136_v63, %s5008_s30  ;;  %v1615_v18 = vrot.slane %v1613_v24, 4  ;;  %v4760_v53 = vld [vmem:[#allocation2 + $0xac] sm:$0xf0]  ;;  %v2219_v7 = vshrl.u32 %v4196_v30, 16 }
 0x15f   : > { %3638 = vmatmul.bf16.gmra.mxu0 %v4272_v12  ;;  %2311 = vst.msk [vmem:[#allocation2 + $0xdc] sm:$0xf] %vm230_vm3, %v2198_v15  ;;  %v2203_v44 = vrot.slane %v2202_v16, 4  ;;  %v6573_v32 = vrot.slane %v1619_v46, 5  ;;  %v2209_v12 = vshrl.u32 %v6543_v14, 16  ;;  %v2217_v57 = vrot.slane %v2215_v52, 5 }
 0x160   : > { %3761 = vmatmul.bf16.gmra.mxu3 %v4284_v37  ;;  %v2059_v51 = vpop.permute.xlu2 %2058  ;;  %v1616_v63 = vor.u32 %v1615_v18, %v1611_v40  ;;  %v4163_v39 = vld [vmem:[%s5091_s29 + $0xc8] sm:$0xf]  ;;  %v4164_v20 = vld [vmem:[%s5091_s29 + $0xcc] sm:$0xf]  ;;  %v6600_v14 = vld [vmem:[%s5091_s29 + $0xd0] sm:$0xf] }
 0x161   : > { %2099 = vst.msk [vmem:[#allocation2 + $0xf8] sm:$0xf] %vm328_vm4, %v2059_v51  ;;  %v2208_v49 = vsel %vm5113_vm2, %v2203_v44, %v6557_v17  ;;  %v1402_v56 = vld [vmem:[%s5091_s29 + $0x28] sm:$0xf]  ;;  %v2211_v2 = vrot.slane %v2209_v12, 4  ;;  %v2221_v22 = vrot.slane %v2219_v7, 4 }
 0x162   : > { %1488 = vrot.lane.b32.xlu0 %v4137_v3, %s5008_s30  ;;  %2312 = vst.msk [vmem:[#allocation2 + $0xfc] sm:$0xf] %vm230_vm3, %v2208_v49  ;;  %v1617_v55 = vrot.slane %v1616_v63, 4  ;;  %v2225_v21 = vshll.u32 %v6600_v14, 16  ;;  %v1623_v60 = vshrl.u32 %v6553_v23, 16 }
 0x163   : > { %2530 = vrot.lane.b32.xlu1 %v2491_v58, %s5008_s30  ;;  %v3567_v29 = vpop.f32.mrf.mxu2  ;;  %v3606_v54 = vpop.f32.mrf.mxu3  ;;  %2004 = vst.msk [vmem:[#allocation2 + $0x118] sm:$0xf] %vm230_vm3, %v4163_v39  ;;  %v2212_v45 = vor.u32 %v2211_v2, %v6557_v17  ;;  %v2222_v24 = vor.u32 %v2221_v22, %v2217_v57  ;;  %v1531_v33 = vld [vmem:[%s5091_s29 + $0x2c] sm:$0xf]  ;;  %v4165_v30 = vld [vmem:[%s5091_s29 + $0xd0] sm:$0xf] }
 0x164   : > { %v2055_v34 = vpop.permute.xlu0 %2054  ;;  %v3485_v62 = vpop.f32.mrf.mxu0  ;;  %v4748_v4 = vld [vmem:[#allocation2 + $0x54] sm:$0xf]  ;;  %1418 = vst.msk [vmem:[#allocation2 + $0x110] sm:$0xf] %vm230_vm3, %v1402_v56  ;;  %v6607_v29 = vrot.slane %v2225_v21, 5  ;;  %v1629_v18 = vshll.u32 %v1531_v33, 16 }
 0x165   : > { %2097 = vst.msk [vmem:[#allocation2 + $0xb8] sm:$0xf] %vm328_vm4, %v2055_v34  ;;  %v3524_v43 = vpop.f32.mrf.mxu1  ;;  %v1467_v50 = vpop.permute.xlu1 %1466  ;;  %v4273_v41 = vld [vmem:[#allocation2 + $0x70] sm:$0xf0] }
 0x166   : > { %v3525_v26 = vadd.f32 %v3524_v43, %v3483_v27  ;;  %1510 = vst.msk [vmem:[#allocation2 + $0x90] sm:$0xf] %vm328_vm4, %v1467_v50  ;;  %v4276_v61 = vor.u32 %v4748_v4, %v4273_v41  ;;  %2532 = vrot.lane.b32.xlu2 %v2501_v19, %s5008_s30  ;;  %v1612_v27 = vsel %vm5113_vm2, %v1607_v9, %v1611_v40  ;;  %v1403_v19 = vld [vmem:[%s5091_s29 + $0x2c] sm:$0xf]  ;;  %v2223_v4 = vrot.slane %v2222_v24, 4 }
 0x167   : > { %1725 = vst.msk [vmem:[#allocation2 + $0xd4] sm:$0xf] %vm230_vm3, %v1612_v27  ;;  %v1633_v43 = vshrl.u32 %v1531_v33, 16  ;;  %v1625_v41 = vrot.slane %v1623_v60, 4  ;;  %v1631_v44 = vrot.slane %v1629_v18, 5 }
 0x168   : > { %v3566_v35 = vadd.f32 %v6514_v48, %v3525_v26  ;;  %3679 = vmatmul.bf16.gmra.mxu1 %v4276_v61  ;;  %v2515_v38 = vpop.permute.xlu2 %2514  ;;  %v1622_v48 = vsel %vm5113_vm2, %v1617_v55, %v6573_v32  ;;  %2005 = vst.msk [vmem:[#allocation2 + $0x138] sm:$0xf] %vm230_vm3, %v4164_v20  ;;  %v2228_v50 = vsel %vm5113_vm2, %v2223_v4, %v6607_v29  ;;  %v6623_v61 = vld [vmem:[%s5091_s29 + $0x30] sm:$0xf]  ;;  %v2229_v20 = vshrl.u32 %v6600_v14, 16 }
 0x169   : > { %2556 = vst.msk [vmem:[#allocation2 + $0xdc] sm:$0xf] %vm328_vm4, %v2515_v38  ;;  %v1635_v46 = vrot.slane %v1633_v43, 4  ;;  %v1626_v26 = vor.u32 %v1625_v41, %v6573_v32  ;;  %v1639_v49 = vshll.u32 %v6623_v61, 16  ;;  %v4166_v52 = vld [vmem:[%s5091_s29 + $0xd4] sm:$0xf] }
 0x16a   : > { %1944 = vrot.lane.b32.xlu0 %v1905_v25, %s5008_s30  ;;  %v6586_v1 = vadd.f32 %v3606_v54, %v3566_v35  ;;  %1726 = vst.msk [vmem:[#allocation2 + $0xf4] sm:$0xf] %vm230_vm3, %v1622_v48  ;;  %v2213_v54 = vrot.slane %v2212_v45, 4  ;;  %v4769_v35 = vld [vmem:[#allocation2 + $0xf4] sm:$0xf0] }
 0x16b   : > { %1946 = vrot.lane.b32.xlu1 %v1915_v47, %s5008_s30  ;;  %v3608_v59 = vpop.f32.mrf.mxu3  ;;  %1419 = vst.msk [vmem:[#allocation2 + $0x130] sm:$0xf] %vm230_vm3, %v1403_v19  ;;  %v1636_v47 = vor.u32 %v1635_v46, %v1631_v44  ;;  %v1627_v38 = vrot.slane %v1626_v26, 4  ;;  %v1404_v19 = vld [vmem:[%s5091_s29 + $0x30] sm:$0xf] }
 0x16c   : > { %v2511_v3 = vpop.permute.xlu0 %2510  ;;  %v4761_v5 = vld [vmem:[#allocation2 + $0xb4] sm:$0xf0]  ;;  %v2218_v17 = vsel %vm5113_vm2, %v2213_v54, %v2217_v57  ;;  %2314 = vst.msk [vmem:[#allocation2 + $0x13c] sm:$0xf] %vm230_vm3, %v2228_v50  ;;  %v6626_v59 = vrot.slane %v1639_v49, 5  ;;  %v2231_v54 = vrot.slane %v2229_v20, 4 }
 0x16d   : > { %2554 = vst.msk [vmem:[#allocation2 + $0x9c] sm:$0xf] %vm328_vm4, %v2511_v3  ;;  %v3526_v37 = vpop.f32.mrf.mxu1  ;;  %v2513_v6 = vpop.permute.xlu1 %2512  ;;  %v4303_v11 = vld [vmem:[#allocation2 + $0x90] sm:$0xf]  ;;  %v4312_v31 = vor.u32 %v4761_v5, %v4311_v0  ;;  %v1637_v48 = vrot.slane %v1636_v47, 4  ;;  %v1632_v5 = vsel %vm5113_vm2, %v1627_v38, %v1631_v44 }
 0x16e   : > { %2555 = vst.msk [vmem:[#allocation2 + $0xbc] sm:$0xf] %vm328_vm4, %v2513_v6  ;;  %v3487_v58 = vpop.f32.mrf.mxu0  ;;  %v4304_v10 = vor.u32 %v4760_v53, %v4303_v11  ;;  %v4756_v53 = vld [vmem:[#allocation2 + $0x94] sm:$0xf]  ;;  %v6656_v4 = vld [vmem:[%s5091_s29 + $0xd8] sm:$0xf] }
 0x16f   : > { %3724 = vmatmul.bf16.gmra.mxu2 %v4312_v31  ;;  %2313 = vst.msk [vmem:[#allocation2 + $0x11c] sm:$0xf] %vm230_vm3, %v2218_v17  ;;  %v1642_v11 = vsel %vm5113_vm2, %v1637_v48, %v6626_v59  ;;  %v4198_v57 = vld [vmem:[%s5091_s29 + $0xd4] sm:$0xf] }
 0x170   : > { %3642 = vmatmul.bf16.gmra.mxu0 %v4304_v10  ;;  %v1931_v51 = vpop.permute.xlu2 %1930  ;;  %1727 = vst.msk [vmem:[#allocation2 + $0x114] sm:$0xf] %vm230_vm3, %v1632_v5  ;;  %v2235_v24 = vshll.u32 %v4198_v57, 16  ;;  %v2239_v14 = vshrl.u32 %v4198_v57, 16  ;;  %v4765_v43 = vld [vmem:[#allocation2 + $0xdc] sm:$0xf] }
 0x171   : > { %1971 = vst.msk [vmem:[#allocation2 + $0xf4] sm:$0xf] %vm328_vm4, %v1931_v51  ;;  %v1533_v44 = vld [vmem:[%s5091_s29 + $0x34] sm:$0xf] }
 0x172   : > { %v3569_v13 = vpop.f32.mrf.mxu2  ;;  %2006 = vst.msk [vmem:[#allocation2 + $0x158] sm:$0xf] %vm230_vm3, %v4165_v30  ;;  %v2241_v33 = vrot.slane %v2239_v14, 4 }
 0x173   : > { %1728 = vst.msk [vmem:[#allocation2 + $0x134] sm:$0xf] %vm230_vm3, %v1642_v11 }
 0x174   : > { %v1927_v15 = vpop.permute.xlu0 %1926  ;;  %v4757_v16 = vld [vmem:[#allocation2 + $0x9c] sm:$0xf]  ;;  %2007 = vst.msk [vmem:[#allocation2 + $0x178] sm:$0xf] %vm230_vm3, %v4166_v52 }
 0x175   : > { %1969 = vst.msk [vmem:[#allocation2 + $0xb4] sm:$0xf] %vm328_vm4, %v1927_v15  ;;  %v2057_v34 = vpop.permute.xlu1 %2056  ;;  %v4313_v62 = vld [vmem:[#allocation2 + $0xb8] sm:$0xf0] }
 0x176   : > { %2098 = vst.msk [vmem:[#allocation2 + $0xd8] sm:$0xf] %vm328_vm4, %v2057_v34  ;;  %v3489_v23 = vpop.f32.mrf.mxu0  ;;  %v4316_v40 = vor.u32 %v4757_v16, %v4313_v62  ;;  %v2237_v16 = vrot.slane %v2235_v24, 5  ;;  %v1643_v34 = vshrl.u32 %v6623_v61, 16  ;;  %v2232_v62 = vor.u32 %v2231_v54, %v6607_v29 }
 0x177   : > { %1420 = vst.msk [vmem:[#allocation2 + $0x150] sm:$0xf] %vm230_vm3, %v1404_v19  ;;  %v2245_v23 = vshll.u32 %v6656_v4, 16 }
 0x178   : > { %3765 = vmatmul.bf16.gmra.mxu3 %v4316_v40  ;;  %v1475_v25 = vpop.permute.xlu2 %1474  ;;  %v2242_v17 = vor.u32 %v2241_v33, %v2237_v16  ;;  %v4337_v18 = vld [vmem:[#allocation2 + $0xf0] sm:$0xf0]  ;;  %v2233_v50 = vrot.slane %v2232_v62, 4 }
 0x179   : > { %1514 = vst.msk [vmem:[#allocation2 + $0x110] sm:$0xf] %vm328_vm4, %v1475_v25  ;;  %v6660_v26 = vrot.slane %v2245_v23, 5 }
 0x17a   : > { %v3571_v63 = vpop.f32.mrf.mxu2  ;;  %v2243_v46 = vrot.slane %v2242_v17, 4  ;;  %v2238_v49 = vsel %vm5113_vm2, %v2233_v50, %v2237_v16  ;;  %v1406_v16 = vld [vmem:[%s5091_s29 + $0x38] sm:$0xf]  ;;  %v4200_v17 = vld [vmem:[%s5091_s29 + $0xdc] sm:$0xf] }
 0x17b   : > { %v3610_v9 = vpop.f32.mrf.mxu3  ;;  %2315 = vst.msk [vmem:[#allocation2 + $0x15c] sm:$0xf] %vm230_vm3, %v2238_v49 }
 0x17c   : > { %v1471_v55 = vpop.permute.xlu0 %1470  ;;  %v3528_v27 = vpop.f32.mrf.mxu1  ;;  %v4305_v0 = vld [vmem:[#allocation2 + $0xb0] sm:$0xf0]  ;;  %1422 = vst.msk [vmem:[#allocation2 + $0x190] sm:$0xf] %vm230_vm3, %v1406_v16  ;;  %v4169_v16 = vld [vmem:[%s5091_s29 + $0xe0] sm:$0xf] }
 0x17d   : > { %1512 = vst.msk [vmem:[#allocation2 + $0xd0] sm:$0xf] %vm328_vm4, %v1471_v55  ;;  %v3529_v32 = vadd.f32 %v3528_v27, %v3487_v58  ;;  %v1473_v12 = vpop.permute.xlu1 %1472  ;;  %v4308_v39 = vor.u32 %v4756_v53, %v4305_v0  ;;  %v4343_v3 = vld [vmem:[#allocation2 + $0xd8] sm:$0xf]  ;;  %v1653_v53 = vshrl.u32 %v1533_v44, 16  ;;  %v2248_v0 = vsel %vm5113_vm2, %v2243_v46, %v6660_v26 }
 0x17e   : > { %1513 = vst.msk [vmem:[#allocation2 + $0xf0] sm:$0xf] %vm328_vm4, %v1473_v12  ;;  %v4344_v37 = vor.u32 %v4769_v35, %v4343_v3  ;;  %v1649_v35 = vshll.u32 %v1533_v44, 16  ;;  %v1534_v3 = vld [vmem:[%s5091_s29 + $0x38] sm:$0xf] }
 0x17f   : > { %v3570_v6 = vadd.f32 %v3569_v13, %v3529_v32  ;;  %3683 = vmatmul.bf16.gmra.mxu1 %v4308_v39  ;;  %v1405_v13 = vld [vmem:[%s5091_s29 + $0x34] sm:$0xf]  ;;  %2316 = vst.msk [vmem:[#allocation2 + $0x17c] sm:$0xf] %vm230_vm3, %v2248_v0  ;;  %v1655_v30 = vrot.slane %v1653_v53, 4 }
 0x180   : > { %3728 = vmatmul.bf16.gmra.mxu2 %v4344_v37  ;;  %v2521_v31 = vpop.permute.xlu2 %2520  ;;  %1421 = vst.msk [vmem:[#allocation2 + $0x170] sm:$0xf] %vm230_vm3, %v1405_v13  ;;  %v1651_v32 = vrot.slane %v1649_v35, 5  ;;  %v1659_v37 = vshll.u32 %v1534_v3, 16  ;;  %v4367_v24 = vld [vmem:[#allocation2 + $0x110] sm:$0xf] }
 0x181   : > { %2559 = vst.msk [vmem:[#allocation2 + $0x13c] sm:$0xf] %vm328_vm4, %v2521_v31  ;;  %v6639_v56 = vadd.f32 %v3610_v9, %v3570_v6  ;;  %v1645_v9 = vrot.slane %v1643_v34, 4 }
 0x182   : > { %2010 = vst.msk [vmem:[#allocation2 + $0x1d8] sm:$0xf] %vm230_vm3, %v4169_v16 }
 0x183   : > { %v3573_v58 = vpop.f32.mrf.mxu2  ;;  %v3612_v10 = vpop.f32.mrf.mxu3  ;;  %v1646_v48 = vor.u32 %v1645_v9, %v6626_v59  ;;  %v1656_v59 = vor.u32 %v1655_v30, %v1651_v32 }
 0x184   : > { %v2517_v7 = vpop.permute.xlu0 %2516  ;;  %v3530_v2 = vpop.f32.mrf.mxu1  ;;  %v4335_v51 = vld [vmem:[#allocation2 + $0xd0] sm:$0xf]  ;;  %v6678_v10 = vrot.slane %v1659_v37, 5 }
 0x185   : > { %2557 = vst.msk [vmem:[#allocation2 + $0xfc] sm:$0xf] %vm328_vm4, %v2517_v7  ;;  %v1929_v22 = vpop.permute.xlu1 %1928  ;;  %v3491_v21 = vpop.f32.mrf.mxu0  ;;  %v4768_v45 = vld [vmem:[#allocation2 + $0xec] sm:$0xf0]  ;;  %v1647_v5 = vrot.slane %v1646_v48, 4 }
 0x186   : > { %1970 = vst.msk [vmem:[#allocation2 + $0xd4] sm:$0xf] %vm328_vm4, %v1929_v22  ;;  %v4336_v60 = vor.u32 %v4768_v45, %v4335_v51  ;;  %v1657_v51 = vrot.slane %v1656_v59, 4  ;;  %v4168_v22 = vld [vmem:[%s5091_s29 + $0xdc] sm:$0xf] }
 0x187   : > { %v1652_v31 = vsel %vm5113_vm2, %v1647_v5, %v1651_v32  ;;  %2009 = vst.msk [vmem:[#allocation2 + $0x1b8] sm:$0xf] %vm230_vm3, %v4168_v22  ;;  %v4167_v45 = vld [vmem:[%s5091_s29 + $0xd8] sm:$0xf] }
 0x188   : > { %3646 = vmatmul.bf16.gmra.mxu0 %v4336_v60  ;;  %v2065_v15 = vpop.permute.xlu2 %2064  ;;  %1729 = vst.msk [vmem:[#allocation2 + $0x154] sm:$0xf] %vm230_vm3, %v1652_v31  ;;  %v2249_v60 = vshrl.u32 %v6656_v4, 16  ;;  %v4377_v54 = vld [vmem:[#allocation2 + $0x138] sm:$0xf0] }
 0x189   : > { %2102 = vst.msk [vmem:[#allocation2 + $0x158] sm:$0xf] %vm328_vm4, %v2065_v15  ;;  %v1663_v15 = vshrl.u32 %v1534_v3, 16 }
 0x18a   : > { %2008 = vst.msk [vmem:[#allocation2 + $0x198] sm:$0xf] %vm230_vm3, %v4167_v45 }
 0x18b   : > { %v3575_v40 = vpop.f32.mrf.mxu2 }
 0x18c   : > { %v2061_v41 = vpop.permute.xlu0 %2060  ;;  %v4345_v25 = vld [vmem:[#allocation2 + $0xf8] sm:$0xf0] }
 0x18d   : > { %2100 = vst.msk [vmem:[#allocation2 + $0x118] sm:$0xf] %vm328_vm4, %v2061_v41  ;;  %v3532_v61 = vpop.f32.mrf.mxu1  ;;  %v2063_v63 = vpop.permute.xlu1 %2062  ;;  %v4764_v29 = vld [vmem:[#allocation2 + $0xd4] sm:$0xf]  ;;  %v4348_v47 = vor.u32 %v4765_v43, %v4345_v25  ;;  %v2255_v43 = vshll.u32 %v4200_v17, 16  ;;  %v2259_v41 = vshrl.u32 %v4200_v17, 16 }
 0x18e   : > { %v3533_v38 = vadd.f32 %v3532_v61, %v3491_v21  ;;  %2101 = vst.msk [vmem:[#allocation2 + $0x138] sm:$0xf] %vm328_vm4, %v2063_v63  ;;  %v3493_v55 = vpop.f32.mrf.mxu0  ;;  %v4340_v27 = vor.u32 %v4764_v29, %v4337_v18  ;;  %v1662_v21 = vsel %vm5113_vm2, %v1657_v51, %v6678_v10  ;;  %v2251_v18 = vrot.slane %v2249_v60, 4  ;;  %v1407_v25 = vld [vmem:[%s5091_s29 + $0x3c] sm:$0xf] }
 0x18f   : > { %3769 = vmatmul.bf16.gmra.mxu3 %v4348_v47  ;;  %1730 = vst.msk [vmem:[#allocation2 + $0x174] sm:$0xf] %vm230_vm3, %v1662_v21  ;;  %v2257_v46 = vrot.slane %v2255_v43, 5  ;;  %v1535_v61 = vld [vmem:[%s5091_s29 + $0x3c] sm:$0xf]  ;;  %v1665_v63 = vrot.slane %v1663_v15, 4 }
 0x190   : > { %3687 = vmatmul.bf16.gmra.mxu1 %v4340_v27  ;;  %v3574_v12 = vadd.f32 %v3573_v58, %v3533_v38  ;;  %v1481_v39 = vpop.permute.xlu2 %1480  ;;  %v2252_v44 = vor.u32 %v2251_v18, %v6660_v26  ;;  %1423 = vst.msk [vmem:[#allocation2 + $0x1b0] sm:$0xf] %vm230_vm3, %v1407_v25  ;;  %v6703_v47 = vld [vmem:[%s5091_s29 + $0xe0] sm:$0xf]  ;;  %v2261_v49 = vrot.slane %v2259_v41, 4  ;;  %v1669_v9 = vshll.u32 %v1535_v61, 16 }
 0x191   : > { %1517 = vst.msk [vmem:[#allocation2 + $0x170] sm:$0xf] %vm328_vm4, %v1481_v39  ;;  %v2265_v38 = vshll.u32 %v6703_v47, 16  ;;  %v6708_v55 = vld [vmem:[%s5091_s29 + $0x40] sm:$0xf]  ;;  %v1666_v26 = vor.u32 %v1665_v63, %v6678_v10  ;;  %v1673_v0 = vshrl.u32 %v1535_v61, 16 }
 0x192   : > { %v3614_v6 = vpop.f32.mrf.mxu3  ;;  %v2253_v35 = vrot.slane %v2252_v44, 4  ;;  %v2262_v27 = vor.u32 %v2261_v49, %v2257_v46  ;;  %v1671_v53 = vrot.slane %v1669_v9, 5  ;;  %v1679_v48 = vshll.u32 %v6708_v55, 16  ;;  %v1408_v18 = vld [vmem:[%s5091_s29 + $0x40] sm:$0xf] }
 0x193   : > { %v6674_v11 = vadd.f32 %v3614_v6, %v3574_v12  ;;  %v6714_v3 = vrot.slane %v2265_v38, 5  ;;  %v1667_v5 = vrot.slane %v1666_v26, 4  ;;  %v1675_v59 = vrot.slane %v1673_v0, 4  ;;  %v4170_v41 = vld [vmem:[%s5091_s29 + $0xe4] sm:$0xf] }
 0x194   : > { %v1477_v58 = vpop.permute.xlu0 %1476  ;;  %v4375_v20 = vld [vmem:[#allocation2 + $0x118] sm:$0xf]  ;;  %v2258_v39 = vsel %vm5113_vm2, %v2253_v35, %v2257_v46  ;;  %v2263_v31 = vrot.slane %v2262_v27, 4  ;;  %1424 = vst.msk [vmem:[#allocation2 + $0x1d0] sm:$0xf] %vm230_vm3, %v1408_v18  ;;  %v1683_v38 = vshrl.u32 %v6708_v55, 16 }
 0x195   : > { %1515 = vst.msk [vmem:[#allocation2 + $0x130] sm:$0xf] %vm328_vm4, %v1477_v58  ;;  %v3534_v52 = vpop.f32.mrf.mxu1  ;;  %v2519_v7 = vpop.permute.xlu1 %2518  ;;  %v4777_v2 = vld [vmem:[#allocation2 + $0x134] sm:$0xf0]  ;;  %v1676_v22 = vor.u32 %v1675_v59, %v1671_v53  ;;  %v4203_v63 = vld [vmem:[%s5091_s29 + $0xe8] sm:$0x1] }
 0x196   : > { %2558 = vst.msk [vmem:[#allocation2 + $0x11c] sm:$0xf] %vm328_vm4, %v2519_v7  ;;  %v4376_v57 = vor.u32 %v4777_v2, %v4375_v20  ;;  %v6718_v52 = vrot.slane %v1679_v48, 5  ;;  %v1672_v7 = vsel %vm5113_vm2, %v1667_v5, %v1671_v53  ;;  %v2285_v49 = vshll.u32 %v4203_v63, 16  ;;  %v1409_v5 = vld [vmem:[%s5091_s29 + $0x44] sm:$0xf] }
 0x197   : > { %2317 = vst.msk [vmem:[#allocation2 + $0x19c] sm:$0xf] %vm230_vm3, %v2258_v39  ;;  %v1685_v59 = vrot.slane %v1683_v38, 4 }
 0x198   : > { %3732 = vmatmul.bf16.gmra.mxu2 %v4376_v57  ;;  %v1937_v13 = vpop.permute.xlu2 %1936  ;;  %v2268_v57 = vsel %vm5113_vm2, %v2263_v31, %v6714_v3  ;;  %1731 = vst.msk [vmem:[#allocation2 + $0x194] sm:$0xf] %vm230_vm3, %v1672_v7  ;;  %v4784_v60 = vld [vmem:[#allocation2 + $0x16c] sm:$0xf0]  ;;  %v2287_v48 = vrot.slane %v2285_v49, 5 }
 0x199   : > { %1974 = vst.msk [vmem:[#allocation2 + $0x154] sm:$0xf] %vm328_vm4, %v1937_v13  ;;  %v1677_v13 = vrot.slane %v1676_v22, 4 }
 0x19a   : > { %v3616_v19 = vpop.f32.mrf.mxu3  ;;  %2318 = vst.msk [vmem:[#allocation2 + $0x1bc] sm:$0xf] %vm230_vm3, %v2268_v57 }
 0x19b   : > { %v3577_v14 = vpop.f32.mrf.mxu2  ;;  %v4407_v19 = vld [vmem:[#allocation2 + $0x158] sm:$0xf]  ;;  %2011 = vst.msk [vmem:[#allocation2 + $0x1f8] sm:$0xf] %vm230_vm3, %v4170_v41 }
 0x19c   : > { %v1933_v33 = vpop.permute.xlu0 %1932  ;;  %v3495_v34 = vpop.f32.mrf.mxu0  ;;  %v4776_v62 = vld [vmem:[#allocation2 + $0x12c] sm:$0xf0]  ;;  %1425 = vst.msk [vmem:[#allocation2 + $0x1f0] sm:$0xf] %vm230_vm3, %v1409_v5 }
 0x19d   : > { %1972 = vst.msk [vmem:[#allocation2 + $0x114] sm:$0xf] %vm328_vm4, %v1933_v33  ;;  %v1935_v23 = vpop.permute.xlu1 %1934  ;;  %v4368_v4 = vor.u32 %v4776_v62, %v4367_v24  ;;  %v4773_v40 = vld [vmem:[#allocation2 + $0x11c] sm:$0xf]  ;;  %v1682_v24 = vsel %vm5113_vm2, %v1677_v13, %v6718_v52  ;;  %v4202_v62 = vld [vmem:[%s5091_s29 + $0xe4] sm:$0xf] }
 0x19e   : > { %1973 = vst.msk [vmem:[#allocation2 + $0x134] sm:$0xf] %vm328_vm4, %v1935_v23  ;;  %v4380_v50 = vor.u32 %v4773_v40, %v4377_v54  ;;  %v2275_v25 = vshll.u32 %v4202_v62, 16  ;;  %v2279_v44 = vshrl.u32 %v4202_v62, 16 }
 0x19f   : > { %3650 = vmatmul.bf16.gmra.mxu0 %v4368_v4  ;;  %1732 = vst.msk [vmem:[#allocation2 + $0x1b4] sm:$0xf] %vm230_vm3, %v1682_v24 }
 0x1a0   : > { %3773 = vmatmul.bf16.gmra.mxu3 %v4380_v50  ;;  %v2071_v29 = vpop.permute.xlu2 %2070 }
 0x1a1   : > { %2105 = vst.msk [vmem:[#allocation2 + $0x1b8] sm:$0xf] %vm328_vm4, %v2071_v29  ;;  %v2277_v29 = vrot.slane %v2275_v25, 5 }
 0x1a3   : > { %v3579_v32 = vpop.f32.mrf.mxu2  ;;  %v3618_v12 = vpop.f32.mrf.mxu3 }
 0x1a4   : > { %v2067_v30 = vpop.permute.xlu0 %2066  ;;  %v3497_v37 = vpop.f32.mrf.mxu0  ;;  %v4772_v6 = vld [vmem:[#allocation2 + $0x114] sm:$0xf]  ;;  %v1537_v32 = vld [vmem:[%s5091_s29 + $0x44] sm:$0xf] }
 0x1a5   : > { %2103 = vst.msk [vmem:[#allocation2 + $0x178] sm:$0xf] %vm328_vm4, %v2067_v30  ;;  %v3536_v10 = vpop.f32.mrf.mxu1  ;;  %v1479_v58 = vpop.permute.xlu1 %1478  ;;  %v4369_v20 = vld [vmem:[#allocation2 + $0x130] sm:$0xf0]  ;;  %v1693_v31 = vshrl.u32 %v1537_v32, 16 }
 0x1a6   : > { %v3537_v2 = vadd.f32 %v3536_v10, %v3495_v34  ;;  %1516 = vst.msk [vmem:[#allocation2 + $0x150] sm:$0xf] %vm328_vm4, %v1479_v58  ;;  %v4372_v51 = vor.u32 %v4772_v6, %v4369_v20  ;;  %v1689_v6 = vshll.u32 %v1537_v32, 16 }
 0x1a7   : > { %v1695_v7 = vrot.slane %v1693_v31, 4 }
 0x1a8   : > { %v3578_v21 = vadd.f32 %v3577_v14, %v3537_v2  ;;  %3691 = vmatmul.bf16.gmra.mxu1 %v4372_v51  ;;  %v2527_v45 = vpop.permute.xlu2 %2526  ;;  %v2269_v14 = vshrl.u32 %v6703_v47, 16  ;;  %v2281_v47 = vrot.slane %v2279_v44, 4  ;;  %v1691_v20 = vrot.slane %v1689_v6, 5  ;;  %v1538_v51 = vld [vmem:[%s5091_s29 + $0x48] sm:$0x1]  ;;  %s199_s29 = sand.u32 1, %s4990_s13  }
 0x1a9   : > { %2562 = vst.msk [vmem:[#allocation2 + $0x19c] sm:$0xf] %vm328_vm4, %v2527_v45  ;;  %v1686_v2 = vor.u32 %v1685_v59, %v6718_v52  ;;  %v4793_v13 = vld [vmem:[#allocation2 + $0x1b4] sm:$0xf0]  ;;  %s4021_s30 = sshll.u32 %s199_s29, 6  ;;  %s3899_s10 = scalar_lea.sflag [#allocation4], %s199_s29 }
 0x1aa   : > { %v6732_v54 = vadd.f32 %v3618_v12, %v3578_v21  ;;  %v2271_v46 = vrot.slane %v2269_v14, 4  ;;  %v2282_v26 = vor.u32 %v2281_v47, %v2277_v29  ;;  %v1696_v22 = vor.u32 %v1695_v7, %v1691_v20  ;;  %s201_s8 = scalar_lea.vmem [#allocation3], %s4021_s30 }
 0x1ab   : > { %v3620_v15 = vpop.f32.mrf.mxu3  ;;  %v1699_v21 = vshll.u32 %v1538_v51, 16  ;;  %s3912_s15 = sshll.u32 %s201_s8, 4  ;;  %s3913_s15 = int_to_ptr.vmem [resolvable:$true] %s3912_s15 }
 0x1ac   : > { %v2523_v33 = vpop.permute.xlu0 %2522  ;;  %v4785_v34 = vld [vmem:[#allocation2 + $0x174] sm:$0xf0]  ;;  %v2272_v9 = vor.u32 %v2271_v46, %v6714_v3  ;;  %v2283_v55 = vrot.slane %v2282_v26, 4  ;;  %v4780_v15 = vld [vmem:[#allocation2 + $0x154] sm:$0xf]  ;;  %v1697_v16 = vrot.slane %v1696_v22, 4 }
 0x1ad   : > { %2560 = vst.msk [vmem:[#allocation2 + $0x15c] sm:$0xf] %vm328_vm4, %v2523_v33  ;;  %v3538_v17 = vpop.f32.mrf.mxu1  ;;  %v2525_v23 = vpop.permute.xlu1 %2524  ;;  %v4399_v4 = vld [vmem:[#allocation2 + $0x150] sm:$0xf]  ;;  %v4408_v40 = vor.u32 %v4785_v34, %v4407_v19  ;;  %v1701_v33 = vrot.slane %v1699_v21, 5 }
 0x1ae   : > { %2561 = vst.msk [vmem:[#allocation2 + $0x17c] sm:$0xf] %vm328_vm4, %v2525_v23  ;;  %v3499_v43 = vpop.f32.mrf.mxu0  ;;  %v4400_v50 = vor.u32 %v4784_v60, %v4399_v4  ;;  %v2273_v27 = vrot.slane %v2272_v9, 4  ;;  %v2288_v58 = vsel %vm5113_vm2, %v2283_v55, %v2287_v48  ;;  %v1687_v60 = vrot.slane %v1686_v2, 4 }
 0x1af   : > { %3736 = vmatmul.bf16.gmra.mxu2 %v4408_v40  ;;  %2320 = vst.msk [vmem:[#allocation2 + $0x1fc] sm:$0xf] %vm230_vm3, %v2288_v58  ;;  %v1702_v40 = vsel %vm5113_vm2, %v1697_v16, %v1701_v33 }
 0x1b0   : > { %3654 = vmatmul.bf16.gmra.mxu0 %v4400_v50  ;;  %v1943_v61 = vpop.permute.xlu2 %1942  ;;  %v2278_v30 = vsel %vm5113_vm2, %v2273_v27, %v2277_v29  ;;  %v1692_v23 = vsel %vm5113_vm2, %v1687_v60, %v1691_v20  ;;  %1734 = vst.msk [vmem:[#allocation2 + $0x1f4] sm:$0xf] %vm230_vm3, %v1702_v40  ;;  %v4789_v26 = vld [vmem:[#allocation2 + $0x19c] sm:$0xf] }
 0x1b1   : > { %1977 = vst.msk [vmem:[#allocation2 + $0x1b4] sm:$0xf] %vm328_vm4, %v1943_v61 }
 0x1b2   : > { %v3581_v35 = vpop.f32.mrf.mxu2  ;;  %2319 = vst.msk [vmem:[#allocation2 + $0x1dc] sm:$0xf] %vm230_vm3, %v2278_v30 }
 0x1b3   : > { %1733 = vst.msk [vmem:[#allocation2 + $0x1d4] sm:$0xf] %vm230_vm3, %v1692_v23 }
 0x1b4   : > { %v1939_v53 = vpop.permute.xlu0 %1938  ;;  %v4781_v0 = vld [vmem:[#allocation2 + $0x15c] sm:$0xf] }
 0x1b5   : > { %1975 = vst.msk [vmem:[#allocation2 + $0x174] sm:$0xf] %vm328_vm4, %v1939_v53  ;;  %v2069_v12 = vpop.permute.xlu1 %2068  ;;  %v4409_v39 = vld [vmem:[#allocation2 + $0x178] sm:$0xf0] }
 0x1b6   : > { %2104 = vst.msk [vmem:[#allocation2 + $0x198] sm:$0xf] %vm328_vm4, %v2069_v12  ;;  %v3501_v3 = vpop.f32.mrf.mxu0  ;;  %v4412_v37 = vor.u32 %v4781_v0, %v4409_v39 }
 0x1b8   : > { %3777 = vmatmul.bf16.gmra.mxu3 %v4412_v37  ;;  %v1487_v10 = vpop.permute.xlu2 %1486 }
 0x1b9   : > { %1520 = vst.msk [vmem:[#allocation2 + $0x1d0] sm:$0xf] %vm328_vm4, %v1487_v10 }
 0x1ba   : > { %v3583_v57 = vpop.f32.mrf.mxu2 }
 0x1bb   : > { %v3622_v45 = vpop.f32.mrf.mxu3 }
 0x1bc   : > { %v1483_v19 = vpop.permute.xlu0 %1482  ;;  %v3540_v24 = vpop.f32.mrf.mxu1  ;;  %v4401_v14 = vld [vmem:[#allocation2 + $0x170] sm:$0xf0] }
 0x1bd   : > { %1518 = vst.msk [vmem:[#allocation2 + $0x190] sm:$0xf] %vm328_vm4, %v1483_v19  ;;  %v3541_v34 = vadd.f32 %v3540_v24, %v3499_v43  ;;  %v1485_v62 = vpop.permute.xlu1 %1484  ;;  %v4404_v52 = vor.u32 %v4780_v15, %v4401_v14  ;;  %v4439_v17 = vld [vmem:[#allocation2 + $0x198] sm:$0xf] }
 0x1be   : > { %1519 = vst.msk [vmem:[#allocation2 + $0x1b0] sm:$0xf] %vm328_vm4, %v1485_v62  ;;  %v4440_v4 = vor.u32 %v4793_v13, %v4439_v17 }
 0x1bf   : > { %v3582_v18 = vadd.f32 %v3581_v35, %v3541_v34  ;;  %3695 = vmatmul.bf16.gmra.mxu1 %v4404_v52  ;;  %v4433_v35 = vld [vmem:[#allocation2 + $0x1b0] sm:$0xf0] }
 0x1c0   : > { %3740 = vmatmul.bf16.gmra.mxu2 %v4440_v4  ;;  %v2533_v50 = vpop.permute.xlu2 %2532  ;;  %v4463_v57 = vld [vmem:[#allocation2 + $0x1d0] sm:$0xf] }
 0x1c1   : > { %2565 = vst.msk [vmem:[#allocation2 + $0x1fc] sm:$0xf] %vm328_vm4, %v2533_v50  ;;  %v6772_v43 = vadd.f32 %v3622_v45, %v3582_v18 }
 0x1c3   : > { %v3624_v41 = vpop.f32.mrf.mxu3  ;;  %v3717_v25 = vpop.f32.mrf.mxu2 }
 0x1c4   : > { %v2529_v44 = vpop.permute.xlu0 %2528  ;;  %v3542_v46 = vpop.f32.mrf.mxu1  ;;  %v4431_v61 = vld [vmem:[#allocation2 + $0x190] sm:$0xf] }
 0x1c5   : > { %2563 = vst.msk [vmem:[#allocation2 + $0x1bc] sm:$0xf] %vm328_vm4, %v2529_v44  ;;  %v1941_v36 = vpop.permute.xlu1 %1940  ;;  %v3635_v63 = vpop.f32.mrf.mxu0  ;;  %v4792_v29 = vld [vmem:[#allocation2 + $0x1ac] sm:$0xf0] }
 0x1c6   : > { %1976 = vst.msk [vmem:[#allocation2 + $0x194] sm:$0xf] %vm328_vm4, %v1941_v36  ;;  %v3636_v47 = vadd.f32 %v3635_v63, %v6237_v42  ;;  %v4432_v49 = vor.u32 %v4792_v29, %v4431_v61 }
 0x1c8   : > { %3658 = vmatmul.bf16.gmra.mxu0 %v4432_v49  ;;  %v4473_v7 = vld [vmem:[#allocation2 + $0x1f8] sm:$0xf0] }
 0x1cb   : > { %v3719_v9 = vpop.f32.mrf.mxu2 }
 0x1cc   : > { %v2073_v38 = vpop.permute.xlu0 %2072  ;;  %v4441_v27 = vld [vmem:[#allocation2 + $0x1b8] sm:$0xf0] }
 0x1cd   : > { %2106 = vst.msk [vmem:[#allocation2 + $0x1d8] sm:$0xf] %vm328_vm4, %v2073_v38  ;;  %v3676_v53 = vpop.f32.mrf.mxu1  ;;  %v2075_v0 = vpop.permute.xlu1 %2074  ;;  %v4788_v48 = vld [vmem:[#allocation2 + $0x194] sm:$0xf]  ;;  %v4444_v32 = vor.u32 %v4789_v26, %v4441_v27 }
 0x1ce   : > { %v3677_v12 = vadd.f32 %v3676_v53, %v3636_v47  ;;  %2107 = vst.msk [vmem:[#allocation2 + $0x1f8] sm:$0xf] %vm328_vm4, %v2075_v0  ;;  %v3637_v39 = vpop.f32.mrf.mxu0  ;;  %v4436_v5 = vor.u32 %v4788_v48, %v4433_v35 }
 0x1cf   : > { %3781 = vmatmul.bf16.gmra.mxu3 %v4444_v32 }
 0x1d0   : > { %3699 = vmatmul.bf16.gmra.mxu1 %v4436_v5  ;;  %v3718_v42 = vadd.f32 %v3717_v25, %v3677_v12 }
 0x1d2   : > { %v3758_v30 = vpop.f32.mrf.mxu3 }
 0x1d3   : > { %v6779_v3 = vadd.f32 %v3758_v30, %v3718_v42 }
 0x1d4   : > { %v1489_v37 = vpop.permute.xlu0 %1488  ;;  %v4471_v55 = vld [vmem:[#allocation2 + $0x1d8] sm:$0xf] }
 0x1d5   : > { %1521 = vst.msk [vmem:[#allocation2 + $0x1f0] sm:$0xf] %vm328_vm4, %v1489_v37  ;;  %v3678_v6 = vpop.f32.mrf.mxu1  ;;  %v2531_v31 = vpop.permute.xlu1 %2530  ;;  %v4801_v59 = vld [vmem:[#allocation2 + $0x1f4] sm:$0xf0]  ;;  %v3804_v4 = vmul.f32 %v6779_v3, %v6779_v3 }
 0x1d6   : > { %2564 = vst.msk [vmem:[#allocation2 + $0x1dc] sm:$0xf] %vm328_vm4, %v2531_v31  ;;  %v4472_v10 = vor.u32 %v4801_v59, %v4471_v55 }
 0x1d8   : > { %3744 = vmatmul.bf16.gmra.mxu2 %v4472_v10 }
 0x1da   : > { %v3760_v58 = vpop.f32.mrf.mxu3 }
 0x1db   : > { %v3721_v20 = vpop.f32.mrf.mxu2 }
 0x1dc   : > { %v1945_v2 = vpop.permute.xlu0 %1944  ;;  %v3639_v51 = vpop.f32.mrf.mxu0  ;;  %v4800_v22 = vld [vmem:[#allocation2 + $0x1ec] sm:$0xf0] }
 0x1dd   : > { %1978 = vst.msk [vmem:[#allocation2 + $0x1d4] sm:$0xf] %vm328_vm4, %v1945_v2  ;;  %v1947_v21 = vpop.permute.xlu1 %1946  ;;  %v3640_v45 = vadd.f32 %v3639_v51, %v6369_v28  ;;  %v4464_v13 = vor.u32 %v4800_v22, %v4463_v57  ;;  %v4797_v60 = vld [vmem:[#allocation2 + $0x1dc] sm:$0xf] }
 0x1de   : > { %1979 = vst.msk [vmem:[#allocation2 + $0x1f4] sm:$0xf] %vm328_vm4, %v1947_v21  ;;  %v4476_v19 = vor.u32 %v4797_v60, %v4473_v7 }
 0x1df   : > { %3662 = vmatmul.bf16.gmra.mxu0 %v4464_v13 }
 0x1e0   : > { %3785 = vmatmul.bf16.gmra.mxu3 %v4476_v19 }
 0x1e3   : > { %v3723_v24 = vpop.f32.mrf.mxu2  ;;  %v3762_v15 = vpop.f32.mrf.mxu3 }
 0x1e4   : > { %v3641_v14 = vpop.f32.mrf.mxu0  ;;  %v4796_v16 = vld [vmem:[#allocation2 + $0x1d4] sm:$0xf] }
 0x1e5   : > { %v3680_v33 = vpop.f32.mrf.mxu1  ;;  %v4465_v34 = vld [vmem:[#allocation2 + $0x1f0] sm:$0xf0] }
 0x1e6   : > { %v3681_v62 = vadd.f32 %v3680_v33, %v3640_v45  ;;  %v4468_v52 = vor.u32 %v4796_v16, %v4465_v34 }
 0x1e8   : > { %v3722_v17 = vadd.f32 %v3721_v20, %v3681_v62  ;;  %3703 = vmatmul.bf16.gmra.mxu1 %v4468_v52 }
 0x1ea   : > { %v6786_v23 = vadd.f32 %v3762_v15, %v3722_v17 }
 0x1eb   : > { %v3764_v28 = vpop.f32.mrf.mxu3 }
 0x1ec   : > { %v3805_v40 = vmul.f32 %v6786_v23, %v6786_v23  ;;  %v3790_v18 = vadd.f32 %v6786_v23, %v6779_v3 }
 0x1ed   : > { %v3643_v50 = vpop.f32.mrf.mxu0  ;;  %v3682_v41 = vpop.f32.mrf.mxu1 }
 0x1ee   : > { %v3644_v25 = vadd.f32 %v3643_v50, %v6473_v8  ;;  %v3812_v44 = vadd.f32 %v3805_v40, %v3804_v4 }
 0x1f2   : > { %v3725_v46 = vpop.f32.mrf.mxu2 }
 0x1f5   : > { %v3645_v61 = vpop.f32.mrf.mxu0 }
 0x1fa   : > { %v3727_v36 = vpop.f32.mrf.mxu2 }
 0x1fb   : > { %v3766_v63 = vpop.f32.mrf.mxu3 }
 0x1fc   : > { %v3684_v29 = vpop.f32.mrf.mxu1 }
 0x1fd   : > { %v3685_v47 = vadd.f32 %v3684_v29, %v3644_v25 }
 0x1ff   : > { %v3726_v49 = vadd.f32 %v3725_v46, %v3685_v47 }
 0x201   : > { %v6795_v9 = vadd.f32 %v3766_v63, %v3726_v49 }
 0x203   : > { %v3806_v35 = vmul.f32 %v6795_v9, %v6795_v9  ;;  %v3729_v38 = vpop.f32.mrf.mxu2  ;;  %v3768_v26 = vpop.f32.mrf.mxu3  ;;  %v3791_v27 = vadd.f32 %v3790_v18, %v6795_v9 }
 0x204   : > { %v3686_v53 = vpop.f32.mrf.mxu1 }
 0x205   : > { %v3647_v0 = vpop.f32.mrf.mxu0  ;;  %v3813_v8 = vadd.f32 %v3812_v44, %v3806_v35 }
 0x206   : > { %v3648_v48 = vadd.f32 %v3647_v0, %v6586_v1 }
 0x20b   : > { %v3731_v32 = vpop.f32.mrf.mxu2 }
 0x20d   : > { %v3649_v12 = vpop.f32.mrf.mxu0  ;;  %v3688_v39 = vpop.f32.mrf.mxu1 }
 0x20e   : > { %v3689_v5 = vadd.f32 %v3688_v39, %v3648_v48 }
 0x210   : > { %v3730_v42 = vadd.f32 %v3729_v38, %v3689_v5 }
 0x212   : > { %v3770_v30 = vpop.f32.mrf.mxu3 }
 0x213   : > { %v6801_v37 = vadd.f32 %v3770_v30, %v3730_v42 }
 0x215   : > { %v3792_v55 = vadd.f32 %v3791_v27, %v6801_v37  ;;  %v3807_v6 = vmul.f32 %v6801_v37, %v6801_v37  ;;  %v3690_v31 = vpop.f32.mrf.mxu1 }
 0x217   : > { %v3814_v59 = vadd.f32 %v3813_v8, %v3807_v6 }
 0x21a   : > { %v3772_v10 = vpop.f32.mrf.mxu3 }
 0x21b   : > { %v3733_v58 = vpop.f32.mrf.mxu2 }
 0x21c   : > { %v3651_v20 = vpop.f32.mrf.mxu0 }
 0x21d   : > { %v3652_v1 = vadd.f32 %v3651_v20, %v6639_v56 }
 0x223   : > { %v3735_v7 = vpop.f32.mrf.mxu2  ;;  %v3774_v2 = vpop.f32.mrf.mxu3 }
 0x224   : > { %v3653_v51 = vpop.f32.mrf.mxu0 }
 0x225   : > { %v3692_v57 = vpop.f32.mrf.mxu1 }
 0x226   : > { %v3693_v22 = vadd.f32 %v3692_v57, %v3652_v1 }
 0x228   : > { %v3734_v21 = vadd.f32 %v3733_v58, %v3693_v22 }
 0x22a   : > { %v6807_v45 = vadd.f32 %v3774_v2, %v3734_v21 }
 0x22b   : > { %v3776_v13 = vpop.f32.mrf.mxu3 }
 0x22c   : > { %v3808_v60 = vmul.f32 %v6807_v45, %v6807_v45  ;;  %v3793_v19 = vadd.f32 %v3792_v55, %v6807_v45 }
 0x22d   : > { %v3655_v24 = vpop.f32.mrf.mxu0  ;;  %v3694_v15 = vpop.f32.mrf.mxu1 }
 0x22e   : > { %v3815_v14 = vadd.f32 %v3814_v59, %v3808_v60  ;;  %v3656_v34 = vadd.f32 %v3655_v24, %v6674_v11 }
 0x232   : > { %v3737_v16 = vpop.f32.mrf.mxu2 }
 0x235   : > { %v3657_v33 = vpop.f32.mrf.mxu0 }
 0x23a   : > { %v3739_v56 = vpop.f32.mrf.mxu2 }
 0x23b   : > { %v3778_v62 = vpop.f32.mrf.mxu3 }
 0x23c   : > { %v3696_v52 = vpop.f32.mrf.mxu1 }
 0x23d   : > { %v3697_v17 = vadd.f32 %v3696_v52, %v3656_v34 }
 0x23f   : > { %v3738_v28 = vadd.f32 %v3737_v16, %v3697_v17 }
 0x241   : > { %v6813_v4 = vadd.f32 %v3778_v62, %v3738_v28 }
 0x243   : > { %v3809_v40 = vmul.f32 %v6813_v4, %v6813_v4  ;;  %v3741_v18 = vpop.f32.mrf.mxu2  ;;  %v3780_v50 = vpop.f32.mrf.mxu3  ;;  %v3794_v41 = vadd.f32 %v3793_v19, %v6813_v4 }
 0x244   : > { %v3698_v25 = vpop.f32.mrf.mxu1 }
 0x245   : > { %v3659_v44 = vpop.f32.mrf.mxu0  ;;  %v3816_v46 = vadd.f32 %v3815_v14, %v3809_v40 }
 0x246   : > { %v3660_v36 = vadd.f32 %v3659_v44, %v6732_v54 }
 0x24b   : > { %v3743_v61 = vpop.f32.mrf.mxu2 }
 0x24d   : > { %v3661_v11 = vpop.f32.mrf.mxu0  ;;  %v3700_v63 = vpop.f32.mrf.mxu1 }
 0x24e   : > { %v3701_v29 = vadd.f32 %v3700_v63, %v3660_v36 }
 0x250   : > { %v3742_v47 = vadd.f32 %v3741_v18, %v3701_v29 }
 0x252   : > { %v3782_v49 = vpop.f32.mrf.mxu3 }
 0x253   : > { %v6819_v35 = vadd.f32 %v3782_v49, %v3742_v47 }
 0x255   : > { %v3795_v38 = vadd.f32 %v3794_v41, %v6819_v35  ;;  %v3810_v26 = vmul.f32 %v6819_v35, %v6819_v35  ;;  %v3702_v27 = vpop.f32.mrf.mxu1 }
 0x257   : > { %v3817_v53 = vadd.f32 %v3816_v46, %v3810_v26 }
 0x25a   : > { %v3784_v0 = vpop.f32.mrf.mxu3 }
 0x25b   : > { %v3745_v8 = vpop.f32.mrf.mxu2 }
 0x25c   : > { %v3663_v48 = vpop.f32.mrf.mxu0 }
 0x25d   : > { %v3664_v54 = vadd.f32 %v3663_v48, %v6772_v43 }
 0x263   : > { %v3747_v32 = vpop.f32.mrf.mxu2  ;;  %v3786_v12 = vpop.f32.mrf.mxu3 }
 0x264   : > { %v3665_v39 = vpop.f32.mrf.mxu0 }
 0x265   : > { %v3704_v5 = vpop.f32.mrf.mxu1 }
 0x266   : > { %v3705_v42 = vadd.f32 %v3704_v5, %v3664_v54 }
 0x268   : > { %v3746_v30 = vadd.f32 %v3745_v8, %v3705_v42 }
 0x26a   : > { %v3787_v55 = vadd.f32 %v3786_v12, %v3746_v30 }
 0x26b   : > { %v3788_v6 = vpop.f32.mrf.mxu3 }
 0x26c   : > { %v3796_v31 = vadd.f32 %v3795_v38, %v3787_v55  ;;  %v3811_v59 = vmul.f32 %v3787_v55, %v3787_v55 }
 0x26d   : > { %v3706_v10 = vpop.f32.mrf.mxu1 }
 0x26e   : > { %v3797_v58 = vrot.slane %v3796_v31, 4  ;;  %v3818_v20 = vadd.f32 %v3817_v53, %v3811_v59 }
 0x270   : > { %v3798_v1 = vadd.f32 %v3797_v58, %v3796_v31  ;;  %v3819_v7 = vrot.slane %v3818_v20, 4 }
 0x272   : > { %v3799_v2 = vrot.slane %v3798_v1, 2  ;;  %v3820_v51 = vadd.f32 %v3819_v7, %v3818_v20 }
 0x274   : > { %v3800_v57 = vadd.f32 %v3799_v2, %v3798_v1  ;;  %v3821_v22 = vrot.slane %v3820_v51, 2 }
 0x276   : > { %v3801_v21 = vrot.slane %v3800_v57, 1  ;;  %v3822_v13 = vadd.f32 %v3821_v22, %v3820_v51 }
 0x278   : > { %v3802_v43 = vadd.f32 %v3801_v21, %v3800_v57  ;;  %v3823_v60 = vrot.slane %v3822_v13, 1 }
 0x27a   : > { %v3824_v19 = vadd.f32 %v3823_v60, %v3822_v13  ;;  %v3834_v24 = vmul.f32 0.015625, %v3802_v43 }
 0x27c   : > { %v3835_v15 = vmul.f32 0.015625, %v3824_v19  ;;  %v3836_v14 = vmul.f32 %v3834_v24, %v3834_v24  ;;  %v3858_v16 = vsub.f32 %v6779_v3, %v3834_v24  ;;  %v3859_v33 = vsub.f32 %v6786_v23, %v3834_v24 }
 0x27d   : > { %v3860_v56 = vsub.f32 %v6795_v9, %v3834_v24  ;;  %v3861_v34 = vsub.f32 %v6801_v37, %v3834_v24  ;;  %v3862_v62 = vsub.f32 %v6807_v45, %v3834_v24  ;;  %v3863_v52 = vsub.f32 %v6813_v4, %v3834_v24 }
 0x27e   : > { %v3837_v17 = vsub.f32 %v3835_v15, %v3836_v14  ;;  %v3864_v28 = vsub.f32 %v6819_v35, %v3834_v24  ;;  %v3865_v40 = vsub.f32 %v3787_v55, %v3834_v24 }
 0x280   : > { %v3838_v18 = vmax.f32 %v3837_v17, 0.0 }
 0x282   : > { %v3839_v50 = vadd.f32 1e-05, %v3838_v18 }
 0x284   : > { %4926 = vrsqrt.f32 %v3839_v50  ;;  %vm3846_vm6 = vweird.f32 %v3839_v50 }
 0x28a   : > { %v4927_v3 = vpop.eup %4926 }
 0x28b   : > { %v3841_v41 = vmul.f32 %v4927_v3, %v3839_v50  ;;  %vm3847_vm5 = vweird.f32 %v4927_v3 }
 0x28c   : > { %vm3848_vm7 = vmor %vm3846_vm6, %vm3847_vm5 }
 0x28d   : > { %v3842_v23 = vmul.f32 %v4927_v3, %v3841_v41 }
 0x28f   : > { %v3843_v25 = vmul.f32 0.5, %v3842_v23 }
 0x291   : > { %v3844_v9 = vsub.f32 1.5, %v3843_v25 }
 0x293   : > { %v3845_v37 = vmul.f32 %v4927_v3, %v3844_v9 }
 0x295   : > { %v3849_v45 = vsel %vm3848_vm7, %v4927_v3, %v3845_v37 }
 0x296   : > { %v3866_v4 = vmul.f32 %v3858_v16, %v3849_v45  ;;  %v3867_v44 = vmul.f32 %v3859_v33, %v3849_v45  ;;  %v3868_v46 = vmul.f32 %v3860_v56, %v3849_v45  ;;  %v3869_v61 = vmul.f32 %v3861_v34, %v3849_v45 }
 0x297   : > { %v3870_v36 = vmul.f32 %v3862_v62, %v3849_v45  ;;  %v3871_v11 = vmul.f32 %v3863_v52, %v3849_v45  ;;  %v3872_v63 = vmul.f32 %v3864_v28, %v3849_v45  ;;  %v3873_v29 = vmul.f32 %v3865_v40, %v3849_v45 }
 0x298   : > { %v3874_v47 = vmul.f32 0.2, %v3866_v4  ;;  %v3875_v49 = vmul.f32 0.2, %v3867_v44  ;;  %v3876_v35 = vmul.f32 0.2, %v3868_v46 }
 0x299   : > { %v3877_v38 = vmul.f32 0.2, %v3869_v61  ;;  %v3878_v26 = vmul.f32 0.2, %v3870_v36  ;;  %v3879_v27 = vmul.f32 0.2, %v3871_v11 }
 0x29a   : > { %v3881_v53 = vmul.f32 0.2, %v3873_v29  ;;  %v3882_v0 = vmax.f32 %v3866_v4, %v3874_v47  ;;  %v3883_v8 = vmax.f32 %v3867_v44, %v3875_v49  ;;  %v3880_v48 = vmul.f32 0.2, %v3872_v63 }
 0x29b   : > { %v3884_v32 = vmax.f32 %v3868_v46, %v3876_v35  ;;  %v3885_v12 = vmax.f32 %v3869_v61, %v3877_v38  ;;  %v3886_v39 = vmax.f32 %v3870_v36, %v3878_v26  ;;  %v3887_v5 = vmax.f32 %v3871_v11, %v3879_v27 }
 0x29c   : > { %v3889_v54 = vmax.f32 %v3873_v29, %v3881_v53  ;;  %3890 = vst [vmem:[%s201_s8] sm:$0xff] %v3882_v0  ;;  %v3888_v42 = vmax.f32 %v3872_v63, %v3880_v48 }
 0x29d   : > { %3891 = vst [vmem:[%s201_s8 + $0x8] sm:$0xff] %v3883_v8 }
 0x29e   : > { %3897 = vst [vmem:[%s201_s8 + $0x38] sm:$0xff] %v3889_v54 }
 0x29f   : > { %3892 = vst [vmem:[%s201_s8 + $0x10] sm:$0xff] %v3884_v32 }
 0x2a0   : > { %3893 = vst [vmem:[%s201_s8 + $0x18] sm:$0xff] %v3885_v12 }
 0x2a1   : > { %3894 = vst [vmem:[%s201_s8 + $0x20] sm:$0xff] %v3886_v39 }
 0x2a2   : > { %3895 = vst [vmem:[%s201_s8 + $0x28] sm:$0xff] %v3887_v5 }
 0x2a3   : > { %3896 = vst [vmem:[%s201_s8 + $0x30] sm:$0xff] %v3888_v42 }
 0x2a4   : > { %4955 = shalt.err (!%p4952_p5)
}
 0x2a5   : > { %s5009_s27 = smov 128   ;;  %s5010_s28 = smov 8  }
 0x2a6   : > { %4868 = dma.vmem_to_hbm [thread:$0]  (%p5071_p4), %s3913_s15, 1024, %s3915_s9, %s3899_s10, %s5009_s27, %s5009_s27, %s5010_s28  }
 0x2a7 PF: > { %p4874_p6 = scmp.ge.s32.totalorder %s5006_s17, 2  ;;  %s3929_s29 = sand.u32 1, %s4986_s12  }
 0x2a8   : > { %s3930_s30 = scalar_lea.sflag [#allocation4], %s3929_s29 }
 0x2a9   : > { %p4871_p7 = pnand %p4874_p6, %p5078_p8 }
 0x2ab   : > { %p4872_p9 = pneg %p4871_p7 }
 0x2ad   : > { %4981 = dma.done.wait (%p4872_p9), %s3930_s30, 1024  }
 0x2ae   : > { %4983 = vsyncadd (%p4872_p9), %s3930_s30, 4294966272  ;;  %s16_s17 = sadd.s32 1, %s5006_s17   ;;  %s6881_s12 = smov %s4990_s13 }
 0x2af   : > { %p13_p10 = scmp.ge.s32.totalorder %s16_s17, 4   ;;  %s6882_s13 = smov %s4994_s14 }
 0x2b0   : > { %s6883_s14 = smov %s5084_s24  ;;  %s6884_s15 = smov %s5002_s16 }
 0x2b1   : > { %s6885_s16 = smov %s6887_s19  ;;  %15 = sbr.rel (!%p13_p10) target bundleno = 4 (0x4), region = 76 }
 0x2b6   :  { %3936 = vsyncpa [#allocation4], 1 }
 0x2b7   :  { %3938 = vsyncpa [#allocation4 + $0x1], 1 }

</bundles_post_ra>
